<compile_context>
chip_gen: v7x
topology: tpu7x:2x2x1
jax: 0.10.0
libtpu: 0.0.40
codegen_flags: <defaults>
</compile_context>

<pallas_src>
import functools

import jax
import jax.numpy as jnp
from jax.experimental import pallas as pl
from jax.experimental.pallas import tpu as pltpu

_LANE = 128            # TPU lane width: vocab dim padded up to a multiple of this.
_MAX_TILE_N = 2048     # rows of (B*T) per grid step; 2048*128*4B = 1 MiB per logits tile.
_N_CORES = 2           # leading "parallel" grid axis for the loss reduction (v7x megacore).
_NEG = -1e30           # finite "minus infinity" baked into padded vocab columns.
_VMEM_LIMIT = 48 * 1024 * 1024


def _round_up(x, m):
    return ((x + m - 1) // m) * m


def _cdiv(a, b):
    return -(-a // b)


# ---------------------------------------------------------------------------
# Kernels
# ---------------------------------------------------------------------------

def _logits_kernel(idx_ref, table_ref, logits_ref):
    """Embedding lookup for one tile of rows: logits[n, :] = table[idx[n], :].

    Realized as one-hot @ table on the MXU; the vocab is padded to 128 lanes so the
    logits store is an unmasked full-vreg vst.  HIGHEST precision keeps the f32 table
    rows bit-near-exact (default MXU precision is bf16-level).
    """
    tile_n = idx_ref.shape[0]
    v_pad = table_ref.shape[0]
    col = jax.lax.broadcasted_iota(jnp.int32, (tile_n, v_pad), 1)
    one_hot = (idx_ref[...] == col).astype(jnp.float32)
    logits_ref[...] = jnp.dot(one_hot, table_ref[...],
                              preferred_element_type=jnp.float32,
                              precision=jax.lax.Precision.HIGHEST)


def _tile_logits_and_nll_sum(it_ref, table_ref, n_valid):
    """Shared per-tile math: logits via MXU, logsumexp, masked NLL partial sum.

    The vocab mask is pre-baked into the table padding (-1e30 columns), so padded lanes
    underflow to 0 in the softmax denominator with no extra compare/select here.
    """
    tile_n = it_ref.shape[0]
    v_pad = table_ref.shape[0]
    col = jax.lax.broadcasted_iota(jnp.int32, (tile_n, v_pad), 1)

    idx = it_ref[:, 0:1]                                                   # (tile_n, 1)
    tgt = it_ref[:, 1:2]                                                   # (tile_n, 1)

    one_hot = (idx == col).astype(jnp.float32)                             # (tile_n, v_pad)
    logits = jnp.dot(one_hot, table_ref[...],
                     preferred_element_type=jnp.float32,
                     precision=jax.lax.Precision.HIGHEST)                  # (tile_n, v_pad)

    # log-sum-exp over all 128 lanes: padded lanes hold ~-1e30 (from the padded table),
    # so exp(pad - row_max) underflows to exactly 0 and never contributes.
    row_max = jnp.max(logits, axis=-1, keepdims=True)                      # (tile_n, 1)
    lse = jnp.log(jnp.sum(jnp.exp(logits - row_max),
                          axis=-1, keepdims=True)) + row_max               # (tile_n, 1)

    # Target logit via one fused compare/select/reduce (targets are always < V).
    tgt_logit = jnp.sum(jnp.where(tgt == col, logits, 0.0),
                        axis=-1, keepdims=True)                            # (tile_n, 1)

    # Mask out rows that are pure N-padding (global row index >= true N).
    blk = pl.program_id(0) * pl.num_programs(1) + pl.program_id(1)
    row = blk * tile_n + jax.lax.broadcasted_iota(jnp.int32, (tile_n, 1), 0)
    valid = (row < n_valid).astype(jnp.float32)
    nll_sum = jnp.sum((lse - tgt_logit) * valid)                           # scalar
    return logits, nll_sum


def _logits_loss_kernel(it_ref, table_ref, logits_ref, part_ref, *, n_valid):
    @pl.when(pl.program_id(1) == 0)
    def _():
        part_ref[...] = jnp.zeros_like(part_ref)

    logits, nll_sum = _tile_logits_and_nll_sum(it_ref, table_ref, n_valid)
    logits_ref[...] = logits
    part_ref[...] += nll_sum        # per-core partial sum, broadcast over the (1,8,128) block


def _loss_only_kernel(it_ref, table_ref, part_ref, *, n_valid):
    # Same as above, but never writes the (N, V) logits back to HBM (big win when the
    # caller only consumes the scalar loss).
    @pl.when(pl.program_id(1) == 0)
    def _():
        part_ref[...] = jnp.zeros_like(part_ref)

    _, nll_sum = _tile_logits_and_nll_sum(it_ref, table_ref, n_valid)
    part_ref[...] += nll_sum


# ---------------------------------------------------------------------------
# Jitted runners (padding / slicing glue + pallas_call)
# ---------------------------------------------------------------------------

def _pad_problem(idx2d, table, tgt2d=None):
    B, T = idx2d.shape
    V = table.shape[0]
    N = B * T
    v_pad = _round_up(V, _LANE)

    # Tile the N axis so that it splits evenly across _N_CORES "parallel" chunks.
    tile_n = min(_MAX_TILE_N, _round_up(_cdiv(N, _N_CORES), 8))
    tiles_per_core = _cdiv(N, _N_CORES * tile_n)
    n_pad = _N_CORES * tiles_per_core * tile_n

    # Pack idx (and targets) into a single lane-packed int32 array: one DMA per tile.
    it = jnp.zeros((n_pad, 2), jnp.int32)
    it = it.at[:N, 0].set(idx2d.reshape(-1).astype(jnp.int32))
    if tgt2d is not None:
        it = it.at[:N, 1].set(tgt2d.reshape(-1).astype(jnp.int32))

    # Padded vocab columns get a large *finite* negative so the MXU emits the lane mask
    # for free (never -inf: 0 * inf = NaN inside the matmul accumulation).
    table_pad = jnp.full((v_pad, v_pad), _NEG, jnp.float32)
    table_pad = table_pad.at[:V, :V].set(table.astype(jnp.float32))
    return N, V, n_pad, v_pad, tile_n, tiles_per_core, it, table_pad


@functools.partial(jax.jit, static_argnames=("padded_vocab",))
def _run_logits(idx2d, table, padded_vocab=False):
    N, V, n_pad, v_pad, tile_n, tpc, it, table_pad = _pad_problem(idx2d, table)
    n_tiles = _N_CORES * tpc
    logits_pad = pl.pallas_call(
        _logits_kernel,
        grid=(n_tiles,),
        in_specs=[
            pl.BlockSpec((tile_n, 1), lambda i: (i, 0)),
            pl.BlockSpec((v_pad, v_pad), lambda i: (0, 0)),
        ],
        out_specs=pl.BlockSpec((tile_n, v_pad), lambda i: (i, 0)),
        out_shape=jax.ShapeDtypeStruct((n_pad, v_pad), jnp.float32),
        compiler_params=pltpu.CompilerParams(
            dimension_semantics=("parallel",),   # independent tiles: both TCs on v7x
            vmem_limit_bytes=_VMEM_LIMIT),
    )(it[:, 0:1], table_pad)
    if padded_vocab:
        return logits_pad[:N]            # lane-dense row slice; padded lanes hold -1e30
    return logits_pad[:N, :V]


@functools.partial(jax.jit, static_argnames=("padded_vocab",))
def _run_logits_and_loss(idx2d, tgt2d, table, padded_vocab=False):
    N, V, n_pad, v_pad, tile_n, tpc, it, table_pad = _pad_problem(idx2d, table, tgt2d)
    kernel = functools.partial(_logits_loss_kernel, n_valid=N)
    logits_pad, partials = pl.pallas_call(
        kernel,
        grid=(_N_CORES, tpc),
        in_specs=[
            pl.BlockSpec((tile_n, 2), lambda c, j: (c * tpc + j, 0)),
            pl.BlockSpec((v_pad, v_pad), lambda c, j: (0, 0)),
        ],
        out_specs=(
            pl.BlockSpec((tile_n, v_pad), lambda c, j: (c * tpc + j, 0)),
            pl.BlockSpec((1, 8, 128), lambda c, j: (c, 0, 0)),
        ),
        out_shape=(
            jax.ShapeDtypeStruct((n_pad, v_pad), jnp.float32),
            jax.ShapeDtypeStruct((_N_CORES, 8, 128), jnp.float32),
        ),
        compiler_params=pltpu.CompilerParams(
            dimension_semantics=("parallel", "arbitrary"),  # 2-core split, inner reduction
            vmem_limit_bytes=_VMEM_LIMIT),
    )(it, table_pad)
    loss = jnp.sum(partials[:, 0, 0]) / jnp.float32(N)
    if padded_vocab:
        return logits_pad[:N], loss
    return logits_pad[:N, :V], loss


@jax.jit
def _run_loss_only(idx2d, tgt2d, table):
    N, V, n_pad, v_pad, tile_n, tpc, it, table_pad = _pad_problem(idx2d, table, tgt2d)
    kernel = functools.partial(_loss_only_kernel, n_valid=N)
    partials = pl.pallas_call(
        kernel,
        grid=(_N_CORES, tpc),
        in_specs=[
            pl.BlockSpec((tile_n, 2), lambda c, j: (c * tpc + j, 0)),
            pl.BlockSpec((v_pad, v_pad), lambda c, j: (0, 0)),
        ],
        out_specs=pl.BlockSpec((1, 8, 128), lambda c, j: (c, 0, 0)),
        out_shape=jax.ShapeDtypeStruct((_N_CORES, 8, 128), jnp.float32),
        compiler_params=pltpu.CompilerParams(
            dimension_semantics=("parallel", "arbitrary"),
            vmem_limit_bytes=_VMEM_LIMIT),
    )(it, table_pad)
    return jnp.sum(partials[:, 0, 0]) / jnp.float32(N)


# ---------------------------------------------------------------------------
# Public wrapper (mirrors BigrammLanguageModel.forward)
# ---------------------------------------------------------------------------

def bigram_forward(idx, table, targets=None, return_logits=True, return_padded_vocab=False):
    """Mirrors BigrammLanguageModel.forward.

    idx:     (B, T) int token ids
    table:   (V, V) f32 nn.Embedding weight (row v = logits for token v)
    targets: (B, T) int or None
    Returns (logits, loss):
      targets is None                     -> logits (B, T, V), loss None
      targets given                       -> logits (B*T, V),  loss scalar f32
      targets given, return_logits=False  -> (None, loss)      # skips (N,V) HBM write-back
    return_padded_vocab=True returns lane-padded (..., 128) logits (padded lanes = -1e30,
    softmax-safe) and skips the 128->V lane relayout copy in the wrapper.
    """
    B, T = idx.shape
    V = table.shape[0]
    if targets is None:
        logits = _run_logits(idx, table, padded_vocab=return_padded_vocab)
        return logits.reshape(B, T, logits.shape[-1]), None
    if return_logits:
        return _run_logits_and_loss(idx, targets, table, padded_vocab=return_padded_vocab)
    return None, _run_loss_only(idx, targets, table)


if __name__ == "__main__":
    key = jax.random.PRNGKey(0)
    k_table, k_idx, k_tgt = jax.random.split(key, 3)

    vocab_size = 65          # char-level vocab, like the original script
    B, T = 8, 128            # 1024 rows -> 2 tiles of 512 (one per core)

    # nn.Embedding default init ~ N(0, 1)
    table = jax.random.normal(k_table, (vocab_size, vocab_size), dtype=jnp.float32)
    idx = jax.random.randint(k_idx, (B, T), 0, vocab_size, dtype=jnp.int32)
    targets = jax.random.randint(k_tgt, (B, T), 0, vocab_size, dtype=jnp.int32)

    # training path: logits (B*T, V) + scalar loss
    logits, loss = bigram_forward(idx, table, targets)
    # generation path: logits (B, T, V), loss None
    logits_nt, loss_nt = bigram_forward(idx, table, None)
    # loss-only path: skips logits HBM write-back
    _, loss_only = bigram_forward(idx, table, targets, return_logits=False)
    # lane-padded path: skips the wrapper-side 128->65 lane relayout
    logits_padded, loss_padded = bigram_forward(idx, table, targets,
                                                return_padded_vocab=True)
    jax.block_until_ready((logits, loss, logits_nt, loss_only, logits_padded, loss_padded))

    # pure-JAX reference
    N = B * T
    ref_logits = table[idx.reshape(-1)]                                    # (N, V)
    ref_lse = jax.scipy.special.logsumexp(ref_logits, axis=-1)
    ref_loss = jnp.mean(ref_lse - ref_logits[jnp.arange(N), targets.reshape(-1)])

    assert logits.shape == (N, vocab_size)
    assert jnp.allclose(logits, ref_logits, atol=1e-5)
    assert jnp.allclose(loss, ref_loss, atol=1e-4, rtol=1e-5)
    assert jnp.allclose(loss_only, ref_loss, atol=1e-4, rtol=1e-5)
    assert loss_nt is None and logits_nt.shape == (B, T, vocab_size)
    assert jnp.allclose(logits_nt.reshape(N, vocab_size), ref_logits, atol=1e-5)
    assert logits_padded.shape == (N, 128)
    assert jnp.allclose(logits_padded[:, :vocab_size], ref_logits, atol=1e-5)
    assert jnp.all(logits_padded[:, vocab_size:] < -1e29)   # padded lanes are masked
    assert jnp.allclose(loss_padded, ref_loss, atol=1e-4, rtol=1e-5)

    # tiny, heavily-padded case (exercises row masking + tiny tiles): B=2, T=8
    B2, T2 = 2, 8
    idx2 = jax.random.randint(k_idx, (B2, T2), 0, vocab_size, dtype=jnp.int32)
    tgt2 = jax.random.randint(k_tgt, (B2, T2), 0, vocab_size, dtype=jnp.int32)
    logits2, loss2 = bigram_forward(idx2, table, tgt2)
    jax.block_until_ready((logits2, loss2))
    ref_logits2 = table[idx2.reshape(-1)]
    ref_lse2 = jax.scipy.special.logsumexp(ref_logits2, axis=-1)
    ref_loss2 = jnp.mean(ref_lse2 - ref_logits2[jnp.arange(B2 * T2), tgt2.reshape(-1)])
    assert jnp.allclose(logits2, ref_logits2, atol=1e-5)
    assert jnp.allclose(loss2, ref_loss2, atol=1e-4, rtol=1e-5)

    # single-token case, as used by generate(): idx shape (1, 1)
    idx1 = jnp.zeros((1, 1), jnp.int32)
    logits1, loss1 = bigram_forward(idx1, table, None)
    jax.block_until_ready(logits1)
    assert loss1 is None and logits1.shape == (1, 1, vocab_size)
    assert jnp.allclose(logits1[0, 0], table[0], atol=1e-5)

    print("KERNEL_OK")
</pallas_src>

<mosaic_0001>
module attributes {stable_mosaic.version = 11 : i64} {
  func.func @_logits_loss_kernel(%arg0: i32, %arg1: i32, %arg2: memref<512x2xi32, #tpu.memory_space<vmem>>, %arg3: memref<128x128xf32, #tpu.memory_space<vmem>>, %arg4: memref<512x128xf32, #tpu.memory_space<vmem>>, %arg5: memref<1x8x128xf32, #tpu.memory_space<vmem>>) attributes {dimension_semantics = [#tpu.dimension_semantics<parallel>, #tpu.dimension_semantics<arbitrary>], iteration_bounds = array<i64: 2, 1>, scalar_prefetch = 0 : i64, scratch_operands = 0 : i64, tpu.core_type = #tpu.core_type<tc>, window_params = [{transform_indices = @transform_0, window_bounds = array<i64: 512, 2>}, {pipeline_mode = #tpu.pipeline_mode<synchronous>, transform_indices = @transform_1, window_bounds = array<i64: 128, 128>}, {transform_indices = @transform_2, window_bounds = array<i64: 512, 128>}, {transform_indices = @transform_3, window_bounds = array<i64: 1, 8, 128>}]} {
    %c0_i32 = arith.constant 0 : i32
    %0 = arith.cmpi eq, %arg1, %c0_i32 : i32
    %1 = arith.extui %0 : i1 to i32
    %c0_i32_0 = arith.constant 0 : i32
    %2 = arith.cmpi ne, %1, %c0_i32_0 : i32
    scf.if %2 {
      %cst_18 = arith.constant 0.000000e+00 : f32
      %48 = vector.broadcast %cst_18 : f32 to vector<1x8x128xf32>
      %c0_19 = arith.constant 0 : index
      %c0_20 = arith.constant 0 : index
      %c0_21 = arith.constant 0 : index
      %49 = vector.load %arg5[%c0_19, %c0_20, %c0_21] : memref<1x8x128xf32, #tpu.memory_space<vmem>>, vector<1x8x128xf32>
      tpu.vector_store %arg5[%c0_19, %c0_20, %c0_21], %48 {strides = array<i32>} : memref<1x8x128xf32, #tpu.memory_space<vmem>>, vector<1x8x128xf32>,
    } else {
    }
    %3 = tpu.iota {dimensions = array<i32: 1>} : vector<512x128xi32>
    %c0 = arith.constant 0 : index
    %c0_1 = arith.constant 0 : index
    %4 = vector.load %arg2[%c0, %c0_1] : memref<512x2xi32, #tpu.memory_space<vmem>>, vector<512x1xi32>
    %c0_2 = arith.constant 0 : index
    %c1 = arith.constant 1 : index
    %5 = vector.load %arg2[%c0_2, %c1] : memref<512x2xi32, #tpu.memory_space<vmem>>, vector<512x1xi32>
    %6 = vector.broadcast %4 : vector<512x1xi32> to vector<512x128xi32>
    %7 = arith.cmpi eq, %6, %3 : vector<512x128xi32>
    %8 = arith.extui %7 : vector<512x128xi1> to vector<512x128xi32>
    %9 = arith.sitofp %8 : vector<512x128xi32> to vector<512x128xf32>
    %c0_3 = arith.constant 0 : index
    %c0_4 = arith.constant 0 : index
    %10 = vector.load %arg3[%c0_3, %c0_4] : memref<128x128xf32, #tpu.memory_space<vmem>>, vector<128x128xf32>
    %cst = arith.constant dense<0.000000e+00> : vector<512x128xf32>
    %11 = tpu.matmul %9, %10, %cst {dimension_numbers = #tpu.dot_dimension_numbers<[1], [0], [0], [1], [0, 0, 1, 1], [], []>, precision = #tpu.contract_precision<fp32>} : vector<512x128xf32>, vector<128x128xf32>, vector<512x128xf32> -> vector<512x128xf32>
    %cst_5 = arith.constant dense<0xFF800000> : vector<512xf32>
    %12 = vector.multi_reduction <maximumf>, %11, %cst_5 [1] : vector<512x128xf32> to vector<512xf32>
    %13 = vector.shape_cast %12 : vector<512xf32> to vector<512x1xf32>
    %14 = vector.broadcast %13 : vector<512x1xf32> to vector<512x128xf32>
    %15 = arith.subf %11, %14 : vector<512x128xf32>
    %16 = math.exp %15 : vector<512x128xf32>
    %cst_6 = arith.constant dense<0.000000e+00> : vector<512xf32>
    %17 = vector.multi_reduction <add>, %16, %cst_6 [1] : vector<512x128xf32> to vector<512xf32>
    %18 = vector.shape_cast %17 : vector<512xf32> to vector<512x1xf32>
    %19 = math.log %18 : vector<512x1xf32>
    %20 = arith.addf %19, %13 : vector<512x1xf32>
    %21 = vector.broadcast %5 : vector<512x1xi32> to vector<512x128xi32>
    %22 = arith.cmpi eq, %21, %3 : vector<512x128xi32>
    %cst_7 = arith.constant 0.000000e+00 : f32
    %23 = vector.broadcast %cst_7 : f32 to vector<512x128xf32>
    %24 = arith.select %22, %11, %23 : vector<512x128xi1>, vector<512x128xf32>
    %cst_8 = arith.constant dense<0.000000e+00> : vector<512xf32>
    %25 = vector.multi_reduction <add>, %24, %cst_8 [1] : vector<512x128xf32> to vector<512xf32>
    %26 = vector.shape_cast %25 : vector<512xf32> to vector<512x1xf32>
    %c1_i32 = arith.constant 1 : i32
    %27 = arith.muli %arg0, %c1_i32 : i32
    %28 = arith.addi %27, %arg1 : i32
    %c512_i32 = arith.constant 512 : i32
    %29 = arith.muli %28, %c512_i32 : i32
    %30 = tpu.iota {dimensions = array<i32: 0>} : vector<512x1xi32>
    %31 = vector.broadcast %29 : i32 to vector<512x1xi32>
    %32 = arith.addi %31, %30 : vector<512x1xi32>
    %c1024_i32 = arith.constant 1024 : i32
    %33 = vector.broadcast %c1024_i32 : i32 to vector<512x1xi32>
    %34 = arith.cmpi slt, %32, %33 : vector<512x1xi32>
    %35 = arith.extui %34 : vector<512x1xi1> to vector<512x1xi32>
    %36 = arith.sitofp %35 : vector<512x1xi32> to vector<512x1xf32>
    %37 = arith.subf %20, %26 : vector<512x1xf32>
    %38 = arith.mulf %37, %36 : vector<512x1xf32>
    %39 = vector.shape_cast %38 : vector<512x1xf32> to vector<1x512x1xf32>
    %cst_9 = arith.constant dense<0.000000e+00> : vector<1xf32>
    %40 = vector.multi_reduction <add>, %39, %cst_9 [1, 2] : vector<1x512x1xf32> to vector<1xf32>
    %41 = vector.shape_cast %40 : vector<1xf32> to vector<1x1x1xf32>
    %42 = vector.extract %41[0, 0, 0] : f32 from vector<1x1x1xf32>
    %c0_10 = arith.constant 0 : index
    %c0_11 = arith.constant 0 : index
    %43 = vector.load %arg4[%c0_10, %c0_11] : memref<512x128xf32, #tpu.memory_space<vmem>>, vector<512x128xf32>
    tpu.vector_store %arg4[%c0_10, %c0_11], %11 {strides = array<i32>} : memref<512x128xf32, #tpu.memory_space<vmem>>, vector<512x128xf32>,
    %c0_12 = arith.constant 0 : index
    %c0_13 = arith.constant 0 : index
    %c0_14 = arith.constant 0 : index
    %44 = vector.load %arg5[%c0_12, %c0_13, %c0_14] : memref<1x8x128xf32, #tpu.memory_space<vmem>>, vector<1x8x128xf32>
    %45 = vector.broadcast %42 : f32 to vector<1x8x128xf32>
    %46 = arith.addf %44, %45 : vector<1x8x128xf32>
    %c0_15 = arith.constant 0 : index
    %c0_16 = arith.constant 0 : index
    %c0_17 = arith.constant 0 : index
    %47 = vector.load %arg5[%c0_15, %c0_16, %c0_17] : memref<1x8x128xf32, #tpu.memory_space<vmem>>, vector<1x8x128xf32>
    tpu.vector_store %arg5[%c0_15, %c0_16, %c0_17], %46 {strides = array<i32>} : memref<1x8x128xf32, #tpu.memory_space<vmem>>, vector<1x8x128xf32>,
    return
  }
  func.func @transform_0(%arg0: i32, %arg1: i32) -> (i32, i32) {
    %c1_i32 = arith.constant 1 : i32
    %0 = arith.muli %arg0, %c1_i32 : i32
    %1 = arith.addi %0, %arg1 : i32
    %c0_i32 = arith.constant 0 : i32
    %c0_i32_0 = arith.constant 0 : i32
    return %1, %c0_i32 : i32, i32
  }
  func.func @transform_1(%arg0: i32, %arg1: i32) -> (i32, i32) {
    %c0_i32 = arith.constant 0 : i32
    %c0_i32_0 = arith.constant 0 : i32
    %c0_i32_1 = arith.constant 0 : i32
    return %c0_i32, %c0_i32_0 : i32, i32
  }
  func.func @transform_2(%arg0: i32, %arg1: i32) -> (i32, i32) {
    %c1_i32 = arith.constant 1 : i32
    %0 = arith.muli %arg0, %c1_i32 : i32
    %1 = arith.addi %0, %arg1 : i32
    %c0_i32 = arith.constant 0 : i32
    %c0_i32_0 = arith.constant 0 : i32
    return %1, %c0_i32 : i32, i32
  }
  func.func @transform_3(%arg0: i32, %arg1: i32) -> (i32, i32, i32) {
    %c0_i32 = arith.constant 0 : i32
    %c0_i32_0 = arith.constant 0 : i32
    %c0_i32_1 = arith.constant 0 : i32
    return %arg0, %c0_i32, %c0_i32_0 : i32, i32, i32
  }
}

</mosaic_0001>

<bundles_post_ra>
// kernel: _run_logits_and_loss.1
= control target key start
LH: loop header
LB: loop body
LE: loop exit
PB: predicated region body
PF: predicated region fallthrough
CT: control target
= control target key end

     0   :  { %s8406_s12 = smov 0   ;;  %s8408_s13 = smov 0   ;;  %s12131_s0 = inlined_call_operand.vmem [shape: s32[1024,2], index: 0, kind: input, shape index: {}]   ;;  %s12132_s1 = inlined_call_operand.vmem [shape: f32[128,128], index: 1, kind: input, shape index: {}]   ;;  %s12133_s2 = inlined_call_operand.vmem [shape: f32[1024,128], index: 2, kind: output, shape index: {0}]   ;;  %s12134_s3 = inlined_call_operand.vmem [shape: f32[2,8,128], index: 3, kind: output, shape index: {1}]  }
   0x1   :  { %s8410_s14 = smov 0  }
   0x2 LB: > { %s26_s15 = sadd.s32 1, %s8376_s13  ;;  %p5878_p0 = scmp.ge.s32.totalorder %s8380_s14, 1  ;;  %s8380_s14 = sphi %s8410_s14, %s14_s14   ;;  %s8376_s13 = sphi %s8408_s13, %s13058_s13   ;;  %s8372_s12 = sphi %s8406_s12, %s13057_s12  }
   0x3   : > { %p28_p1 = scmp.ge.s32.totalorder %s26_s15, 2  ;;  %p159_p2 = scmp.lt.s32.totalorder %s8380_s14, 3 }
   0x5   : > { %s13060_s15 = smov (%p28_p1, %s26_s15), 0  ;;  %p160_p3 = pnand %p5878_p0, %p159_p2 }
   0x7   : > { %163 = sbr.rel (%p160_p3) target bundleno = 1459 (0x5b3), region = 28 }
   0xe   : > { %s5879_s16 = sshll.u32 %s8372_s12, 6  ;;  %v8430_v0 = vld [vmem:[%s12132_s1] sm:$0xff]  ;;  %v8435_v1 = vld [vmem:[%s12132_s1 + $0x8] sm:$0xff]  ;;  %v8440_v2 = vld [vmem:[%s12132_s1 + $0x10] sm:$0xff]  ;;  %v8382_v3 = vmov 0   ;;  %p205_p5 = scmp.lt.s32.totalorder %s8372_s12, 1 }
   0xf   : > { %7998 = vset.pattern.permute.xlu1 %v8382_v3  ;;  %7997 = vset.pattern.permute.xlu0 %v8382_v3  ;;  %p191_p4 = scmp.lt.s32.totalorder %s5879_s16, 127  ;;  %v681_v4 = vand.u32 4294901760, %v8430_v0  ;;  %v684_v5 = vand.u32 4294901760, %v8435_v1  ;;  %v8447_v6 = vld [vmem:[%s12132_s1 + $0x18] sm:$0xff]  ;;  %v687_v7 = vand.u32 4294901760, %v8440_v2  ;;  %v8453_v8 = vld [vmem:[%s12132_s1 + $0x20] sm:$0xff] }
  0x10   : > { %v690_v9 = vand.u32 4294901760, %v8447_v6  ;;  %v8459_v10 = vld [vmem:[%s12132_s1 + $0x28] sm:$0xff]  ;;  %v693_v12 = vand.u32 4294901760, %v8453_v8  ;;  %v8480_v15 = vld [vmem:[%s12132_s1 + $0x30] sm:$0xff]  ;;  %v8485_v16 = vld [vmem:[%s12132_s1 + $0x38] sm:$0xff] }
  0x11   : > { %s13062_s16 = smov (!%p191_p4, %s5879_s16), 127  ;;  %v8467_v11 = vpack.c.bf16 %v684_v5, %v681_v4  ;;  %v696_v13 = vand.u32 4294901760, %v8459_v10  ;;  %v699_v20 = vand.u32 4294901760, %v8480_v15  ;;  %v702_v21 = vand.u32 4294901760, %v8485_v16  ;;  %v8514_v22 = vld [vmem:[%s12132_s1 + $0x40] sm:$0xff]  ;;  %v8519_v23 = vld [vmem:[%s12132_s1 + $0x48] sm:$0xff] }
  0x12   : > { %v8475_v14 = vpack.c.bf16 %v690_v9, %v687_v7  ;;  %s5880_s6 = sshll.u32 %s13062_s16, 3  ;;  %v705_v27 = vand.u32 4294901760, %v8514_v22  ;;  %v708_v28 = vand.u32 4294901760, %v8519_v23  ;;  %v8538_v29 = vld [vmem:[%s12132_s1 + $0x50] sm:$0xff]  ;;  %v8543_v30 = vld [vmem:[%s12132_s1 + $0x58] sm:$0xff]  ;;  %v8562_v36 = vld [vmem:[%s12132_s1 + $0x60] sm:$0xff]  ;;  %v8590_v45 = vsub.f32 %v8430_v0, %v681_v4 }
  0x13   : > { %7552 = vmatprep.subr.bf16.mxu0 %v8467_v11  ;;  %7456 = vmatprep.subr.bf16.mxu1 %v8467_v11  ;;  %s8495_s9 = scalar_lea.vmem %s12131_s0, %s5880_s6  ;;  %v8507_v19 = vpack.c.bf16 %v696_v13, %v693_v12  ;;  %v8531_v26 = vpack.c.bf16 %v702_v21, %v699_v20  ;;  %v711_v34 = vand.u32 4294901760, %v8538_v29  ;;  %v714_v35 = vand.u32 4294901760, %v8543_v30  ;;  %v8567_v37 = vld [vmem:[%s12132_s1 + $0x68] sm:$0xff]  ;;  %v8618_v54 = vld [vmem:[%s12132_s1 + $0x70] sm:$0xff]  ;;  %v8623_v55 = vld [vmem:[%s12132_s1 + $0x78] sm:$0xff]  ;;  %s10627_s7 = scalar_lea.vmem %s12133_s2, %s5880_s6 }
  0x14   : > { %7554 = vmatpush3.bf16.msra.mxu0 %v8467_v11  ;;  %7458 = vmatpush3.bf16.msra.mxu1 %v8467_v11  ;;  %v218_v17 = vld [vmem:[%s8495_s9 + $0x10] sm:$0xff]  ;;  %v216_v18 = vld [vmem:[%s8495_s9] sm:$0xff]  ;;  %v219_v24 = vld [vmem:[%s8495_s9 + $0x18] sm:$0xff]  ;;  %v8555_v33 = vpack.c.bf16 %v708_v28, %v705_v27  ;;  %v717_v41 = vand.u32 4294901760, %v8562_v36  ;;  %v720_v42 = vand.u32 4294901760, %v8567_v37  ;;  %v8595_v46 = vsub.f32 %v8435_v1, %v684_v5  ;;  %s6140_s16 = sshll.u32 %s8372_s12, 9 }
  0x15   : > { %7556 = vmatprep.subr.bf16.mxu0 %v8475_v14  ;;  %7460 = vmatprep.subr.bf16.mxu1 %v8475_v14  ;;  %v217_v25 = vld [vmem:[%s8495_s9 + $0x8] sm:$0xff]  ;;  %v220_v32 = vld [vmem:[%s8495_s9 + $0x20] sm:$0xff]  ;;  %v223_v38 = vld [vmem:[%s8495_s9 + $0x38] sm:$0xff]  ;;  %v8579_v40 = vpack.c.bf16 %v714_v35, %v711_v34  ;;  %v1404_v48 = vand.u32 4294901760, %v8590_v45  ;;  %v12137_v60 = vand.u32 4294901760, %v8618_v54  ;;  %v12136_v61 = vand.u32 4294901760, %v8623_v55 }
  0x16   : > { %287 = vperm.xlu1 %7998, %v218_v17   ;;  %281 = vperm.xlu0 %7997, %v216_v18   ;;  %v221_v31 = vld [vmem:[%s8495_s9 + $0x28] sm:$0xff]  ;;  %v222_v39 = vld [vmem:[%s8495_s9 + $0x30] sm:$0xff]  ;;  %v224_v44 = vld [vmem:[%s8495_s9 + $0x40] sm:$0xff]  ;;  %v8603_v47 = vpack.c.bf16 %v720_v42, %v717_v41  ;;  %v1411_v49 = vand.u32 4294901760, %v8595_v46  ;;  %v8654_v17 = vsub.f32 %v8440_v2, %v687_v7  ;;  %v8659_v18 = vsub.f32 %v8447_v6, %v690_v9  ;;  %s13064_s12 = smov (!%p205_p5, %s8372_s12), 1 }
  0x17   : > { %v225_v43 = vld [vmem:[%s8495_s9 + $0x48] sm:$0xff]  ;;  %v227_v50 = vld [vmem:[%s8495_s9 + $0x58] sm:$0xff]  ;;  %v226_v51 = vld [vmem:[%s8495_s9 + $0x50] sm:$0xff]  ;;  %v1405_v52 = vsub.f32 %v8590_v45, %v1404_v48  ;;  %v8635_v62 = vpack.c.bf16 %v12136_v61, %v12137_v60  ;;  %s5883_s6 = sshll.u32 %s13064_s12, 3 }
  0x18   : > { %7558 = vmatpush3.bf16.msra.mxu0 %v8475_v14  ;;  %7462 = vmatpush3.bf16.msra.mxu1 %v8475_v14  ;;  %12417 = vst [vmem:[#allocation2_spill] sm:$0xff] %v8603_v47  ;;  %v1412_v53 = vsub.f32 %v8595_v46, %v1411_v49  ;;  %v229_v58 = vld [vmem:[%s8495_s9 + $0x68] sm:$0xff]  ;;  %v228_v59 = vld [vmem:[%s8495_s9 + $0x60] sm:$0xff]  ;;  %v8639_v0 = vpack.c.bf16 %v1411_v49, %v1404_v48  ;;  %v231_v1 = vld [vmem:[%s8495_s9 + $0x78] sm:$0xff]  ;;  %s208_s11 = scalar_lea.vmem %s12134_s3, %s5883_s6 }
  0x19   : > { %7560 = vmatprep.subr.bf16.mxu0 %v8507_v19  ;;  %7464 = vmatprep.subr.bf16.mxu1 %v8507_v19  ;;  %v1406_v56 = vand.u32 4294901760, %v1405_v52  ;;  %12418 = vst [vmem:[#allocation3_spill] sm:$0xff] %v8635_v62  ;;  %v230_v3 = vld [vmem:[%s8495_s9 + $0x70] sm:$0xff]  ;;  %v233_v4 = vld [vmem:[%s8495_s9 + $0x88] sm:$0xff]  ;;  %v232_v5 = vld [vmem:[%s8495_s9 + $0x80] sm:$0xff] }
  0x1a   : > { %290 = vperm.xlu1 %7998, %v219_v24   ;;  %284 = vperm.xlu0 %7997, %v217_v25   ;;  %v1413_v57 = vand.u32 4294901760, %v1412_v53  ;;  %v235_v24 = vld [vmem:[%s8495_s9 + $0x98] sm:$0xff]  ;;  %v234_v25 = vld [vmem:[%s8495_s9 + $0x90] sm:$0xff]  ;;  %v241_v6 = vld [vmem:[%s8495_s9 + $0xc8] sm:$0xff] }
  0x1b   : > { %v239_v2 = vld [vmem:[%s8495_s9 + $0xb8] sm:$0xff]  ;;  %v238_v7 = vld [vmem:[%s8495_s9 + $0xb0] sm:$0xff]  ;;  %v240_v9 = vld [vmem:[%s8495_s9 + $0xc0] sm:$0xff] }
  0x1c   : > { %7562 = vmatpush3.bf16.msra.mxu0 %v8507_v19  ;;  %7466 = vmatpush3.bf16.msra.mxu1 %v8507_v19  ;;  %v8637_v63 = vpack.c.bf16 %v1413_v57, %v1406_v56  ;;  %v245_v48 = vld [vmem:[%s8495_s9 + $0xe8] sm:$0xff]  ;;  %v244_v49 = vld [vmem:[%s8495_s9 + $0xe0] sm:$0xff]  ;;  %v255_v56 = vld [vmem:[%s8495_s9 + $0x138] sm:$0xff] }
  0x1d   : > { %7564 = vmatprep.subr.bf16.mxu0 %v8531_v26  ;;  %7468 = vmatprep.subr.bf16.mxu1 %v8531_v26  ;;  %v253_v52 = vld [vmem:[%s8495_s9 + $0x128] sm:$0xff]  ;;  %v252_v53 = vld [vmem:[%s8495_s9 + $0x120] sm:$0xff]  ;;  %v254_v57 = vld [vmem:[%s8495_s9 + $0x130] sm:$0xff] }
  0x1e   : > { %296 = vperm.xlu1 %7998, %v221_v31   ;;  %293 = vperm.xlu0 %7997, %v220_v32   ;;  %v237_v31 = vld [vmem:[%s8495_s9 + $0xa8] sm:$0xff]  ;;  %v236_v32 = vld [vmem:[%s8495_s9 + $0xa0] sm:$0xff] }
  0x20   : > { %7566 = vmatpush3.bf16.msra.mxu0 %v8531_v26  ;;  %7470 = vmatpush3.bf16.msra.mxu1 %v8531_v26 }
  0x21   : > { %7568 = vmatprep.subr.bf16.mxu0 %v8555_v33  ;;  %7472 = vmatprep.subr.bf16.mxu1 %v8555_v33 }
  0x22   : > { %302 = vperm.xlu1 %7998, %v223_v38   ;;  %299 = vperm.xlu0 %7997, %v222_v39   ;;  %v8672_v38 = vsub.f32 %v8453_v8, %v693_v12  ;;  %v8677_v39 = vsub.f32 %v8459_v10, %v696_v13  ;;  %v247_v8 = vld [vmem:[%s8495_s9 + $0xf8] sm:$0xff]  ;;  %v246_v12 = vld [vmem:[%s8495_s9 + $0xf0] sm:$0xff]  ;;  %v249_v10 = vld [vmem:[%s8495_s9 + $0x108] sm:$0xff] }
  0x23   : > { %v248_v13 = vld [vmem:[%s8495_s9 + $0x100] sm:$0xff] }
  0x24   : > { %7570 = vmatpush3.bf16.msra.mxu0 %v8555_v33  ;;  %7474 = vmatpush3.bf16.msra.mxu1 %v8555_v33 }
  0x25   : > { %7572 = vmatprep.subr.bf16.mxu0 %v8579_v40  ;;  %7476 = vmatprep.subr.bf16.mxu1 %v8579_v40 }
  0x26   : > { %308 = vperm.xlu1 %7998, %v225_v43   ;;  %305 = vperm.xlu0 %7997, %v224_v44   ;;  %v243_v43 = vld [vmem:[%s8495_s9 + $0xd8] sm:$0xff]  ;;  %v242_v44 = vld [vmem:[%s8495_s9 + $0xd0] sm:$0xff] }
  0x28   : > { %7574 = vmatpush3.bf16.msra.mxu0 %v8579_v40  ;;  %7478 = vmatpush3.bf16.msra.mxu1 %v8579_v40 }
  0x29   : > { %7576 = vmatprep.subr.bf16.mxu0 %v8603_v47  ;;  %7480 = vmatprep.subr.bf16.mxu1 %v8603_v47 }
  0x2a   : > { %314 = vperm.xlu1 %7998, %v227_v50   ;;  %311 = vperm.xlu0 %7997, %v226_v51   ;;  %v251_v50 = vld [vmem:[%s8495_s9 + $0x118] sm:$0xff]  ;;  %v250_v51 = vld [vmem:[%s8495_s9 + $0x110] sm:$0xff] }
  0x2c   : > { %7578 = vmatpush3.bf16.msra.mxu0 %v8603_v47  ;;  %7482 = vmatpush3.bf16.msra.mxu1 %v8603_v47 }
  0x2d   : > { %7580 = vmatprep.subr.bf16.mxu0 %v8635_v62  ;;  %7484 = vmatprep.subr.bf16.mxu1 %v8635_v62 }
  0x2e   : > { %320 = vperm.xlu1 %7998, %v229_v58   ;;  %317 = vperm.xlu0 %7997, %v228_v59   ;;  %v257_v58 = vld [vmem:[%s8495_s9 + $0x148] sm:$0xff]  ;;  %v256_v59 = vld [vmem:[%s8495_s9 + $0x140] sm:$0xff] }
  0x30   : > { %7582 = vmatpush3.bf16.msra.mxu0 %v8635_v62  ;;  %7486 = vmatpush3.bf16.msra.mxu1 %v8635_v62 }
  0x31   : > { %7488 = vmatprep.subr.bf16.mxu1 %v8637_v63  ;;  %7584 = vmatprep.subr.bf16.mxu0 %v8639_v0 }
  0x32   : > { %326 = vperm.xlu1 %7998, %v231_v1   ;;  %323 = vperm.xlu0 %7997, %v230_v3   ;;  %v259_v1 = vld [vmem:[%s8495_s9 + $0x158] sm:$0xff]  ;;  %v258_v3 = vld [vmem:[%s8495_s9 + $0x150] sm:$0xff] }
  0x36   : > { %332 = vperm.xlu1 %7998, %v233_v4   ;;  %329 = vperm.xlu0 %7997, %v232_v5   ;;  %v261_v4 = vld [vmem:[%s8495_s9 + $0x168] sm:$0xff]  ;;  %v260_v5 = vld [vmem:[%s8495_s9 + $0x160] sm:$0xff] }
  0x3a   : > { %338 = vperm.xlu1 %7998, %v235_v24   ;;  %335 = vperm.xlu0 %7997, %v234_v25   ;;  %v263_v24 = vld [vmem:[%s8495_s9 + $0x178] sm:$0xff]  ;;  %v262_v25 = vld [vmem:[%s8495_s9 + $0x170] sm:$0xff] }
  0x3e   : > { %344 = vperm.xlu1 %7998, %v237_v31   ;;  %341 = vperm.xlu0 %7997, %v236_v32   ;;  %v265_v31 = vld [vmem:[%s8495_s9 + $0x188] sm:$0xff]  ;;  %v264_v32 = vld [vmem:[%s8495_s9 + $0x180] sm:$0xff] }
  0x42   : > { %350 = vperm.xlu1 %7998, %v239_v2   ;;  %347 = vperm.xlu0 %7997, %v238_v7   ;;  %v267_v2 = vld [vmem:[%s8495_s9 + $0x198] sm:$0xff]  ;;  %v266_v7 = vld [vmem:[%s8495_s9 + $0x190] sm:$0xff] }
  0x46   : > { %356 = vperm.xlu1 %7998, %v241_v6   ;;  %353 = vperm.xlu0 %7997, %v240_v9   ;;  %v269_v6 = vld [vmem:[%s8495_s9 + $0x1a8] sm:$0xff]  ;;  %v268_v9 = vld [vmem:[%s8495_s9 + $0x1a0] sm:$0xff] }
  0x4a   : > { %362 = vperm.xlu1 %7998, %v243_v43   ;;  %359 = vperm.xlu0 %7997, %v242_v44   ;;  %v271_v43 = vld [vmem:[%s8495_s9 + $0x1b8] sm:$0xff]  ;;  %v270_v44 = vld [vmem:[%s8495_s9 + $0x1b0] sm:$0xff] }
  0x4e   : > { %368 = vperm.xlu1 %7998, %v245_v48   ;;  %365 = vperm.xlu0 %7997, %v244_v49   ;;  %v273_v48 = vld [vmem:[%s8495_s9 + $0x1c8] sm:$0xff]  ;;  %v272_v49 = vld [vmem:[%s8495_s9 + $0x1c0] sm:$0xff] }
  0x52   : > { %374 = vperm.xlu1 %7998, %v247_v8   ;;  %371 = vperm.xlu0 %7997, %v246_v12   ;;  %v275_v8 = vld [vmem:[%s8495_s9 + $0x1d8] sm:$0xff]  ;;  %v274_v12 = vld [vmem:[%s8495_s9 + $0x1d0] sm:$0xff] }
  0x56   : > { %380 = vperm.xlu1 %7998, %v249_v10   ;;  %377 = vperm.xlu0 %7997, %v248_v13   ;;  %v8716_v10 = vsub.f32 %v8480_v15, %v699_v20  ;;  %v8721_v13 = vsub.f32 %v8485_v16, %v702_v21  ;;  %v8732_v15 = vsub.f32 %v8514_v22, %v705_v27  ;;  %v12135_v20 = vlaneseq }
  0x57   : > { %v8737_v16 = vsub.f32 %v8519_v23, %v708_v28 }
  0x58   : > { %v1446_v21 = vand.u32 4294901760, %v8716_v10  ;;  %v1460_v23 = vand.u32 4294901760, %v8732_v15 }
  0x59   : > { %v1467_v28 = vand.u32 4294901760, %v8737_v16 }
  0x5a   : > { %386 = vperm.xlu1 %7998, %v251_v50   ;;  %383 = vperm.xlu0 %7997, %v250_v51   ;;  %v277_v50 = vld [vmem:[%s8495_s9 + $0x1e8] sm:$0xff]  ;;  %v276_v51 = vld [vmem:[%s8495_s9 + $0x1e0] sm:$0xff] }
  0x5e   : > { %392 = vperm.xlu1 %7998, %v253_v52   ;;  %389 = vperm.xlu0 %7997, %v252_v53   ;;  %v1418_v52 = vand.u32 4294901760, %v8654_v17  ;;  %v1425_v53 = vand.u32 4294901760, %v8659_v18 }
  0x62   : > { %398 = vperm.xlu1 %7998, %v255_v56   ;;  %395 = vperm.xlu0 %7997, %v254_v57   ;;  %v1432_v56 = vand.u32 4294901760, %v8672_v38  ;;  %v1439_v57 = vand.u32 4294901760, %v8677_v39 }
  0x64   : > { %v1433_v22 = vsub.f32 %v8672_v38, %v1432_v56  ;;  %v1440_v27 = vsub.f32 %v8677_v39, %v1439_v57 }
  0x66   : > { %404 = vperm.xlu1 %7998, %v257_v58   ;;  %401 = vperm.xlu0 %7997, %v256_v59   ;;  %v1453_v58 = vand.u32 4294901760, %v8721_v13  ;;  %v279_v59 = vld [vmem:[%s8495_s9 + $0x1f8] sm:$0xff] }
  0x6a   : > { %410 = vperm.xlu1 %7998, %v259_v1   ;;  %407 = vperm.xlu0 %7997, %v258_v3   ;;  %v278_v1 = vld [vmem:[%s8495_s9 + $0x1f0] sm:$0xff]  ;;  %v1419_v3 = vsub.f32 %v8654_v17, %v1418_v52 }
  0x6e   : > { %416 = vperm.xlu1 %7998, %v261_v4   ;;  %413 = vperm.xlu0 %7997, %v260_v5   ;;  %v1426_v4 = vsub.f32 %v8659_v18, %v1425_v53  ;;  %v8750_v5 = vand.u32 127, %v12135_v20 }
  0x72   : > { %422 = vperm.xlu1 %7998, %v263_v24   ;;  %419 = vperm.xlu0 %7997, %v262_v25   ;;  %v1447_v24 = vsub.f32 %v8716_v10, %v1446_v21  ;;  %v1454_v25 = vsub.f32 %v8721_v13, %v1453_v58 }
  0x76   : > { %428 = vperm.xlu1 %7998, %v265_v31   ;;  %425 = vperm.xlu0 %7997, %v264_v32   ;;  %v1420_v31 = vand.u32 4294901760, %v1419_v3  ;;  %v1427_v32 = vand.u32 4294901760, %v1426_v4 }
  0x7a   : > { %434 = vperm.xlu1 %7998, %v267_v2   ;;  %431 = vperm.xlu0 %7997, %v266_v7   ;;  %v1434_v2 = vand.u32 4294901760, %v1433_v22  ;;  %v1441_v7 = vand.u32 4294901760, %v1440_v27  ;;  %v8799_v22 = vpack.c.bf16 %v1453_v58, %v1446_v21 }
  0x7e   : > { %440 = vperm.xlu1 %7998, %v269_v6   ;;  %437 = vperm.xlu0 %7997, %v268_v9   ;;  %v8757_v6 = vsub.f32 %v8538_v29, %v711_v34  ;;  %v1448_v29 = vand.u32 4294901760, %v1447_v24  ;;  %v1455_v34 = vand.u32 4294901760, %v1454_v25 }
  0x82   : > { %446 = vperm.xlu1 %7998, %v271_v43   ;;  %443 = vperm.xlu0 %7997, %v270_v44   ;;  %v8763_v44 = vpack.c.bf16 %v1425_v53, %v1418_v52 }
  0x86   : > { %452 = vperm.xlu1 %7998, %v273_v48   ;;  %449 = vperm.xlu0 %7997, %v272_v49   ;;  %v1461_v48 = vsub.f32 %v8732_v15, %v1460_v23  ;;  %v1468_v49 = vsub.f32 %v8737_v16, %v1467_v28 }
  0x88   : > { %v1462_v27 = vand.u32 4294901760, %v1461_v48  ;;  %v1469_v24 = vand.u32 4294901760, %v1468_v49 }
  0x8a   : > { %458 = vperm.xlu1 %7998, %v275_v8   ;;  %455 = vperm.xlu0 %7997, %v274_v12   ;;  %v8770_v8 = vsub.f32 %v8543_v30, %v714_v35  ;;  %v12138_v12 = vmov 0.0   ;;  %v8784_v35 = vpack.c.bf16 %v1427_v32, %v1420_v31  ;;  %v8818_v32 = vpack.c.bf16 %v1467_v28, %v1460_v23 }
  0x8b   : > { %v8838_v23 = vsub.f32 %v8562_v36, %v717_v41 }
  0x8c   : > { %v1481_v25 = vand.u32 4294901760, %v8770_v8 }
  0x8e   : > { %464 = vperm.xlu1 %7998, %v277_v50   ;;  %461 = vperm.xlu0 %7997, %v276_v51   ;;  %v8786_v51 = vpack.c.bf16 %v1439_v57, %v1432_v56  ;;  %v8807_v57 = vpack.c.bf16 %v1455_v34, %v1448_v29 }
  0x92   : > { %470 = vperm.xlu1 %7998, %v279_v59   ;;  %467 = vperm.xlu0 %7997, %v278_v1   ;;  %v8792_v59 = vpack.c.bf16 %v1441_v7, %v1434_v2  ;;  %v1474_v1 = vand.u32 4294901760, %v8757_v6 }
  0x94   : > { %v1475_v49 = vsub.f32 %v8757_v6, %v1474_v1  ;;  %v8833_v20 = vpack.c.bf16 %v1481_v25, %v1474_v1 }
  0x95   : > { %v8759_v9 = vpop.permute.xlu1 %287  ;;  %v8761_v43 = vpop.permute.xlu0 %281 }
  0x96   : > { %vm474_vm0 = vcmp.eq.s32.totalorder %v8759_v9, %v8750_v5  ;;  %vm472_vm1 = vcmp.eq.s32.totalorder %v8761_v43, %v8750_v5  ;;  %v8313_v43 = vld [vmem:[%s8495_s9 + $0x1c0] sm:$0xff] }
  0x97   : > { %v5886_v50 = vsel %vm474_vm0, 1.0, %v12138_v12  ;;  %v5884_v30 = vsel %vm472_vm1, 1.0, %v12138_v12 }
  0x98   : > { %v8788_v52 = vsub.f32 %v5886_v50, %v5886_v50  ;;  %v8790_v53 = vsub.f32 %v5884_v30, %v5884_v30  ;;  %v8830_v50 = vpack.c.bf16 %v1469_v24, %v1462_v27  ;;  %v1482_v30 = vsub.f32 %v8770_v8, %v1481_v25 }
  0x99   : > { %v8795_v3 = vpop.permute.xlu1 %290  ;;  %v8797_v4 = vpop.permute.xlu0 %284 }
  0x9a   : > { %12419 = vst [vmem:[#allocation4_spill] sm:$0xff] %v8788_v52  ;;  %12420 = vst [vmem:[#allocation5_spill] sm:$0xff] %v8790_v53  ;;  %vm475_vm2 = vcmp.eq.s32.totalorder %v8795_v3, %v8750_v5  ;;  %vm473_vm3 = vcmp.eq.s32.totalorder %v8797_v4, %v8750_v5  ;;  %v763_v56 = vand.u32 4294901760, %v8790_v53  ;;  %v783_v31 = vand.u32 4294901760, %v8788_v52 }
  0x9b   : > { %v5887_v21 = vsel %vm475_vm2, 1.0, %v12138_v12  ;;  %v5885_v58 = vsel %vm473_vm3, 1.0, %v12138_v12 }
  0x9c   : > { %v8820_v2 = vsub.f32 %v5887_v21, %v5887_v21  ;;  %v8822_v7 = vsub.f32 %v5885_v58, %v5885_v58  ;;  %7103 = vmatprep.mubr.f32.mxu0 %v763_v56  ;;  %v764_v48 = vsub.f32 %v8790_v53, %v763_v56  ;;  %v784_v27 = vsub.f32 %v8788_v52, %v783_v31 }
  0x9d   : > { %v8826_v29 = vpop.permute.xlu1 %296  ;;  %v8828_v34 = vpop.permute.xlu0 %293  ;;  %v1476_v58 = vand.u32 4294901760, %v1475_v49 }
  0x9e   : > { %12421 = vst [vmem:[#allocation6_spill] sm:$0xff] %v8820_v2  ;;  %12422 = vst [vmem:[#allocation7_spill] sm:$0xff] %v8822_v7  ;;  %vm477_vm4 = vcmp.eq.s32.totalorder %v8826_v29, %v8750_v5  ;;  %vm476_vm5 = vcmp.eq.s32.totalorder %v8828_v34, %v8750_v5  ;;  %v765_v28 = vand.u32 4294901760, %v764_v48  ;;  %v773_v56 = vand.u32 4294901760, %v8822_v7 }
  0x9f   : > { %v5889_v1 = vsel %vm477_vm4, 1.0, %v12138_v12  ;;  %v5888_v36 = vsel %vm476_vm5, 1.0, %v12138_v12  ;;  %v793_v41 = vand.u32 4294901760, %v8820_v2  ;;  %v1483_v12 = vand.u32 4294901760, %v1482_v30 }
  0xa0   : > { %v8855_v24 = vsub.f32 %v5889_v1, %v5889_v1  ;;  %v8857_v25 = vsub.f32 %v5888_v36, %v5888_v36  ;;  %6719 = vmatprep.mubr.f32.mxu1 %v765_v28  ;;  %7104 = vmatmul.mubr.f32.vlgmr.msra.gmra.mrb[0].mxu0 %v773_v56  ;;  %v774_v21 = vsub.f32 %v8822_v7, %v773_v56 }
  0xa1   : > { %v8860_v48 = vpop.permute.xlu1 %302  ;;  %7106 = vmatprep.mubr.f32.mxu0 %v783_v31  ;;  %v8862_v61 = vpop.permute.xlu0 %299  ;;  %7586 = vmatpush3.bf16.msra.mxu0 %v8639_v0  ;;  %v794_v60 = vsub.f32 %v8820_v2, %v793_v41  ;;  %v8870_v28 = vsub.f32 %v8567_v37, %v720_v42  ;;  %v12426_v0 = vmov 0.0   ;;  %v785_v42 = vand.u32 4294901760, %v784_v27  ;;  %v12669_v4 = vld [vmem:[#allocation4_spill] sm:$0xff] }
  0xa2   : > { %12423 = vst [vmem:[#allocation8_spill] sm:$0xff] %v8855_v24  ;;  %12424 = vst [vmem:[#allocation9_spill] sm:$0xff] %v8857_v25  ;;  %vm479_vm6 = vcmp.eq.s32.totalorder %v8860_v48, %v8750_v5  ;;  %vm478_vm7 = vcmp.eq.s32.totalorder %v8862_v61, %v8750_v5  ;;  %v775_v31 = vand.u32 4294901760, %v774_v21  ;;  %v803_v49 = vand.u32 4294901760, %v8857_v25  ;;  %7588 = vmatprep.subr.bf16.mxu0 %v8763_v44 }
  0xa3   : > { %12425 = vst [vmem:[#allocation10_spill] sm:$0xff] %v8870_v28  ;;  %v5891_v30 = vsel %vm479_vm6, 1.0, %v12426_v0  ;;  %v5890_v37 = vsel %vm478_vm7, 1.0, %v12426_v0  ;;  %v813_v56 = vand.u32 4294901760, %v8855_v24  ;;  %v795_v7 = vand.u32 4294901760, %v794_v60 }
  0xa4   : > { %v8887_v36 = vsub.f32 %v5891_v30, %v5891_v30  ;;  %v8889_v21 = vsub.f32 %v5890_v37, %v5890_v37  ;;  %6720 = vmatmul.mubr.f32.vlgmr.msra.gmra.mrb[0].mxu1 %v775_v31  ;;  %7107 = vmatmul.mubr.f32.gmra.mrb[2].mxu0 %v793_v41  ;;  %v804_v1 = vsub.f32 %v8857_v25, %v803_v49  ;;  %v1495_v30 = vand.u32 4294901760, %v8870_v28 }
  0xa5   : > { %7490 = vmatpush3.bf16.msra.mxu1 %v8637_v63  ;;  %v8893_v2 = vpop.permute.xlu1 %308  ;;  %6722 = vmatprep.mubr.f32.mxu1 %v785_v42  ;;  %v8895_v52 = vpop.permute.xlu0 %305  ;;  %v814_v27 = vsub.f32 %v8855_v24, %v813_v56  ;;  %v8898_v53 = vpack.c.bf16 %v1483_v12, %v1476_v58  ;;  %v12670_v9 = vld [vmem:[#allocation6_spill] sm:$0xff] }
  0xa6   : > { %12427 = vst [vmem:[#allocation11_spill] sm:$0xff] %v8887_v36  ;;  %12428 = vst [vmem:[#allocation12_spill] sm:$0xff] %v8889_v21  ;;  %vm481_vm8 = vcmp.eq.s32.totalorder %v8893_v2, %v8750_v5  ;;  %7109 = vmatprep.mubr.f32.mxu0 %v803_v49  ;;  %vm480_vm9 = vcmp.eq.s32.totalorder %v8895_v52, %v8750_v5  ;;  %v805_v63 = vand.u32 4294901760, %v804_v1  ;;  %v823_v41 = vand.u32 4294901760, %v8889_v21 }
  0xa7   : > { %7492 = vmatprep.subr.bf16.mxu1 %v8784_v35  ;;  %v5893_v60 = vsel %vm481_vm8, 1.0, %v12426_v0  ;;  %v5892_v12 = vsel %vm480_vm9, 1.0, %v12426_v0  ;;  %v833_v58 = vand.u32 4294901760, %v8887_v36  ;;  %7590 = vmatpush3.bf16.msra.mxu0 %v8763_v44  ;;  %v12429_v1 = vand.u32 4294901760, %v8838_v23 }
  0xa8   : > { %v8922_v49 = vsub.f32 %v5893_v60, %v5893_v60  ;;  %v8924_v37 = vsub.f32 %v5892_v12, %v5892_v12  ;;  %6723 = vmatmul.mubr.f32.gmra.mrb[2].mxu1 %v795_v7  ;;  %7110 = vmatmul.mubr.f32.gmra.mrb[4].mxu0 %v813_v56  ;;  %v824_v42 = vsub.f32 %v8889_v21, %v823_v41  ;;  %v815_v44 = vand.u32 4294901760, %v814_v27 }
  0xa9   : > { %v8920_v31 = vsub.f32 %v8838_v23, %v12429_v1  ;;  %v8927_v24 = vpop.permute.xlu1 %314  ;;  %6725 = vmatprep.mubr.f32.mxu1 %v805_v63  ;;  %7112 = vmatprep.mubr.f32.mxu0 %v823_v41  ;;  %v8929_v25 = vpop.permute.xlu0 %311  ;;  %v834_v62 = vsub.f32 %v8887_v36, %v833_v58  ;;  %v8933_v1 = vsub.f32 %v8870_v28, %v1495_v30  ;;  %v12432_v60 = vand.u32 4294901760, %v8618_v54  ;;  %v12671_v3 = vld [vmem:[#allocation9_spill] sm:$0xff]  ;;  %v12672_v34 = vld [vmem:[#allocation8_spill] sm:$0xff] }
  0xaa   : > { %12430 = vst [vmem:[#allocation13_spill] sm:$0xff] %v8922_v49  ;;  %12431 = vst [vmem:[#allocation14_spill] sm:$0xff] %v8924_v37  ;;  %vm12335_vm10 = vcmp.eq.s32.totalorder %v8927_v24, %v8750_v5  ;;  %vm12333_vm11 = vcmp.eq.s32.totalorder %v8929_v25, %v8750_v5  ;;  %v825_v7 = vand.u32 4294901760, %v824_v42  ;;  %v843_v56 = vand.u32 4294901760, %v8924_v37  ;;  %7494 = vmatpush3.bf16.msra.mxu1 %v8784_v35 }
  0xab   : > { %v8938_v12 = vsub.f32 %v8618_v54, %v12432_v60  ;;  %7592 = vmatprep.subr.bf16.mxu0 %v8786_v51  ;;  %v5895_v27 = vsel %vm12335_vm10, 1.0, %v12426_v0  ;;  %v5894_v54 = vsel %vm12333_vm11, 1.0, %v12426_v0  ;;  %v853_v63 = vand.u32 4294901760, %v8922_v49  ;;  %7496 = vmatprep.subr.bf16.mxu1 %v8792_v59 }
  0xac   : > { %7594 = vmatpush3.bf16.msra.mxu0 %v8786_v51  ;;  %v12433_v35 = vand.u32 4294901760, %v8623_v55  ;;  %v8963_v42 = vsub.f32 %v5895_v27, %v5895_v27  ;;  %v8965_v60 = vsub.f32 %v5894_v54, %v5894_v54  ;;  %6726 = vmatmul.mubr.f32.gmra.mrb[4].mxu1 %v815_v44  ;;  %v844_v36 = vsub.f32 %v8924_v37, %v843_v56 }
  0xad   : > { %7113 = vmatmul.mubr.f32.gmra.mrb[6].mxu0 %v833_v58  ;;  %v8968_v21 = vpop.permute.xlu1 %320  ;;  %6728 = vmatprep.mubr.f32.mxu1 %v825_v7  ;;  %v8970_v47 = vpop.permute.xlu0 %317  ;;  %v835_v51 = vand.u32 4294901760, %v834_v62  ;;  %v854_v28 = vsub.f32 %v8922_v49, %v853_v63  ;;  %v12673_v29 = vld [vmem:[#allocation12_spill] sm:$0xff]  ;;  %v12674_v61 = vld [vmem:[#allocation11_spill] sm:$0xff] }
  0xae   : > { %v8961_v41 = vsub.f32 %v8623_v55, %v12433_v35  ;;  %12434 = vst [vmem:[#allocation15_spill] sm:$0xff] %v8963_v42  ;;  %12435 = vst [vmem:[#allocation16_spill] sm:$0xff] %v8965_v60  ;;  %7115 = vmatprep.mubr.f32.mxu0 %v843_v56  ;;  %v12437_v55 = vand.u32 4294901760, %v8838_v23  ;;  %vm12336_vm12 = vcmp.eq.s32.totalorder %v8968_v21, %v8750_v5  ;;  %v845_v58 = vand.u32 4294901760, %v844_v36 }
  0xaf   : > { %12436 = vst [vmem:[#allocation17_spill] sm:$0xff] %v8968_v21  ;;  %vm12334_vm13 = vcmp.eq.s32.totalorder %v8970_v47, %v8750_v5  ;;  %v863_v44 = vand.u32 4294901760, %v8965_v60  ;;  %7498 = vmatpush3.bf16.msra.mxu1 %v8792_v59  ;;  %7596 = vmatprep.subr.bf16.mxu0 %v8799_v22  ;;  %v5897_v62 = vsel %vm12336_vm12, 1.0, %v12426_v0  ;;  %v873_v7 = vand.u32 4294901760, %v8963_v42 }
  0xb0   : > { %v8975_v35 = vpack.c.bf16 %v1495_v30, %v12437_v55  ;;  %v5896_v30 = vsel %vm12334_vm13, 1.0, %v12426_v0  ;;  %7500 = vmatprep.subr.bf16.mxu1 %v8807_v57  ;;  %7598 = vmatpush3.bf16.msra.mxu0 %v8799_v22  ;;  %v12165_v59 = vand.u32 4294901760, %v8961_v41  ;;  %v8997_v36 = vsub.f32 %v5897_v62, %v5897_v62 }
  0xb1   : > { %v8999_v56 = vsub.f32 %v5896_v30, %v5896_v30  ;;  %6729 = vmatmul.mubr.f32.gmra.mrb[6].mxu1 %v835_v51  ;;  %7116 = vmatmul.mubr.f32.gmra.mrb[8].mxu0 %v853_v63  ;;  %v864_v54 = vsub.f32 %v8965_v60, %v863_v44  ;;  %v1490_v55 = vand.u32 4294901760, %v8920_v31  ;;  %v9003_v27 = vpop.permute.xlu1 %326  ;;  %v9005_v49 = vpop.permute.xlu0 %323  ;;  %v855_v37 = vand.u32 4294901760, %v854_v28  ;;  %v12675_v48 = vld [vmem:[#allocation14_spill] sm:$0xff]  ;;  %v12677_v52 = vld [vmem:[#allocation13_spill] sm:$0xff] }
  0xb2   : > { %12438 = vst [vmem:[#allocation18_spill] sm:$0xff] %v8997_v36  ;;  %12440 = vst [vmem:[#allocation20_spill] sm:$0xff] %v9003_v27  ;;  %6731 = vmatprep.mubr.f32.mxu1 %v845_v58  ;;  %7118 = vmatprep.mubr.f32.mxu0 %v863_v44  ;;  %v874_v22 = vsub.f32 %v8963_v42, %v873_v7  ;;  %v1497_v62 = vand.u32 4294901760, %v8933_v1  ;;  %v12442_v30 = vand.u32 4294901760, %v8938_v12  ;;  %v893_v58 = vand.u32 4294901760, %v8997_v36 }
  0xb3   : > { %12439 = vst [vmem:[#allocation19_spill] sm:$0xff] %v8999_v56  ;;  %12441 = vst [vmem:[#allocation21_spill] sm:$0xff] %v9005_v49  ;;  %vm12163_vm14 = vcmp.eq.s32.totalorder %v9003_v27, %v8750_v5  ;;  %vm12164_vm15 = vcmp.eq.s32.totalorder %v9005_v49, %v8750_v5  ;;  %v865_v31 = vand.u32 4294901760, %v864_v54  ;;  %v883_v63 = vand.u32 4294901760, %v8999_v56  ;;  %7502 = vmatpush3.bf16.msra.mxu1 %v8807_v57 }
  0xb4   : > { %v1503_v51 = vsub.f32 %v8938_v12, %v12442_v30  ;;  %7600 = vmatprep.subr.bf16.mxu0 %v8818_v32  ;;  %v5899_v28 = vsel %vm12163_vm14, 1.0, %v12426_v0  ;;  %v5898_v1 = vsel %vm12164_vm15, 1.0, %v12426_v0  ;;  %7504 = vmatprep.subr.bf16.mxu1 %v8830_v50  ;;  %v1510_v57 = vsub.f32 %v8961_v41, %v12165_v59 }
  0xb5   : > { %7602 = vmatpush3.bf16.msra.mxu0 %v8818_v32  ;;  %v9033_v44 = vsub.f32 %v5899_v28, %v5899_v28  ;;  %v9035_v54 = vsub.f32 %v5898_v1, %v5898_v1  ;;  %6732 = vmatmul.mubr.f32.gmra.mrb[8].mxu1 %v855_v37  ;;  %v884_v30 = vsub.f32 %v8999_v56, %v883_v63  ;;  %v9038_v42 = vpop.permute.xlu1 %332  ;;  %v9040_v60 = vpop.permute.xlu0 %329  ;;  %v875_v27 = vand.u32 4294901760, %v874_v22  ;;  %v12679_v2 = vld [vmem:[#allocation16_spill] sm:$0xff] }
  0xb6   : > { %7119 = vmatmul.mubr.f32.gmra.mrb[10].mxu0 %v873_v7  ;;  %6734 = vmatprep.mubr.f32.mxu1 %v865_v31  ;;  %v894_v32 = vsub.f32 %v8997_v36, %v893_v58  ;;  %v7511_v49 = vpack.c.bf16 %v1497_v62, %v1490_v55  ;;  %v1504_v21 = vand.u32 4294901760, %v1503_v51  ;;  %vm12166_vm14 = vcmp.eq.s32.totalorder %v9038_v42, %v8750_v5 }
  0xb7   : > { %12443 = vst [vmem:[#allocation22_spill] sm:$0xff] %v9033_v44  ;;  %12444 = vst [vmem:[#allocation23_spill] sm:$0xff] %v9035_v54  ;;  %7121 = vmatprep.mubr.f32.mxu0 %v883_v63  ;;  %vm12167_vm15 = vcmp.eq.s32.totalorder %v9040_v60, %v8750_v5  ;;  %v885_v37 = vand.u32 4294901760, %v884_v30  ;;  %v903_v7 = vand.u32 4294901760, %v9035_v54  ;;  %7506 = vmatpush3.bf16.msra.mxu1 %v8830_v50  ;;  %v5901_v22 = vsel %vm12166_vm14, 1.0, %v12426_v0 }
  0xb8   : > { %7604 = vmatprep.subr.bf16.mxu0 %v8833_v20  ;;  %v5900_v55 = vsel %vm12167_vm15, 1.0, %v12426_v0  ;;  %v913_v62 = vand.u32 4294901760, %v9033_v44  ;;  %7508 = vmatprep.subr.bf16.mxu1 %v8898_v53  ;;  %v1511_v51 = vand.u32 4294901760, %v1510_v57  ;;  %v9061_v50 = vsub.f32 %v5901_v22, %v5901_v22 }
  0xb9   : > { %7606 = vmatpush3.bf16.msra.mxu0 %v8833_v20  ;;  %v9063_v31 = vsub.f32 %v5900_v55, %v5900_v55  ;;  %6735 = vmatmul.mubr.f32.gmra.mrb[10].mxu1 %v875_v27  ;;  %v904_v63 = vsub.f32 %v9035_v54, %v903_v7  ;;  %v9066_v28 = vpop.permute.xlu1 %338  ;;  %v9068_v1 = vpop.permute.xlu0 %335  ;;  %v895_v30 = vand.u32 4294901760, %v894_v32  ;;  %v12447_v20 = vand.u32 4294901760, %v8938_v12 }
  0xba   : > { %12445 = vst [vmem:[#allocation24_spill] sm:$0xff] %v9061_v50  ;;  %7122 = vmatmul.mubr.f32.gmra.mrb[12].mxu0 %v893_v58  ;;  %6737 = vmatprep.mubr.f32.mxu1 %v885_v37  ;;  %v914_v59 = vsub.f32 %v9033_v44, %v913_v62  ;;  %v12448_v57 = vand.u32 4294901760, %v8961_v41  ;;  %vm12171_vm14 = vcmp.eq.s32.totalorder %v9066_v28, %v8750_v5 }
  0xbb   : > { %12446 = vst [vmem:[#allocation25_spill] sm:$0xff] %v9063_v31  ;;  %7124 = vmatprep.mubr.f32.mxu0 %v903_v7  ;;  %vm12172_vm15 = vcmp.eq.s32.totalorder %v9068_v1, %v8750_v5  ;;  %v905_v27 = vand.u32 4294901760, %v904_v63  ;;  %v923_v58 = vand.u32 4294901760, %v9063_v31  ;;  %7510 = vmatpush3.bf16.msra.mxu1 %v8898_v53  ;;  %v5903_v32 = vsel %vm12171_vm14, 1.0, %v12426_v0 }
  0xbc   : > { %v7611_v22 = vpack.c.bf16 %v12448_v57, %v12447_v20  ;;  %7608 = vmatprep.subr.bf16.mxu0 %v8975_v35  ;;  %v5902_v37 = vsel %vm12172_vm15, 1.0, %v12426_v0  ;;  %v933_v7 = vand.u32 4294901760, %v9061_v50  ;;  %7512 = vmatprep.subr.bf16.mxu1 %v7511_v49  ;;  %v7515_v55 = vpack.c.bf16 %v1511_v51, %v1504_v21 }
  0xbd   : > { %7610 = vmatpush3.bf16.msra.mxu0 %v8975_v35  ;;  %v9092_v63 = vsub.f32 %v5903_v32, %v5903_v32  ;;  %v9094_v53 = vsub.f32 %v5902_v37, %v5902_v37  ;;  %6738 = vmatmul.mubr.f32.gmra.mrb[12].mxu1 %v895_v30  ;;  %v924_v20 = vsub.f32 %v9063_v31, %v923_v58  ;;  %v9097_v57 = vpop.permute.xlu1 %344  ;;  %v9099_v44 = vpop.permute.xlu0 %341  ;;  %v915_v54 = vand.u32 4294901760, %v914_v59 }
  0xbe   : > { %7125 = vmatmul.mubr.f32.gmra.mrb[14].mxu0 %v913_v62  ;;  %6740 = vmatprep.mubr.f32.mxu1 %v905_v27  ;;  %v934_v36 = vsub.f32 %v9061_v50, %v933_v7  ;;  %vm12173_vm14 = vcmp.eq.s32.totalorder %v9097_v57, %v8750_v5  ;;  %vm12174_vm15 = vcmp.eq.s32.totalorder %v9099_v44, %v8750_v5 }
  0xbf   : > { %12449 = vst [vmem:[#allocation26_spill] sm:$0xff] %v9092_v63  ;;  %12450 = vst [vmem:[#allocation27_spill] sm:$0xff] %v9094_v53  ;;  %7127 = vmatprep.mubr.f32.mxu0 %v923_v58  ;;  %v925_v21 = vand.u32 4294901760, %v924_v20  ;;  %v943_v35 = vand.u32 4294901760, %v9094_v53  ;;  %7514 = vmatpush3.bf16.msra.mxu1 %v7511_v49  ;;  %v5905_v62 = vsel %vm12173_vm14, 1.0, %v12426_v0  ;;  %v5904_v59 = vsel %vm12174_vm15, 1.0, %v12426_v0 }
  0xc0   : > { %7612 = vmatprep.subr.bf16.mxu0 %v7611_v22  ;;  %v953_v51 = vand.u32 4294901760, %v9092_v63  ;;  %7516 = vmatprep.subr.bf16.mxu1 %v7515_v55  ;;  %v9118_v30 = vpack.c.bf16 %v8595_v46, %v8590_v45  ;;  %v9120_v49 = vsub.f32 %v5905_v62, %v5905_v62  ;;  %v9122_v27 = vsub.f32 %v5904_v59, %v5904_v59 }
  0xc1   : > { %7614 = vmatpush3.bf16.msra.mxu0 %v7611_v22  ;;  %6741 = vmatmul.mubr.f32.gmra.mrb[14].mxu1 %v915_v54  ;;  %v944_v58 = vsub.f32 %v9094_v53, %v943_v35  ;;  %v9125_v32 = vpop.permute.xlu1 %350  ;;  %v9127_v37 = vpop.permute.xlu0 %347  ;;  %v935_v20 = vand.u32 4294901760, %v934_v36 }
  0xc2   : > { %12451 = vst [vmem:[#allocation28_spill] sm:$0xff] %v9120_v49  ;;  %12452 = vst [vmem:[#allocation29_spill] sm:$0xff] %v9122_v27  ;;  %7128 = vmatmul.mubr.f32.gmra.mrb[16].mxu0 %v933_v7  ;;  %6743 = vmatprep.mubr.f32.mxu1 %v925_v21  ;;  %v954_v22 = vsub.f32 %v9092_v63, %v953_v51  ;;  %vm12176_vm14 = vcmp.eq.s32.totalorder %v9125_v32, %v8750_v5  ;;  %v963_v46 = vand.u32 4294901760, %v9122_v27 }
  0xc3   : > { %7130 = vmatprep.mubr.f32.mxu0 %v943_v35  ;;  %vm12177_vm15 = vcmp.eq.s32.totalorder %v9127_v37, %v8750_v5  ;;  %v945_v45 = vand.u32 4294901760, %v944_v58  ;;  %7518 = vmatpush3.bf16.msra.mxu1 %v7515_v55  ;;  %v5907_v54 = vsel %vm12176_vm14, 1.0, %v12426_v0  ;;  %v973_v7 = vand.u32 4294901760, %v9120_v49 }
  0xc4   : > { %7616 = vmatprep.subr.bf16.mxu0 %v8467_v11  ;;  %v5906_v36 = vsel %vm12177_vm15, 1.0, %v12426_v0  ;;  %7520 = vmatprep.subr.bf16.mxu1 %v9118_v30  ;;  %v9146_v21 = vsub.f32 %v5907_v54, %v5907_v54  ;;  %v964_v55 = vsub.f32 %v9122_v27, %v963_v46  ;;  %v955_v58 = vand.u32 4294901760, %v954_v22 }
  0xc5   : > { %v9148_v35 = vsub.f32 %v5906_v36, %v5906_v36  ;;  %6744 = vmatmul.mubr.f32.gmra.mrb[16].mxu1 %v935_v20  ;;  %v9151_v62 = vpop.permute.xlu1 %356  ;;  %v9153_v59 = vpop.permute.xlu0 %353  ;;  %v974_v63 = vsub.f32 %v9120_v49, %v973_v7 }
  0xc6   : > { %12453 = vst [vmem:[#allocation30_spill] sm:$0xff] %v9146_v21  ;;  %7131 = vmatmul.mubr.f32.gmra.mrb[18].mxu0 %v953_v51  ;;  %6746 = vmatprep.mubr.f32.mxu1 %v945_v45  ;;  %vm12182_vm14 = vcmp.eq.s32.totalorder %v9151_v62, %v8750_v5  ;;  %vm12183_vm15 = vcmp.eq.s32.totalorder %v9153_v59, %v8750_v5  ;;  %v965_v54 = vand.u32 4294901760, %v964_v55  ;;  %v993_v45 = vand.u32 4294901760, %v9146_v21 }
  0xc7   : > { %12454 = vst [vmem:[#allocation31_spill] sm:$0xff] %v9148_v35  ;;  %7133 = vmatprep.mubr.f32.mxu0 %v963_v46  ;;  %v983_v51 = vand.u32 4294901760, %v9148_v35  ;;  %v5909_v20 = vsel %vm12182_vm14, 1.0, %v12426_v0  ;;  %v5908_v22 = vsel %vm12183_vm15, 1.0, %v12426_v0  ;;  %v975_v53 = vand.u32 4294901760, %v974_v63 }
  0xc8   : > { %v9170_v46 = vsub.f32 %v5909_v20, %v5909_v20  ;;  %v9172_v36 = vsub.f32 %v5908_v22, %v5908_v22  ;;  %v994_v50 = vsub.f32 %v9146_v21, %v993_v45 }
  0xc9   : > { %6747 = vmatmul.mubr.f32.gmra.mrb[18].mxu1 %v955_v58  ;;  %v984_v55 = vsub.f32 %v9148_v35, %v983_v51  ;;  %v9175_v49 = vpop.permute.xlu1 %362  ;;  %v9177_v27 = vpop.permute.xlu0 %359 }
  0xca   : > { %12455 = vst [vmem:[#allocation32_spill] sm:$0xff] %v9170_v46  ;;  %12456 = vst [vmem:[#allocation33_spill] sm:$0xff] %v9172_v36  ;;  %7134 = vmatmul.mubr.f32.gmra.mrb[20].mxu0 %v973_v7  ;;  %6749 = vmatprep.mubr.f32.mxu1 %v965_v54  ;;  %vm12188_vm14 = vcmp.eq.s32.totalorder %v9175_v49, %v8750_v5  ;;  %vm12189_vm15 = vcmp.eq.s32.totalorder %v9177_v27, %v8750_v5  ;;  %v1003_v7 = vand.u32 4294901760, %v9172_v36 }
  0xcb   : > { %12457 = vst [vmem:[#allocation34_spill] sm:$0xff] %v9175_v49  ;;  %7136 = vmatprep.mubr.f32.mxu0 %v983_v51  ;;  %v985_v20 = vand.u32 4294901760, %v984_v55  ;;  %v5911_v58 = vsel %vm12188_vm14, 1.0, %v12426_v0  ;;  %v5910_v63 = vsel %vm12189_vm15, 1.0, %v12426_v0  ;;  %v1013_v54 = vand.u32 4294901760, %v9170_v46 }
  0xcc   : > { %v9194_v51 = vsub.f32 %v5911_v58, %v5911_v58  ;;  %v9196_v22 = vsub.f32 %v5910_v63, %v5910_v63  ;;  %v1004_v55 = vsub.f32 %v9172_v36, %v1003_v7  ;;  %v995_v31 = vand.u32 4294901760, %v994_v50 }
  0xcd   : > { %6750 = vmatmul.mubr.f32.gmra.mrb[20].mxu1 %v975_v53  ;;  %v9199_v21 = vpop.permute.xlu1 %368  ;;  %v9201_v35 = vpop.permute.xlu0 %365  ;;  %v1014_v56 = vsub.f32 %v9170_v46, %v1013_v54 }
  0xce   : > { %12458 = vst [vmem:[#allocation35_spill] sm:$0xff] %v9194_v51  ;;  %12459 = vst [vmem:[#allocation36_spill] sm:$0xff] %v9196_v22  ;;  %7137 = vmatmul.mubr.f32.gmra.mrb[22].mxu0 %v993_v45  ;;  %6752 = vmatprep.mubr.f32.mxu1 %v985_v20  ;;  %vm12196_vm14 = vcmp.eq.s32.totalorder %v9199_v21, %v8750_v5  ;;  %vm12197_vm15 = vcmp.eq.s32.totalorder %v9201_v35, %v8750_v5  ;;  %v1005_v58 = vand.u32 4294901760, %v1004_v55 }
  0xcf   : > { %12460 = vst [vmem:[#allocation37_spill] sm:$0xff] %v9199_v21  ;;  %7139 = vmatprep.mubr.f32.mxu0 %v1003_v7  ;;  %12461 = vst [vmem:[#allocation38_spill] sm:$0xff] %v9201_v35  ;;  %v1023_v53 = vand.u32 4294901760, %v9196_v22  ;;  %v5913_v45 = vsel %vm12196_vm14, 1.0, %v12426_v0  ;;  %v5912_v50 = vsel %vm12197_vm15, 1.0, %v12426_v0  ;;  %v1033_v20 = vand.u32 4294901760, %v9194_v51 }
  0xd0   : > { %v9218_v7 = vsub.f32 %v5913_v45, %v5913_v45  ;;  %v9220_v63 = vsub.f32 %v5912_v50, %v5912_v50  ;;  %v1015_v21 = vand.u32 4294901760, %v1014_v56 }
  0xd1   : > { %6753 = vmatmul.mubr.f32.gmra.mrb[22].mxu1 %v995_v31  ;;  %v1024_v55 = vsub.f32 %v9196_v22, %v1023_v53  ;;  %v9223_v46 = vpop.permute.xlu1 %374  ;;  %v9225_v36 = vpop.permute.xlu0 %371  ;;  %v1034_v35 = vsub.f32 %v9194_v51, %v1033_v20 }
  0xd2   : > { %12462 = vst [vmem:[#allocation39_spill] sm:$0xff] %v9218_v7  ;;  %12463 = vst [vmem:[#allocation40_spill] sm:$0xff] %v9220_v63  ;;  %7140 = vmatmul.mubr.f32.gmra.mrb[24].mxu0 %v1013_v54  ;;  %6755 = vmatprep.mubr.f32.mxu1 %v1005_v58  ;;  %vm12204_vm14 = vcmp.eq.s32.totalorder %v9223_v46, %v8750_v5  ;;  %vm12205_vm15 = vcmp.eq.s32.totalorder %v9225_v36, %v8750_v5  ;;  %v1043_v31 = vand.u32 4294901760, %v9220_v63 }
  0xd3   : > { %12464 = vst [vmem:[#allocation41_spill] sm:$0xff] %v9223_v46  ;;  %7142 = vmatprep.mubr.f32.mxu0 %v1023_v53  ;;  %12465 = vst [vmem:[#allocation42_spill] sm:$0xff] %v9225_v36  ;;  %v1025_v45 = vand.u32 4294901760, %v1024_v55  ;;  %v5915_v54 = vsel %vm12204_vm14, 1.0, %v12426_v0  ;;  %v5914_v56 = vsel %vm12205_vm15, 1.0, %v12426_v0  ;;  %v1053_v58 = vand.u32 4294901760, %v9218_v7 }
  0xd4   : > { %v9242_v53 = vsub.f32 %v5915_v54, %v5915_v54  ;;  %v9244_v50 = vsub.f32 %v5914_v56, %v5914_v56  ;;  %v1044_v55 = vsub.f32 %v9220_v63, %v1043_v31  ;;  %v1035_v46 = vand.u32 4294901760, %v1034_v35 }
  0xd5   : > { %6756 = vmatmul.mubr.f32.gmra.mrb[24].mxu1 %v1015_v21  ;;  %v9247_v51 = vpop.permute.xlu1 %380  ;;  %v9249_v22 = vpop.permute.xlu0 %377  ;;  %v1054_v36 = vsub.f32 %v9218_v7, %v1053_v58 }
  0xd6   : > { %12466 = vst [vmem:[#allocation43_spill] sm:$0xff] %v9242_v53  ;;  %12467 = vst [vmem:[#allocation44_spill] sm:$0xff] %v9244_v50  ;;  %7143 = vmatmul.mubr.f32.gmra.mrb[26].mxu0 %v1033_v20  ;;  %6758 = vmatprep.mubr.f32.mxu1 %v1025_v45  ;;  %vm12212_vm14 = vcmp.eq.s32.totalorder %v9247_v51, %v8750_v5  ;;  %vm12213_vm15 = vcmp.eq.s32.totalorder %v9249_v22, %v8750_v5  ;;  %v1045_v54 = vand.u32 4294901760, %v1044_v55 }
  0xd7   : > { %12468 = vst [vmem:[#allocation45_spill] sm:$0xff] %v9247_v51  ;;  %7145 = vmatprep.mubr.f32.mxu0 %v1043_v31  ;;  %12469 = vst [vmem:[#allocation46_spill] sm:$0xff] %v9249_v22  ;;  %v1063_v21 = vand.u32 4294901760, %v9244_v50  ;;  %v5917_v20 = vsel %vm12212_vm14, 1.0, %v12426_v0  ;;  %v5916_v35 = vsel %vm12213_vm15, 1.0, %v12426_v0  ;;  %v1073_v45 = vand.u32 4294901760, %v9242_v53 }
  0xd8   : > { %v9266_v31 = vsub.f32 %v5917_v20, %v5917_v20  ;;  %v9268_v56 = vsub.f32 %v5916_v35, %v5916_v35  ;;  %v1055_v51 = vand.u32 4294901760, %v1054_v36 }
  0xd9   : > { %6759 = vmatmul.mubr.f32.gmra.mrb[26].mxu1 %v1035_v46  ;;  %v1064_v55 = vsub.f32 %v9244_v50, %v1063_v21  ;;  %v9271_v7 = vpop.permute.xlu1 %386  ;;  %v9273_v63 = vpop.permute.xlu0 %383  ;;  %v1074_v22 = vsub.f32 %v9242_v53, %v1073_v45 }
  0xda   : > { %12470 = vst [vmem:[#allocation47_spill] sm:$0xff] %v9266_v31  ;;  %12471 = vst [vmem:[#allocation48_spill] sm:$0xff] %v9268_v56  ;;  %7146 = vmatmul.mubr.f32.gmra.mrb[28].mxu0 %v1053_v58  ;;  %6761 = vmatprep.mubr.f32.mxu1 %v1045_v54  ;;  %vm12220_vm14 = vcmp.eq.s32.totalorder %v9271_v7, %v8750_v5  ;;  %vm12221_vm15 = vcmp.eq.s32.totalorder %v9273_v63, %v8750_v5  ;;  %v1083_v46 = vand.u32 4294901760, %v9268_v56 }
  0xdb   : > { %12472 = vst [vmem:[#allocation49_spill] sm:$0xff] %v9271_v7  ;;  %7148 = vmatprep.mubr.f32.mxu0 %v1063_v21  ;;  %12473 = vst [vmem:[#allocation50_spill] sm:$0xff] %v9273_v63  ;;  %v1065_v20 = vand.u32 4294901760, %v1064_v55  ;;  %v5919_v58 = vsel %vm12220_vm14, 1.0, %v12426_v0  ;;  %v5918_v36 = vsel %vm12221_vm15, 1.0, %v12426_v0  ;;  %v1093_v54 = vand.u32 4294901760, %v9266_v31 }
  0xdc   : > { %v9290_v21 = vsub.f32 %v5919_v58, %v5919_v58  ;;  %v9292_v35 = vsub.f32 %v5918_v36, %v5918_v36  ;;  %v1084_v55 = vsub.f32 %v9268_v56, %v1083_v46  ;;  %v1075_v7 = vand.u32 4294901760, %v1074_v22 }
  0xdd   : > { %6762 = vmatmul.mubr.f32.gmra.mrb[28].mxu1 %v1055_v51  ;;  %v9295_v53 = vpop.permute.xlu1 %392  ;;  %v9297_v50 = vpop.permute.xlu0 %389  ;;  %v1094_v63 = vsub.f32 %v9266_v31, %v1093_v54 }
  0xde   : > { %12474 = vst [vmem:[#allocation51_spill] sm:$0xff] %v9290_v21  ;;  %12475 = vst [vmem:[#allocation52_spill] sm:$0xff] %v9292_v35  ;;  %7149 = vmatmul.mubr.f32.gmra.mrb[30].mxu0 %v1073_v45  ;;  %6764 = vmatprep.mubr.f32.mxu1 %v1065_v20  ;;  %vm12228_vm14 = vcmp.eq.s32.totalorder %v9295_v53, %v8750_v5  ;;  %vm12229_vm15 = vcmp.eq.s32.totalorder %v9297_v50, %v8750_v5  ;;  %v1085_v58 = vand.u32 4294901760, %v1084_v55 }
  0xdf   : > { %12476 = vst [vmem:[#allocation53_spill] sm:$0xff] %v9295_v53  ;;  %7151 = vmatprep.mubr.f32.mxu0 %v1083_v46  ;;  %12477 = vst [vmem:[#allocation54_spill] sm:$0xff] %v9297_v50  ;;  %v1103_v51 = vand.u32 4294901760, %v9292_v35  ;;  %v5921_v45 = vsel %vm12228_vm14, 1.0, %v12426_v0  ;;  %v5920_v22 = vsel %vm12229_vm15, 1.0, %v12426_v0  ;;  %v1113_v20 = vand.u32 4294901760, %v9290_v21 }
  0xe0   : > { %v9314_v46 = vsub.f32 %v5921_v45, %v5921_v45  ;;  %v9316_v36 = vsub.f32 %v5920_v22, %v5920_v22  ;;  %v1095_v53 = vand.u32 4294901760, %v1094_v63 }
  0xe1   : > { %6765 = vmatmul.mubr.f32.gmra.mrb[30].mxu1 %v1075_v7  ;;  %v1104_v55 = vsub.f32 %v9292_v35, %v1103_v51  ;;  %v9319_v31 = vpop.permute.xlu1 %398  ;;  %v9321_v56 = vpop.permute.xlu0 %395  ;;  %v1114_v50 = vsub.f32 %v9290_v21, %v1113_v20 }
  0xe2   : > { %12478 = vst [vmem:[#allocation55_spill] sm:$0xff] %v9314_v46  ;;  %12479 = vst [vmem:[#allocation56_spill] sm:$0xff] %v9316_v36  ;;  %7152 = vmatmul.mubr.f32.gmra.mrb[32].mxu0 %v1093_v54  ;;  %6767 = vmatprep.mubr.f32.mxu1 %v1085_v58  ;;  %vm12236_vm14 = vcmp.eq.s32.totalorder %v9319_v31, %v8750_v5  ;;  %vm12237_vm15 = vcmp.eq.s32.totalorder %v9321_v56, %v8750_v5  ;;  %v1123_v7 = vand.u32 4294901760, %v9316_v36 }
  0xe3   : > { %12480 = vst [vmem:[#allocation57_spill] sm:$0xff] %v9319_v31  ;;  %7154 = vmatprep.mubr.f32.mxu0 %v1103_v51  ;;  %12481 = vst [vmem:[#allocation58_spill] sm:$0xff] %v9321_v56  ;;  %v1105_v45 = vand.u32 4294901760, %v1104_v55  ;;  %v5923_v54 = vsel %vm12236_vm14, 1.0, %v12426_v0  ;;  %v5922_v63 = vsel %vm12237_vm15, 1.0, %v12426_v0  ;;  %v1133_v58 = vand.u32 4294901760, %v9314_v46 }
  0xe4   : > { %v9338_v51 = vsub.f32 %v5923_v54, %v5923_v54  ;;  %v9340_v22 = vsub.f32 %v5922_v63, %v5922_v63  ;;  %v1124_v55 = vsub.f32 %v9316_v36, %v1123_v7  ;;  %v1115_v31 = vand.u32 4294901760, %v1114_v50 }
  0xe5   : > { %6768 = vmatmul.mubr.f32.gmra.mrb[32].mxu1 %v1095_v53  ;;  %v9343_v21 = vpop.permute.xlu1 %404  ;;  %v9345_v35 = vpop.permute.xlu0 %401  ;;  %v1134_v56 = vsub.f32 %v9314_v46, %v1133_v58 }
  0xe6   : > { %12482 = vst [vmem:[#allocation59_spill] sm:$0xff] %v9338_v51  ;;  %12483 = vst [vmem:[#allocation60_spill] sm:$0xff] %v9340_v22  ;;  %7155 = vmatmul.mubr.f32.gmra.mrb[34].mxu0 %v1113_v20  ;;  %6770 = vmatprep.mubr.f32.mxu1 %v1105_v45  ;;  %vm12244_vm14 = vcmp.eq.s32.totalorder %v9343_v21, %v8750_v5  ;;  %vm12245_vm15 = vcmp.eq.s32.totalorder %v9345_v35, %v8750_v5  ;;  %v1125_v54 = vand.u32 4294901760, %v1124_v55 }
  0xe7   : > { %12484 = vst [vmem:[#allocation61_spill] sm:$0xff] %v9343_v21  ;;  %7157 = vmatprep.mubr.f32.mxu0 %v1123_v7  ;;  %12485 = vst [vmem:[#allocation62_spill] sm:$0xff] %v9345_v35  ;;  %v1143_v53 = vand.u32 4294901760, %v9340_v22  ;;  %v5925_v20 = vsel %vm12244_vm14, 1.0, %v12426_v0  ;;  %v5924_v50 = vsel %vm12245_vm15, 1.0, %v12426_v0  ;;  %v1153_v45 = vand.u32 4294901760, %v9338_v51 }
  0xe8   : > { %v9362_v7 = vsub.f32 %v5925_v20, %v5925_v20  ;;  %v9364_v63 = vsub.f32 %v5924_v50, %v5924_v50  ;;  %v1135_v21 = vand.u32 4294901760, %v1134_v56 }
  0xe9   : > { %6771 = vmatmul.mubr.f32.gmra.mrb[34].mxu1 %v1115_v31  ;;  %v1144_v55 = vsub.f32 %v9340_v22, %v1143_v53  ;;  %v9367_v46 = vpop.permute.xlu1 %410  ;;  %v9369_v36 = vpop.permute.xlu0 %407  ;;  %v1154_v35 = vsub.f32 %v9338_v51, %v1153_v45 }
  0xea   : > { %12486 = vst [vmem:[#allocation63_spill] sm:$0xff] %v9362_v7  ;;  %12487 = vst [vmem:[#allocation64_spill] sm:$0xff] %v9364_v63  ;;  %7158 = vmatmul.mubr.f32.gmra.mrb[36].mxu0 %v1133_v58  ;;  %6773 = vmatprep.mubr.f32.mxu1 %v1125_v54  ;;  %vm12252_vm14 = vcmp.eq.s32.totalorder %v9367_v46, %v8750_v5  ;;  %vm12253_vm15 = vcmp.eq.s32.totalorder %v9369_v36, %v8750_v5  ;;  %v1163_v31 = vand.u32 4294901760, %v9364_v63 }
  0xeb   : > { %12488 = vst [vmem:[#allocation65_spill] sm:$0xff] %v9367_v46  ;;  %7160 = vmatprep.mubr.f32.mxu0 %v1143_v53  ;;  %12489 = vst [vmem:[#allocation66_spill] sm:$0xff] %v9369_v36  ;;  %v1145_v20 = vand.u32 4294901760, %v1144_v55  ;;  %v5927_v58 = vsel %vm12252_vm14, 1.0, %v12426_v0  ;;  %v5926_v56 = vsel %vm12253_vm15, 1.0, %v12426_v0  ;;  %v1173_v54 = vand.u32 4294901760, %v9362_v7 }
  0xec   : > { %v9386_v53 = vsub.f32 %v5927_v58, %v5927_v58  ;;  %v9388_v50 = vsub.f32 %v5926_v56, %v5926_v56  ;;  %v1164_v55 = vsub.f32 %v9364_v63, %v1163_v31  ;;  %v1155_v46 = vand.u32 4294901760, %v1154_v35 }
  0xed   : > { %6774 = vmatmul.mubr.f32.gmra.mrb[36].mxu1 %v1135_v21  ;;  %v9391_v51 = vpop.permute.xlu1 %416  ;;  %v9393_v22 = vpop.permute.xlu0 %413  ;;  %v1174_v36 = vsub.f32 %v9362_v7, %v1173_v54 }
  0xee   : > { %12490 = vst [vmem:[#allocation67_spill] sm:$0xff] %v9386_v53  ;;  %12491 = vst [vmem:[#allocation68_spill] sm:$0xff] %v9388_v50  ;;  %7161 = vmatmul.mubr.f32.gmra.mrb[38].mxu0 %v1153_v45  ;;  %6776 = vmatprep.mubr.f32.mxu1 %v1145_v20  ;;  %vm12260_vm14 = vcmp.eq.s32.totalorder %v9391_v51, %v8750_v5  ;;  %vm12261_vm15 = vcmp.eq.s32.totalorder %v9393_v22, %v8750_v5  ;;  %v1165_v58 = vand.u32 4294901760, %v1164_v55 }
  0xef   : > { %12492 = vst [vmem:[#allocation69_spill] sm:$0xff] %v9391_v51  ;;  %7163 = vmatprep.mubr.f32.mxu0 %v1163_v31  ;;  %12493 = vst [vmem:[#allocation70_spill] sm:$0xff] %v9393_v22  ;;  %v1183_v21 = vand.u32 4294901760, %v9388_v50  ;;  %v5929_v45 = vsel %vm12260_vm14, 1.0, %v12426_v0  ;;  %v5928_v35 = vsel %vm12261_vm15, 1.0, %v12426_v0  ;;  %v1193_v20 = vand.u32 4294901760, %v9386_v53 }
  0xf0   : > { %v9410_v31 = vsub.f32 %v5929_v45, %v5929_v45  ;;  %v9412_v56 = vsub.f32 %v5928_v35, %v5928_v35  ;;  %v1175_v51 = vand.u32 4294901760, %v1174_v36 }
  0xf1   : > { %6777 = vmatmul.mubr.f32.gmra.mrb[38].mxu1 %v1155_v46  ;;  %v1184_v55 = vsub.f32 %v9388_v50, %v1183_v21  ;;  %v9415_v7 = vpop.permute.xlu1 %422  ;;  %v9417_v63 = vpop.permute.xlu0 %419  ;;  %v1194_v22 = vsub.f32 %v9386_v53, %v1193_v20 }
  0xf2   : > { %12494 = vst [vmem:[#allocation71_spill] sm:$0xff] %v9410_v31  ;;  %12495 = vst [vmem:[#allocation72_spill] sm:$0xff] %v9412_v56  ;;  %7164 = vmatmul.mubr.f32.gmra.mrb[40].mxu0 %v1173_v54  ;;  %6779 = vmatprep.mubr.f32.mxu1 %v1165_v58  ;;  %vm12268_vm14 = vcmp.eq.s32.totalorder %v9415_v7, %v8750_v5  ;;  %vm12269_vm15 = vcmp.eq.s32.totalorder %v9417_v63, %v8750_v5  ;;  %v1203_v46 = vand.u32 4294901760, %v9412_v56 }
  0xf3   : > { %12496 = vst [vmem:[#allocation73_spill] sm:$0xff] %v9415_v7  ;;  %7166 = vmatprep.mubr.f32.mxu0 %v1183_v21  ;;  %12497 = vst [vmem:[#allocation74_spill] sm:$0xff] %v9417_v63  ;;  %v1185_v45 = vand.u32 4294901760, %v1184_v55  ;;  %v5931_v54 = vsel %vm12268_vm14, 1.0, %v12426_v0  ;;  %v5930_v36 = vsel %vm12269_vm15, 1.0, %v12426_v0  ;;  %v1213_v58 = vand.u32 4294901760, %v9410_v31 }
  0xf4   : > { %v9434_v21 = vsub.f32 %v5931_v54, %v5931_v54  ;;  %v9436_v35 = vsub.f32 %v5930_v36, %v5930_v36  ;;  %v1204_v55 = vsub.f32 %v9412_v56, %v1203_v46  ;;  %v1195_v7 = vand.u32 4294901760, %v1194_v22 }
  0xf5   : > { %6780 = vmatmul.mubr.f32.gmra.mrb[40].mxu1 %v1175_v51  ;;  %v9439_v53 = vpop.permute.xlu1 %428  ;;  %v9441_v50 = vpop.permute.xlu0 %425  ;;  %v1214_v63 = vsub.f32 %v9410_v31, %v1213_v58 }
  0xf6   : > { %12498 = vst [vmem:[#allocation75_spill] sm:$0xff] %v9434_v21  ;;  %12499 = vst [vmem:[#allocation76_spill] sm:$0xff] %v9436_v35  ;;  %7167 = vmatmul.mubr.f32.gmra.mrb[42].mxu0 %v1193_v20  ;;  %6782 = vmatprep.mubr.f32.mxu1 %v1185_v45  ;;  %vm12276_vm14 = vcmp.eq.s32.totalorder %v9439_v53, %v8750_v5  ;;  %vm12277_vm15 = vcmp.eq.s32.totalorder %v9441_v50, %v8750_v5  ;;  %v1205_v54 = vand.u32 4294901760, %v1204_v55 }
  0xf7   : > { %12500 = vst [vmem:[#allocation77_spill] sm:$0xff] %v9439_v53  ;;  %7169 = vmatprep.mubr.f32.mxu0 %v1203_v46  ;;  %12501 = vst [vmem:[#allocation78_spill] sm:$0xff] %v9441_v50  ;;  %v1223_v51 = vand.u32 4294901760, %v9436_v35  ;;  %v5933_v20 = vsel %vm12276_vm14, 1.0, %v12426_v0  ;;  %v5932_v22 = vsel %vm12277_vm15, 1.0, %v12426_v0  ;;  %v1233_v45 = vand.u32 4294901760, %v9434_v21 }
  0xf8   : > { %v9458_v46 = vsub.f32 %v5933_v20, %v5933_v20  ;;  %v9460_v36 = vsub.f32 %v5932_v22, %v5932_v22  ;;  %v1215_v53 = vand.u32 4294901760, %v1214_v63 }
  0xf9   : > { %6783 = vmatmul.mubr.f32.gmra.mrb[42].mxu1 %v1195_v7  ;;  %v1224_v55 = vsub.f32 %v9436_v35, %v1223_v51  ;;  %v9463_v31 = vpop.permute.xlu1 %434  ;;  %v9465_v56 = vpop.permute.xlu0 %431  ;;  %v1234_v50 = vsub.f32 %v9434_v21, %v1233_v45 }
  0xfa   : > { %12502 = vst [vmem:[#allocation79_spill] sm:$0xff] %v9458_v46  ;;  %12503 = vst [vmem:[#allocation80_spill] sm:$0xff] %v9460_v36  ;;  %7170 = vmatmul.mubr.f32.gmra.mrb[44].mxu0 %v1213_v58  ;;  %6785 = vmatprep.mubr.f32.mxu1 %v1205_v54  ;;  %vm12284_vm14 = vcmp.eq.s32.totalorder %v9463_v31, %v8750_v5  ;;  %vm12285_vm15 = vcmp.eq.s32.totalorder %v9465_v56, %v8750_v5  ;;  %v1243_v7 = vand.u32 4294901760, %v9460_v36 }
  0xfb   : > { %12504 = vst [vmem:[#allocation81_spill] sm:$0xff] %v9463_v31  ;;  %7172 = vmatprep.mubr.f32.mxu0 %v1223_v51  ;;  %12505 = vst [vmem:[#allocation82_spill] sm:$0xff] %v9465_v56  ;;  %v1225_v20 = vand.u32 4294901760, %v1224_v55  ;;  %v5935_v58 = vsel %vm12284_vm14, 1.0, %v12426_v0  ;;  %v5934_v63 = vsel %vm12285_vm15, 1.0, %v12426_v0  ;;  %v1253_v54 = vand.u32 4294901760, %v9458_v46 }
  0xfc   : > { %v9482_v51 = vsub.f32 %v5935_v58, %v5935_v58  ;;  %v9484_v22 = vsub.f32 %v5934_v63, %v5934_v63  ;;  %v1244_v55 = vsub.f32 %v9460_v36, %v1243_v7  ;;  %v1235_v31 = vand.u32 4294901760, %v1234_v50 }
  0xfd   : > { %6786 = vmatmul.mubr.f32.gmra.mrb[44].mxu1 %v1215_v53  ;;  %v9487_v21 = vpop.permute.xlu1 %440  ;;  %v9489_v35 = vpop.permute.xlu0 %437  ;;  %v1254_v56 = vsub.f32 %v9458_v46, %v1253_v54 }
  0xfe   : > { %12506 = vst [vmem:[#allocation83_spill] sm:$0xff] %v9482_v51  ;;  %12507 = vst [vmem:[#allocation84_spill] sm:$0xff] %v9484_v22  ;;  %7173 = vmatmul.mubr.f32.gmra.mrb[46].mxu0 %v1233_v45  ;;  %6788 = vmatprep.mubr.f32.mxu1 %v1225_v20  ;;  %vm12292_vm14 = vcmp.eq.s32.totalorder %v9487_v21, %v8750_v5  ;;  %vm12293_vm15 = vcmp.eq.s32.totalorder %v9489_v35, %v8750_v5  ;;  %v1245_v58 = vand.u32 4294901760, %v1244_v55 }
  0xff   : > { %12508 = vst [vmem:[#allocation85_spill] sm:$0xff] %v9487_v21  ;;  %7175 = vmatprep.mubr.f32.mxu0 %v1243_v7  ;;  %12509 = vst [vmem:[#allocation86_spill] sm:$0xff] %v9489_v35  ;;  %v1263_v53 = vand.u32 4294901760, %v9484_v22  ;;  %v5937_v45 = vsel %vm12292_vm14, 1.0, %v12426_v0  ;;  %v5936_v50 = vsel %vm12293_vm15, 1.0, %v12426_v0  ;;  %v1273_v20 = vand.u32 4294901760, %v9482_v51 }
 0x100   : > { %v9506_v7 = vsub.f32 %v5937_v45, %v5937_v45  ;;  %v9508_v63 = vsub.f32 %v5936_v50, %v5936_v50  ;;  %v1255_v21 = vand.u32 4294901760, %v1254_v56 }
 0x101   : > { %6789 = vmatmul.mubr.f32.gmra.mrb[46].mxu1 %v1235_v31  ;;  %v1264_v55 = vsub.f32 %v9484_v22, %v1263_v53  ;;  %v9511_v46 = vpop.permute.xlu1 %446  ;;  %v9513_v36 = vpop.permute.xlu0 %443  ;;  %v1274_v35 = vsub.f32 %v9482_v51, %v1273_v20 }
 0x102   : > { %12510 = vst [vmem:[#allocation87_spill] sm:$0xff] %v9506_v7  ;;  %12511 = vst [vmem:[#allocation88_spill] sm:$0xff] %v9508_v63  ;;  %7176 = vmatmul.mubr.f32.gmra.mrb[48].mxu0 %v1253_v54  ;;  %6791 = vmatprep.mubr.f32.mxu1 %v1245_v58  ;;  %vm12300_vm14 = vcmp.eq.s32.totalorder %v9511_v46, %v8750_v5  ;;  %vm12301_vm15 = vcmp.eq.s32.totalorder %v9513_v36, %v8750_v5  ;;  %v1283_v31 = vand.u32 4294901760, %v9508_v63 }
 0x103   : > { %12512 = vst [vmem:[#allocation89_spill] sm:$0xff] %v9511_v46  ;;  %7178 = vmatprep.mubr.f32.mxu0 %v1263_v53  ;;  %12513 = vst [vmem:[#allocation90_spill] sm:$0xff] %v9513_v36  ;;  %v1265_v45 = vand.u32 4294901760, %v1264_v55  ;;  %v5939_v54 = vsel %vm12300_vm14, 1.0, %v12426_v0  ;;  %v5938_v56 = vsel %vm12301_vm15, 1.0, %v12426_v0  ;;  %v1293_v58 = vand.u32 4294901760, %v9506_v7 }
 0x104   : > { %v9530_v53 = vsub.f32 %v5939_v54, %v5939_v54  ;;  %v9532_v50 = vsub.f32 %v5938_v56, %v5938_v56  ;;  %v1284_v55 = vsub.f32 %v9508_v63, %v1283_v31  ;;  %v1275_v46 = vand.u32 4294901760, %v1274_v35 }
 0x105   : > { %6792 = vmatmul.mubr.f32.gmra.mrb[48].mxu1 %v1255_v21  ;;  %v9535_v51 = vpop.permute.xlu1 %452  ;;  %v9537_v22 = vpop.permute.xlu0 %449  ;;  %v1294_v36 = vsub.f32 %v9506_v7, %v1293_v58 }
 0x106   : > { %12514 = vst [vmem:[#allocation91_spill] sm:$0xff] %v9530_v53  ;;  %12515 = vst [vmem:[#allocation92_spill] sm:$0xff] %v9532_v50  ;;  %7179 = vmatmul.mubr.f32.gmra.mrb[50].mxu0 %v1273_v20  ;;  %6794 = vmatprep.mubr.f32.mxu1 %v1265_v45  ;;  %vm12308_vm14 = vcmp.eq.s32.totalorder %v9535_v51, %v8750_v5  ;;  %vm12309_vm15 = vcmp.eq.s32.totalorder %v9537_v22, %v8750_v5  ;;  %v1285_v54 = vand.u32 4294901760, %v1284_v55 }
 0x107   : > { %12516 = vst [vmem:[#allocation93_spill] sm:$0xff] %v9535_v51  ;;  %7181 = vmatprep.mubr.f32.mxu0 %v1283_v31  ;;  %12517 = vst [vmem:[#allocation94_spill] sm:$0xff] %v9537_v22  ;;  %v1303_v21 = vand.u32 4294901760, %v9532_v50  ;;  %v5941_v20 = vsel %vm12308_vm14, 1.0, %v12426_v0  ;;  %v5940_v35 = vsel %vm12309_vm15, 1.0, %v12426_v0  ;;  %v1313_v45 = vand.u32 4294901760, %v9530_v53 }
 0x108   : > { %v9554_v31 = vsub.f32 %v5941_v20, %v5941_v20  ;;  %v9556_v56 = vsub.f32 %v5940_v35, %v5940_v35  ;;  %v1295_v51 = vand.u32 4294901760, %v1294_v36 }
 0x109   : > { %6795 = vmatmul.mubr.f32.gmra.mrb[50].mxu1 %v1275_v46  ;;  %v1304_v55 = vsub.f32 %v9532_v50, %v1303_v21  ;;  %v9559_v7 = vpop.permute.xlu1 %458  ;;  %v9561_v63 = vpop.permute.xlu0 %455  ;;  %v1314_v22 = vsub.f32 %v9530_v53, %v1313_v45 }
 0x10a   : > { %12518 = vst [vmem:[#allocation95_spill] sm:$0xff] %v9554_v31  ;;  %12519 = vst [vmem:[#allocation96_spill] sm:$0xff] %v9556_v56  ;;  %7182 = vmatmul.mubr.f32.gmra.mrb[52].mxu0 %v1293_v58  ;;  %6797 = vmatprep.mubr.f32.mxu1 %v1285_v54  ;;  %vm12316_vm14 = vcmp.eq.s32.totalorder %v9559_v7, %v8750_v5  ;;  %vm12317_vm15 = vcmp.eq.s32.totalorder %v9561_v63, %v8750_v5  ;;  %v1323_v46 = vand.u32 4294901760, %v9556_v56 }
 0x10b   : > { %12520 = vst [vmem:[#allocation97_spill] sm:$0xff] %v9559_v7  ;;  %7184 = vmatprep.mubr.f32.mxu0 %v1303_v21  ;;  %12521 = vst [vmem:[#allocation98_spill] sm:$0xff] %v9561_v63  ;;  %v1305_v20 = vand.u32 4294901760, %v1304_v55  ;;  %v5943_v58 = vsel %vm12316_vm14, 1.0, %v12426_v0  ;;  %v5942_v36 = vsel %vm12317_vm15, 1.0, %v12426_v0  ;;  %v1333_v54 = vand.u32 4294901760, %v9554_v31 }
 0x10c   : > { %v9578_v21 = vsub.f32 %v5943_v58, %v5943_v58  ;;  %v9580_v35 = vsub.f32 %v5942_v36, %v5942_v36  ;;  %v1324_v55 = vsub.f32 %v9556_v56, %v1323_v46  ;;  %v1315_v7 = vand.u32 4294901760, %v1314_v22  ;;  %v8257_v36 = vld [vmem:[%s8495_s9 + $0x8] sm:$0xff] }
 0x10d   : > { %6798 = vmatmul.mubr.f32.gmra.mrb[52].mxu1 %v1295_v51  ;;  %v9583_v53 = vpop.permute.xlu1 %464  ;;  %v9585_v50 = vpop.permute.xlu0 %461  ;;  %v1334_v63 = vsub.f32 %v9554_v31, %v1333_v54  ;;  %v8384_v58 = vmov 1  }
 0x10e   : > { %12522 = vst [vmem:[#allocation99_spill] sm:$0xff] %v9578_v21  ;;  %12523 = vst [vmem:[#allocation100_spill] sm:$0xff] %v9580_v35  ;;  %7185 = vmatmul.mubr.f32.gmra.mrb[54].mxu0 %v1313_v45  ;;  %6800 = vmatprep.mubr.f32.mxu1 %v1305_v20  ;;  %vm12326_vm14 = vcmp.eq.s32.totalorder %v9583_v53, %v8750_v5  ;;  %vm12327_vm15 = vcmp.eq.s32.totalorder %v9585_v50, %v8750_v5  ;;  %v1325_v51 = vand.u32 4294901760, %v1324_v55  ;;  %v8258_v55 = vld [vmem:[%s8495_s9] sm:$0xff] }
 0x10f   : > { %12524 = vst [vmem:[#allocation101_spill] sm:$0xff] %v9583_v53  ;;  %7187 = vmatprep.mubr.f32.mxu0 %v1323_v46  ;;  %12525 = vst [vmem:[#allocation102_spill] sm:$0xff] %v9585_v50  ;;  %v1343_v45 = vand.u32 4294901760, %v9580_v35  ;;  %8000 = vset.pattern.permute.xlu0 %v8384_v58  ;;  %v5945_v20 = vsel %vm12326_vm14, 1.0, %v12426_v0  ;;  %v5944_v22 = vsel %vm12327_vm15, 1.0, %v12426_v0  ;;  %v1353_v46 = vand.u32 4294901760, %v9578_v21 }
 0x110   : > { %7999 = vset.pattern.permute.xlu1 %v8384_v58  ;;  %4674 = vperm.xlu0 %8000, %v8257_v36   ;;  %v9604_v31 = vsub.f32 %v5945_v20, %v5945_v20  ;;  %v9606_v56 = vsub.f32 %v5944_v22, %v5944_v22  ;;  %v1335_v49 = vand.u32 4294901760, %v1334_v63  ;;  %v8259_v20 = vld [vmem:[%s8495_s9 + $0x50] sm:$0xff] }
 0x111   : > { %4671 = vperm.xlu1 %7999, %v8258_v55   ;;  %6801 = vmatmul.mubr.f32.gmra.mrb[54].mxu1 %v1315_v7  ;;  %v1344_v58 = vsub.f32 %v9580_v35, %v1343_v45  ;;  %v9609_v53 = vpop.permute.xlu1 %470  ;;  %v9611_v50 = vpop.permute.xlu0 %467  ;;  %v1354_v36 = vsub.f32 %v9578_v21, %v1353_v46  ;;  %v8260_v22 = vld [vmem:[%s8495_s9 + $0x10] sm:$0xff] }
 0x112   : > { %12526 = vst [vmem:[#allocation103_spill] sm:$0xff] %v9604_v31  ;;  %12527 = vst [vmem:[#allocation104_spill] sm:$0xff] %v9606_v56  ;;  %7188 = vmatmul.mubr.f32.gmra.mrb[56].mxu0 %v1333_v54  ;;  %6803 = vmatprep.mubr.f32.mxu1 %v1325_v51  ;;  %vm535_vm14 = vcmp.eq.s32.totalorder %v9609_v53, %v8750_v5  ;;  %vm534_vm15 = vcmp.eq.s32.totalorder %v9611_v50, %v8750_v5  ;;  %v1363_v54 = vand.u32 4294901760, %v9606_v56 }
 0x113   : > { %12528 = vst [vmem:[#allocation105_spill] sm:$0xff] %v9609_v53  ;;  %7190 = vmatprep.mubr.f32.mxu0 %v1343_v45  ;;  %12529 = vst [vmem:[#allocation106_spill] sm:$0xff] %v9611_v50  ;;  %v1345_v7 = vand.u32 4294901760, %v1344_v58  ;;  %v5947_v51 = vsel %vm535_vm14, 1.0, %v12426_v0  ;;  %v5946_v63 = vsel %vm534_vm15, 1.0, %v12426_v0  ;;  %v1373_v45 = vand.u32 4294901760, %v9604_v31 }
 0x114   : > { %4701 = vperm.xlu0 %8000, %v8259_v20   ;;  %v9630_v55 = vsub.f32 %v5947_v51, %v5947_v51  ;;  %v9632_v58 = vsub.f32 %v5946_v63, %v5946_v63  ;;  %v1364_v21 = vsub.f32 %v9606_v56, %v1363_v54  ;;  %v1355_v35 = vand.u32 4294901760, %v1354_v36  ;;  %v8261_v51 = vld [vmem:[%s8495_s9 + $0x60] sm:$0xff]  ;;  %v8262_v63 = vld [vmem:[%s8495_s9 + $0x18] sm:$0xff] }
 0x115   : > { %4677 = vperm.xlu1 %7999, %v8260_v22   ;;  %6804 = vmatmul.mubr.f32.gmra.mrb[56].mxu1 %v1335_v49  ;;  %v1374_v20 = vsub.f32 %v9604_v31, %v1373_v45  ;;  %v12650_v31 = vld [vmem:[#allocation93_spill] sm:$0xff] }
 0x116   : > { %12530 = vst [vmem:[#allocation107_spill] sm:$0xff] %v9630_v55  ;;  %12531 = vst [vmem:[#allocation108_spill] sm:$0xff] %v9632_v58  ;;  %7191 = vmatmul.mubr.f32.gmra.mrb[58].mxu0 %v1353_v46  ;;  %6806 = vmatprep.mubr.f32.mxu1 %v1345_v7  ;;  %v1365_v0 = vand.u32 4294901760, %v1364_v21  ;;  %v1383_v53 = vand.u32 4294901760, %v9632_v58  ;;  %v1393_v22 = vand.u32 4294901760, %v9630_v55  ;;  %v8263_v7 = vld [vmem:[%s8495_s9 + $0x70] sm:$0xff] }
 0x117   : > { %7193 = vmatprep.mubr.f32.mxu0 %v1363_v54  ;;  %v1375_v21 = vand.u32 4294901760, %v1374_v20  ;;  %v8264_v54 = vld [vmem:[%s8495_s9 + $0x20] sm:$0xff]  ;;  %v7523_v20 = vpack.c.bf16 %v8659_v18, %v8654_v17  ;;  %v12656_v56 = vld [vmem:[#allocation97_spill] sm:$0xff] }
 0x118   : > { %4707 = vperm.xlu0 %8000, %v8261_v51   ;;  %v1384_v49 = vsub.f32 %v9632_v58, %v1383_v53  ;;  %v1394_v36 = vsub.f32 %v9630_v55, %v1393_v22  ;;  %v8268_v17 = vld [vmem:[%s8495_s9 + $0xa0] sm:$0xff]  ;;  %v12644_v55 = vld [vmem:[#allocation89_spill] sm:$0xff] }
 0x119   : > { %4680 = vperm.xlu1 %7999, %v8262_v63   ;;  %6807 = vmatmul.mubr.f32.gmra.mrb[58].mxu1 %v1355_v35  ;;  %v8385_v35 = vmov 1.0   ;;  %v8276_v51 = vld [vmem:[%s8495_s9 + $0xe0] sm:$0xff]  ;;  %v8277_v63 = vld [vmem:[%s8495_s9 + $0x58] sm:$0xff] }
 0x11a   : > { %7194 = vmatmul.mubr.f32.gmra.mrb[60].mxu0 %v1373_v45  ;;  %6809 = vmatprep.mubr.f32.mxu1 %v1365_v0  ;;  %v1385_v46 = vand.u32 4294901760, %v1384_v49  ;;  %v1395_v0 = vand.u32 4294901760, %v1394_v36  ;;  %v8266_v45 = vld [vmem:[%s8495_s9 + $0x28] sm:$0xff]  ;;  %v8278_v49 = vld [vmem:[%s8495_s9 + $0xf0] sm:$0xff]  ;;  %v12647_v58 = vld [vmem:[#allocation94_spill] sm:$0xff] }
 0x11b   : > { %7196 = vmatprep.mubr.f32.mxu0 %v1383_v53  ;;  %v8265_v53 = vld [vmem:[%s8495_s9 + $0x80] sm:$0xff]  ;;  %v8279_v36 = vld [vmem:[%s8495_s9 + $0x68] sm:$0xff]  ;;  %v12667_v50 = vld [vmem:[#allocation5_spill] sm:$0xff] }
 0x11c   : > { %4713 = vperm.xlu0 %8000, %v8263_v7   ;;  %v8280_v7 = vld [vmem:[%s8495_s9 + $0x100] sm:$0xff] }
 0x11d   : > { %4683 = vperm.xlu1 %7999, %v8264_v54   ;;  %6810 = vmatmul.mubr.f32.gmra.mrb[60].mxu1 %v1375_v21  ;;  %v12560_v21 = vld [vmem:[#allocation34_spill] sm:$0xff]  ;;  %v12566_v54 = vld [vmem:[#allocation37_spill] sm:$0xff] }
 0x11e   : > { %7197 = vmatmul.mubr.f32.gmra.mrb[62].mxu0 %v1393_v22  ;;  %6812 = vmatprep.mubr.f32.mxu1 %v1385_v46  ;;  %v8267_v22 = vld [vmem:[%s8495_s9 + $0x90] sm:$0xff]  ;;  %v12563_v46 = vld [vmem:[#allocation38_spill] sm:$0xff] }
 0x11f   : > { %7231 = vmatprep.mubr.msk.f32.mxu0 %vm472_vm1, %v8385_v35 }
 0x120   : > { %4719 = vperm.xlu0 %8000, %v8265_v53   ;;  %v8281_v53 = vld [vmem:[%s8495_s9 + $0x78] sm:$0xff] }
 0x121   : > { %4686 = vperm.xlu1 %7999, %v8266_v45   ;;  %6813 = vmatmul.mubr.f32.gmra.mrb[62].mxu1 %v1395_v0  ;;  %v12569_v0 = vld [vmem:[#allocation42_spill] sm:$0xff]  ;;  %v8282_v45 = vld [vmem:[%s8495_s9 + $0x110] sm:$0xff] }
 0x122   : > { %7232 = vmatmul.mubr.msk.f32.vlgmr.msra.gmra.mrb[0].mxu0 %vm473_vm3, %v8385_v35  ;;  %6847 = vmatprep.mubr.msk.f32.mxu1 %vm472_vm1, %v8385_v35 }
 0x123   : > { %7234 = vmatprep.mubr.msk.f32.mxu0 %vm474_vm0, %v8385_v35  ;;  %7618 = vmatpush3.bf16.msra.mxu0 %v8467_v11  ;;  %v7527_v11 = vpack.c.bf16 %v8677_v39, %v8672_v38  ;;  %v12533_v38 = vld [vmem:[#allocation17_spill] sm:$0xff]  ;;  %v12536_v39 = vld [vmem:[#allocation2_spill] sm:$0xff] }
 0x124   : > { %7620 = vmatprep.subr.bf16.mxu0 %v8475_v14  ;;  %4725 = vperm.xlu0 %8000, %v8267_v22   ;;  %v12575_v22 = vld [vmem:[#allocation46_spill] sm:$0xff] }
 0x125   : > { %6848 = vmatmul.mubr.msk.f32.vlgmr.msra.gmra.mrb[0].mxu1 %vm473_vm3, %v8385_v35 }
 0x126   : > { %7235 = vmatmul.mubr.msk.f32.gmra.mrb[2].mxu0 %vm475_vm2, %v8385_v35  ;;  %7522 = vmatpush3.bf16.msra.mxu1 %v9118_v30  ;;  %v8275_v30 = vld [vmem:[%s8495_s9 + $0x48] sm:$0xff] }
 0x127   : > { %6850 = vmatprep.mubr.msk.f32.mxu1 %vm474_vm0, %v8385_v35  ;;  %7237 = vmatprep.mubr.msk.f32.mxu0 %vm476_vm5, %v8385_v35 }
 0x128   : > { %7524 = vmatprep.subr.bf16.mxu1 %v7523_v20  ;;  %7622 = vmatpush3.bf16.msra.mxu0 %v8475_v14  ;;  %v7531_v14 = vpack.c.bf16 %v8721_v13, %v8716_v10  ;;  %v7547_v10 = vpack.c.bf16 %v8961_v41, %v8938_v12  ;;  %v12537_v13 = vld [vmem:[#allocation20_spill] sm:$0xff]  ;;  %v8273_v12 = vld [vmem:[%s8495_s9 + $0x40] sm:$0xff] }
 0x129   : > { %4731 = vperm.xlu0 %8000, %v8268_v17   ;;  %6851 = vmatmul.mubr.msk.f32.gmra.mrb[2].mxu1 %vm475_vm2, %v8385_v35  ;;  %v8274_v41 = vld [vmem:[%s8495_s9 + $0xd0] sm:$0xff]  ;;  %v8284_v17 = vld [vmem:[%s8495_s9 + $0x118] sm:$0xff] }
 0x12a   : > { %7238 = vmatmul.mubr.msk.f32.gmra.mrb[4].mxu0 %vm477_vm4, %v8385_v35  ;;  %6853 = vmatprep.mubr.msk.f32.mxu1 %vm476_vm5, %v8385_v35 }
 0x12b   : > { %7240 = vmatprep.mubr.msk.f32.mxu0 %vm478_vm7, %v8385_v35  ;;  %7526 = vmatpush3.bf16.msra.mxu1 %v7523_v20  ;;  %v12572_v20 = vld [vmem:[#allocation41_spill] sm:$0xff] }
 0x12c   : > { %7624 = vmatprep.subr.bf16.mxu0 %v8507_v19  ;;  %7528 = vmatprep.subr.bf16.mxu1 %v7527_v11 }
 0x12d   : > { %7626 = vmatpush3.bf16.msra.mxu0 %v8507_v19  ;;  %6854 = vmatmul.mubr.msk.f32.gmra.mrb[4].mxu1 %vm477_vm4, %v8385_v35  ;;  %v7535_v19 = vpack.c.bf16 %v8737_v16, %v8732_v15  ;;  %v12541_v15 = vld [vmem:[#allocation3_spill] sm:$0xff]  ;;  %v8269_v16 = vld [vmem:[%s8495_s9 + $0x30] sm:$0xff] }
 0x12e   : > { %7241 = vmatmul.mubr.msk.f32.gmra.mrb[6].mxu0 %vm479_vm6, %v8385_v35  ;;  %6856 = vmatprep.mubr.msk.f32.mxu1 %vm478_vm7, %v8385_v35 }
 0x12f   : > { %7243 = vmatprep.mubr.msk.f32.mxu0 %vm480_vm9, %v8385_v35  ;;  %7530 = vmatpush3.bf16.msra.mxu1 %v7527_v11  ;;  %v8283_v11 = vld [vmem:[%s8495_s9 + $0x88] sm:$0xff] }
 0x130   : > { %7628 = vmatprep.subr.bf16.mxu0 %v8531_v26  ;;  %7532 = vmatprep.subr.bf16.mxu1 %v7531_v14 }
 0x131   : > { %7630 = vmatpush3.bf16.msra.mxu0 %v8531_v26  ;;  %6857 = vmatmul.mubr.msk.f32.gmra.mrb[6].mxu1 %vm479_vm6, %v8385_v35  ;;  %v7539_v26 = vpack.c.bf16 %v8770_v8, %v8757_v6  ;;  %v8270_v6 = vld [vmem:[%s8495_s9 + $0xb0] sm:$0xff]  ;;  %v8271_v8 = vld [vmem:[%s8495_s9 + $0x38] sm:$0xff] }
 0x132   : > { %7244 = vmatmul.mubr.msk.f32.gmra.mrb[8].mxu0 %vm481_vm8, %v8385_v35  ;;  %6859 = vmatprep.mubr.msk.f32.mxu1 %vm480_vm9, %v8385_v35 }
 0x133   : > { %7246 = vmatprep.mubr.msk.f32.mxu0 %vm12333_vm11, %v8385_v35  ;;  %7534 = vmatpush3.bf16.msra.mxu1 %v7531_v14  ;;  %v12578_v14 = vld [vmem:[#allocation45_spill] sm:$0xff] }
 0x134   : > { %7632 = vmatprep.subr.bf16.mxu0 %v8555_v33  ;;  %7536 = vmatprep.subr.bf16.mxu1 %v7535_v19 }
 0x135   : > { %7634 = vmatpush3.bf16.msra.mxu0 %v8555_v33  ;;  %6860 = vmatmul.mubr.msk.f32.gmra.mrb[8].mxu1 %vm481_vm8, %v8385_v35  ;;  %v12532_v33 = vld [vmem:[#allocation10_spill] sm:$0xff] }
 0x136   : > { %7247 = vmatmul.mubr.msk.f32.gmra.mrb[10].mxu0 %vm12335_vm10, %v8385_v35  ;;  %6862 = vmatprep.mubr.msk.f32.mxu1 %vm12333_vm11, %v8385_v35  ;;  %v7543_v18 = vpack.c.bf16 %v12532_v33, %v8838_v23  ;;  %v8272_v23 = vld [vmem:[%s8495_s9 + $0xc0] sm:$0xff]  ;;  %v8286_v33 = vld [vmem:[%s8495_s9 + $0x130] sm:$0xff] }
 0x137   : > { %7249 = vmatprep.mubr.msk.f32.mxu0 %vm12334_vm13, %v8385_v35  ;;  %7538 = vmatpush3.bf16.msra.mxu1 %v7535_v19  ;;  %v12581_v19 = vld [vmem:[#allocation50_spill] sm:$0xff] }
 0x138   : > { %7636 = vmatprep.subr.bf16.mxu0 %v8579_v40  ;;  %7540 = vmatprep.subr.bf16.mxu1 %v7539_v26 }
 0x139   : > { %7638 = vmatpush3.bf16.msra.mxu0 %v8579_v40  ;;  %6863 = vmatmul.mubr.msk.f32.gmra.mrb[10].mxu1 %vm12335_vm10, %v8385_v35  ;;  %v12534_v40 = vld [vmem:[#allocation21_spill] sm:$0xff]  ;;  %vm12540_vm10 = vcmp.eq.s32.totalorder %v9040_v60, %v8750_v5 }
 0x13a   : > { %7250 = vmatmul.mubr.msk.f32.gmra.mrb[12].mxu0 %vm12336_vm12, %v8385_v35  ;;  %6865 = vmatprep.mubr.msk.f32.mxu1 %vm12334_vm13, %v8385_v35  ;;  %vm12535_vm11 = vcmp.eq.s32.totalorder %v12534_v40, %v8750_v5  ;;  %vm12539_vm13 = vcmp.eq.s32.totalorder %v12534_v40, %v8750_v5 }
 0x13b   : > { %7252 = vmatprep.mubr.msk.f32.mxu0 %vm12535_vm11, %v8385_v35  ;;  %7542 = vmatpush3.bf16.msra.mxu1 %v7539_v26  ;;  %vm12538_vm11 = vcmp.eq.s32.totalorder %v12537_v13, %v8750_v5  ;;  %v8285_v26 = vld [vmem:[%s8495_s9 + $0x98] sm:$0xff] }
 0x13c   : > { %7640 = vmatprep.subr.bf16.mxu0 %v12536_v39  ;;  %7544 = vmatprep.subr.bf16.mxu1 %v7543_v18 }
 0x13d   : > { %7642 = vmatpush3.bf16.msra.mxu0 %v12536_v39  ;;  %6866 = vmatmul.mubr.msk.f32.gmra.mrb[12].mxu1 %vm12336_vm12, %v8385_v35  ;;  %vm12543_vm12 = vcmp.eq.s32.totalorder %v9068_v1, %v8750_v5  ;;  %v12587_v39 = vld [vmem:[#allocation54_spill] sm:$0xff] }
 0x13e   : > { %7253 = vmatmul.mubr.msk.f32.gmra.mrb[14].mxu0 %vm12538_vm11, %v8385_v35  ;;  %6868 = vmatprep.mubr.msk.f32.mxu1 %vm12539_vm13, %v8385_v35  ;;  %vm12542_vm13 = vcmp.eq.s32.totalorder %v9038_v42, %v8750_v5 }
 0x13f   : > { %7255 = vmatprep.mubr.msk.f32.mxu0 %vm12540_vm10, %v8385_v35  ;;  %7546 = vmatpush3.bf16.msra.mxu1 %v7543_v18  ;;  %v12584_v18 = vld [vmem:[#allocation49_spill] sm:$0xff] }
 0x140   : > { %7644 = vmatprep.subr.bf16.mxu0 %v12541_v15  ;;  %7548 = vmatprep.subr.bf16.mxu1 %v7547_v10 }
 0x141   : > { %7646 = vmatpush3.bf16.msra.mxu0 %v12541_v15  ;;  %6869 = vmatmul.mubr.msk.f32.gmra.mrb[14].mxu1 %vm12538_vm11, %v8385_v35  ;;  %vm12544_vm11 = vmmov %vm12542_vm13  ;;  %v8288_v15 = vld [vmem:[%s8495_s9 + $0x148] sm:$0xff] }
 0x142   : > { %7256 = vmatmul.mubr.msk.f32.gmra.mrb[16].mxu0 %vm12542_vm13, %v8385_v35  ;;  %6871 = vmatprep.mubr.msk.f32.mxu1 %vm12540_vm10, %v8385_v35  ;;  %vm12545_vm13 = vcmp.eq.s32.totalorder %v9066_v28, %v8750_v5  ;;  %vm12546_vm10 = vcmp.eq.s32.totalorder %v9099_v44, %v8750_v5 }
 0x143   : > { %7258 = vmatprep.mubr.msk.f32.mxu0 %vm12543_vm12, %v8385_v35  ;;  %7550 = vmatpush3.bf16.msra.mxu1 %v7547_v10  ;;  %v8287_v10 = vld [vmem:[%s8495_s9 + $0xa8] sm:$0xff] }
 0x144   : > { %4689 = vperm.xlu1 %7999, %v8269_v16   ;;  %4737 = vperm.xlu0 %8000, %v8270_v6   ;;  %v12590_v16 = vld [vmem:[#allocation53_spill] sm:$0xff]  ;;  %v12593_v6 = vld [vmem:[#allocation58_spill] sm:$0xff] }
 0x145   : > { %6872 = vmatmul.mubr.msk.f32.gmra.mrb[16].mxu1 %vm12544_vm11, %v8385_v35  ;;  %vm12547_vm11 = vmmov %vm12545_vm13 }
 0x146   : > { %7259 = vmatmul.mubr.msk.f32.gmra.mrb[18].mxu0 %vm12545_vm13, %v8385_v35  ;;  %6874 = vmatprep.mubr.msk.f32.mxu1 %vm12543_vm12, %v8385_v35  ;;  %vm12548_vm13 = vcmp.eq.s32.totalorder %v9097_v57, %v8750_v5  ;;  %vm12549_vm12 = vmmov %vm12546_vm10 }
 0x147   : > { %7261 = vmatprep.mubr.msk.f32.mxu0 %vm12546_vm10, %v8385_v35  ;;  %vm12550_vm10 = vcmp.eq.s32.totalorder %v9127_v37, %v8750_v5 }
 0x148   : > { %4692 = vperm.xlu1 %7999, %v8271_v8   ;;  %4743 = vperm.xlu0 %8000, %v8272_v23   ;;  %v8289_v8 = vld [vmem:[%s8495_s9 + $0xb8] sm:$0xff]  ;;  %v8290_v23 = vld [vmem:[%s8495_s9 + $0x150] sm:$0xff] }
 0x149   : > { %6875 = vmatmul.mubr.msk.f32.gmra.mrb[18].mxu1 %vm12547_vm11, %v8385_v35  ;;  %vm12551_vm11 = vmmov %vm12548_vm13 }
 0x14a   : > { %7262 = vmatmul.mubr.msk.f32.gmra.mrb[20].mxu0 %vm12548_vm13, %v8385_v35  ;;  %6877 = vmatprep.mubr.msk.f32.mxu1 %vm12549_vm12, %v8385_v35  ;;  %vm12552_vm13 = vcmp.eq.s32.totalorder %v9125_v32, %v8750_v5  ;;  %vm12553_vm12 = vmmov %vm12550_vm10 }
 0x14b   : > { %7264 = vmatprep.mubr.msk.f32.mxu0 %vm12550_vm10, %v8385_v35  ;;  %vm12554_vm10 = vcmp.eq.s32.totalorder %v9153_v59, %v8750_v5 }
 0x14c   : > { %4695 = vperm.xlu1 %7999, %v8273_v12   ;;  %4749 = vperm.xlu0 %8000, %v8274_v41   ;;  %v12596_v12 = vld [vmem:[#allocation57_spill] sm:$0xff]  ;;  %v12599_v41 = vld [vmem:[#allocation62_spill] sm:$0xff] }
 0x14d   : > { %6878 = vmatmul.mubr.msk.f32.gmra.mrb[20].mxu1 %vm12551_vm11, %v8385_v35  ;;  %vm12555_vm11 = vmmov %vm12552_vm13 }
 0x14e   : > { %7265 = vmatmul.mubr.msk.f32.gmra.mrb[22].mxu0 %vm12552_vm13, %v8385_v35  ;;  %6880 = vmatprep.mubr.msk.f32.mxu1 %vm12553_vm12, %v8385_v35  ;;  %vm12556_vm13 = vcmp.eq.s32.totalorder %v9151_v62, %v8750_v5  ;;  %vm12557_vm12 = vmmov %vm12554_vm10 }
 0x14f   : > { %7267 = vmatprep.mubr.msk.f32.mxu0 %vm12554_vm10, %v8385_v35  ;;  %vm12558_vm10 = vcmp.eq.s32.totalorder %v9177_v27, %v8750_v5 }
 0x150   : > { %4698 = vperm.xlu1 %7999, %v8275_v30   ;;  %4755 = vperm.xlu0 %8000, %v8276_v51   ;;  %v8291_v30 = vld [vmem:[%s8495_s9 + $0xc8] sm:$0xff]  ;;  %v8292_v51 = vld [vmem:[%s8495_s9 + $0x158] sm:$0xff] }
 0x151   : > { %6881 = vmatmul.mubr.msk.f32.gmra.mrb[22].mxu1 %vm12555_vm11, %v8385_v35  ;;  %vm12559_vm11 = vmmov %vm12556_vm13 }
 0x152   : > { %7268 = vmatmul.mubr.msk.f32.gmra.mrb[24].mxu0 %vm12556_vm13, %v8385_v35  ;;  %6883 = vmatprep.mubr.msk.f32.mxu1 %vm12557_vm12, %v8385_v35  ;;  %vm12561_vm13 = vcmp.eq.s32.totalorder %v12560_v21, %v8750_v5  ;;  %vm12562_vm12 = vmmov %vm12558_vm10 }
 0x153   : > { %7270 = vmatprep.mubr.msk.f32.mxu0 %vm12558_vm10, %v8385_v35  ;;  %vm12564_vm10 = vcmp.eq.s32.totalorder %v12563_v46, %v8750_v5 }
 0x154   : > { %4704 = vperm.xlu1 %7999, %v8277_v63   ;;  %4761 = vperm.xlu0 %8000, %v8278_v49   ;;  %v12602_v63 = vld [vmem:[#allocation61_spill] sm:$0xff]  ;;  %v12605_v49 = vld [vmem:[#allocation66_spill] sm:$0xff] }
 0x155   : > { %6884 = vmatmul.mubr.msk.f32.gmra.mrb[24].mxu1 %vm12559_vm11, %v8385_v35  ;;  %vm12565_vm11 = vmmov %vm12561_vm13 }
 0x156   : > { %7271 = vmatmul.mubr.msk.f32.gmra.mrb[26].mxu0 %vm12561_vm13, %v8385_v35  ;;  %6886 = vmatprep.mubr.msk.f32.mxu1 %vm12562_vm12, %v8385_v35  ;;  %vm12567_vm13 = vcmp.eq.s32.totalorder %v12566_v54, %v8750_v5  ;;  %vm12568_vm12 = vmmov %vm12564_vm10 }
 0x157   : > { %7273 = vmatprep.mubr.msk.f32.mxu0 %vm12564_vm10, %v8385_v35  ;;  %vm12570_vm10 = vcmp.eq.s32.totalorder %v12569_v0, %v8750_v5 }
 0x158   : > { %4710 = vperm.xlu1 %7999, %v8279_v36   ;;  %4767 = vperm.xlu0 %8000, %v8280_v7   ;;  %v8293_v36 = vld [vmem:[%s8495_s9 + $0xd8] sm:$0xff]  ;;  %v8294_v7 = vld [vmem:[%s8495_s9 + $0x160] sm:$0xff] }
 0x159   : > { %6887 = vmatmul.mubr.msk.f32.gmra.mrb[26].mxu1 %vm12565_vm11, %v8385_v35  ;;  %vm12571_vm11 = vmmov %vm12567_vm13 }
 0x15a   : > { %7274 = vmatmul.mubr.msk.f32.gmra.mrb[28].mxu0 %vm12567_vm13, %v8385_v35  ;;  %6889 = vmatprep.mubr.msk.f32.mxu1 %vm12568_vm12, %v8385_v35  ;;  %vm12573_vm13 = vcmp.eq.s32.totalorder %v12572_v20, %v8750_v5  ;;  %vm12574_vm12 = vmmov %vm12570_vm10 }
 0x15b   : > { %7276 = vmatprep.mubr.msk.f32.mxu0 %vm12570_vm10, %v8385_v35  ;;  %vm12576_vm10 = vcmp.eq.s32.totalorder %v12575_v22, %v8750_v5 }
 0x15c   : > { %4716 = vperm.xlu1 %7999, %v8281_v53   ;;  %4773 = vperm.xlu0 %8000, %v8282_v45   ;;  %v12608_v53 = vld [vmem:[#allocation65_spill] sm:$0xff]  ;;  %v12611_v45 = vld [vmem:[#allocation70_spill] sm:$0xff] }
 0x15d   : > { %6890 = vmatmul.mubr.msk.f32.gmra.mrb[28].mxu1 %vm12571_vm11, %v8385_v35  ;;  %vm12577_vm11 = vmmov %vm12573_vm13 }
 0x15e   : > { %7277 = vmatmul.mubr.msk.f32.gmra.mrb[30].mxu0 %vm12573_vm13, %v8385_v35  ;;  %6892 = vmatprep.mubr.msk.f32.mxu1 %vm12574_vm12, %v8385_v35  ;;  %vm12579_vm13 = vcmp.eq.s32.totalorder %v12578_v14, %v8750_v5  ;;  %vm12580_vm12 = vmmov %vm12576_vm10 }
 0x15f   : > { %7279 = vmatprep.mubr.msk.f32.mxu0 %vm12576_vm10, %v8385_v35  ;;  %vm12582_vm10 = vcmp.eq.s32.totalorder %v12581_v19, %v8750_v5 }
 0x160   : > { %4722 = vperm.xlu1 %7999, %v8283_v11   ;;  %4776 = vperm.xlu0 %8000, %v8284_v17   ;;  %v8295_v11 = vld [vmem:[%s8495_s9 + $0xe8] sm:$0xff] }
 0x161   : > { %6893 = vmatmul.mubr.msk.f32.gmra.mrb[30].mxu1 %vm12577_vm11, %v8385_v35  ;;  %vm12583_vm11 = vmmov %vm12579_vm13  ;;  %v8296_v17 = vld [vmem:[%s8495_s9 + $0x168] sm:$0xff] }
 0x162   : > { %7280 = vmatmul.mubr.msk.f32.gmra.mrb[32].mxu0 %vm12579_vm13, %v8385_v35  ;;  %6895 = vmatprep.mubr.msk.f32.mxu1 %vm12580_vm12, %v8385_v35  ;;  %vm12585_vm13 = vcmp.eq.s32.totalorder %v12584_v18, %v8750_v5  ;;  %vm12586_vm12 = vmmov %vm12582_vm10 }
 0x163   : > { %7282 = vmatprep.mubr.msk.f32.mxu0 %vm12582_vm10, %v8385_v35  ;;  %vm12588_vm10 = vcmp.eq.s32.totalorder %v12587_v39, %v8750_v5 }
 0x164   : > { %4728 = vperm.xlu1 %7999, %v8285_v26   ;;  %4785 = vperm.xlu0 %8000, %v8286_v33   ;;  %v12614_v26 = vld [vmem:[#allocation69_spill] sm:$0xff]  ;;  %v12617_v33 = vld [vmem:[#allocation74_spill] sm:$0xff] }
 0x165   : > { %6896 = vmatmul.mubr.msk.f32.gmra.mrb[32].mxu1 %vm12583_vm11, %v8385_v35  ;;  %vm12589_vm11 = vmmov %vm12585_vm13 }
 0x166   : > { %7283 = vmatmul.mubr.msk.f32.gmra.mrb[34].mxu0 %vm12585_vm13, %v8385_v35  ;;  %6898 = vmatprep.mubr.msk.f32.mxu1 %vm12586_vm12, %v8385_v35  ;;  %vm12591_vm13 = vcmp.eq.s32.totalorder %v12590_v16, %v8750_v5  ;;  %vm12592_vm12 = vmmov %vm12588_vm10 }
 0x167   : > { %7285 = vmatprep.mubr.msk.f32.mxu0 %vm12588_vm10, %v8385_v35  ;;  %vm12594_vm10 = vcmp.eq.s32.totalorder %v12593_v6, %v8750_v5 }
 0x168   : > { %4734 = vperm.xlu1 %7999, %v8287_v10   ;;  %4794 = vperm.xlu0 %8000, %v8288_v15   ;;  %v8297_v10 = vld [vmem:[%s8495_s9 + $0xf8] sm:$0xff]  ;;  %v8298_v15 = vld [vmem:[%s8495_s9 + $0x170] sm:$0xff] }
 0x169   : > { %6899 = vmatmul.mubr.msk.f32.gmra.mrb[34].mxu1 %vm12589_vm11, %v8385_v35  ;;  %vm12595_vm11 = vmmov %vm12591_vm13 }
 0x16a   : > { %7286 = vmatmul.mubr.msk.f32.gmra.mrb[36].mxu0 %vm12591_vm13, %v8385_v35  ;;  %6901 = vmatprep.mubr.msk.f32.mxu1 %vm12592_vm12, %v8385_v35  ;;  %vm12597_vm13 = vcmp.eq.s32.totalorder %v12596_v12, %v8750_v5  ;;  %vm12598_vm12 = vmmov %vm12594_vm10 }
 0x16b   : > { %7288 = vmatprep.mubr.msk.f32.mxu0 %vm12594_vm10, %v8385_v35  ;;  %vm12600_vm10 = vcmp.eq.s32.totalorder %v12599_v41, %v8750_v5 }
 0x16c   : > { %4740 = vperm.xlu1 %7999, %v8289_v8   ;;  %4797 = vperm.xlu0 %8000, %v8290_v23   ;;  %v12620_v8 = vld [vmem:[#allocation73_spill] sm:$0xff]  ;;  %v12623_v23 = vld [vmem:[#allocation78_spill] sm:$0xff] }
 0x16d   : > { %6902 = vmatmul.mubr.msk.f32.gmra.mrb[36].mxu1 %vm12595_vm11, %v8385_v35  ;;  %vm12601_vm11 = vmmov %vm12597_vm13 }
 0x16e   : > { %7289 = vmatmul.mubr.msk.f32.gmra.mrb[38].mxu0 %vm12597_vm13, %v8385_v35  ;;  %6904 = vmatprep.mubr.msk.f32.mxu1 %vm12598_vm12, %v8385_v35  ;;  %vm12603_vm13 = vcmp.eq.s32.totalorder %v12602_v63, %v8750_v5  ;;  %vm12604_vm12 = vmmov %vm12600_vm10 }
 0x16f   : > { %7291 = vmatprep.mubr.msk.f32.mxu0 %vm12600_vm10, %v8385_v35  ;;  %vm12606_vm10 = vcmp.eq.s32.totalorder %v12605_v49, %v8750_v5 }
 0x170   : > { %4746 = vperm.xlu1 %7999, %v8291_v30   ;;  %4800 = vperm.xlu0 %8000, %v8292_v51   ;;  %v8299_v30 = vld [vmem:[%s8495_s9 + $0x108] sm:$0xff]  ;;  %v8300_v51 = vld [vmem:[%s8495_s9 + $0x178] sm:$0xff] }
 0x171   : > { %6905 = vmatmul.mubr.msk.f32.gmra.mrb[38].mxu1 %vm12601_vm11, %v8385_v35  ;;  %vm12607_vm11 = vmmov %vm12603_vm13 }
 0x172   : > { %7292 = vmatmul.mubr.msk.f32.gmra.mrb[40].mxu0 %vm12603_vm13, %v8385_v35  ;;  %6907 = vmatprep.mubr.msk.f32.mxu1 %vm12604_vm12, %v8385_v35  ;;  %vm12609_vm13 = vcmp.eq.s32.totalorder %v12608_v53, %v8750_v5  ;;  %vm12610_vm12 = vmmov %vm12606_vm10 }
 0x173   : > { %7294 = vmatprep.mubr.msk.f32.mxu0 %vm12606_vm10, %v8385_v35  ;;  %vm12612_vm10 = vcmp.eq.s32.totalorder %v12611_v45, %v8750_v5 }
 0x174   : > { %4752 = vperm.xlu1 %7999, %v8293_v36   ;;  %4803 = vperm.xlu0 %8000, %v8294_v7   ;;  %v12626_v36 = vld [vmem:[#allocation77_spill] sm:$0xff]  ;;  %v12629_v7 = vld [vmem:[#allocation82_spill] sm:$0xff] }
 0x175   : > { %6908 = vmatmul.mubr.msk.f32.gmra.mrb[40].mxu1 %vm12607_vm11, %v8385_v35  ;;  %vm12613_vm11 = vmmov %vm12609_vm13 }
 0x176   : > { %7295 = vmatmul.mubr.msk.f32.gmra.mrb[42].mxu0 %vm12609_vm13, %v8385_v35  ;;  %6910 = vmatprep.mubr.msk.f32.mxu1 %vm12610_vm12, %v8385_v35  ;;  %vm12615_vm13 = vcmp.eq.s32.totalorder %v12614_v26, %v8750_v5  ;;  %vm12616_vm12 = vmmov %vm12612_vm10 }
 0x177   : > { %7297 = vmatprep.mubr.msk.f32.mxu0 %vm12612_vm10, %v8385_v35  ;;  %vm12618_vm10 = vcmp.eq.s32.totalorder %v12617_v33, %v8750_v5 }
 0x178   : > { %4758 = vperm.xlu1 %7999, %v8295_v11   ;;  %4806 = vperm.xlu0 %8000, %v8296_v17   ;;  %v8301_v11 = vld [vmem:[%s8495_s9 + $0x120] sm:$0xff] }
 0x179   : > { %6911 = vmatmul.mubr.msk.f32.gmra.mrb[42].mxu1 %vm12613_vm11, %v8385_v35  ;;  %vm12619_vm11 = vmmov %vm12615_vm13  ;;  %v8302_v17 = vld [vmem:[%s8495_s9 + $0x180] sm:$0xff] }
 0x17a   : > { %7298 = vmatmul.mubr.msk.f32.gmra.mrb[44].mxu0 %vm12615_vm13, %v8385_v35  ;;  %6913 = vmatprep.mubr.msk.f32.mxu1 %vm12616_vm12, %v8385_v35  ;;  %vm12621_vm13 = vcmp.eq.s32.totalorder %v12620_v8, %v8750_v5  ;;  %vm12622_vm12 = vmmov %vm12618_vm10 }
 0x17b   : > { %7300 = vmatprep.mubr.msk.f32.mxu0 %vm12618_vm10, %v8385_v35  ;;  %vm12624_vm10 = vcmp.eq.s32.totalorder %v12623_v23, %v8750_v5 }
 0x17c   : > { %4764 = vperm.xlu1 %7999, %v8297_v10   ;;  %4809 = vperm.xlu0 %8000, %v8298_v15   ;;  %v12632_v10 = vld [vmem:[#allocation81_spill] sm:$0xff]  ;;  %v12635_v15 = vld [vmem:[#allocation86_spill] sm:$0xff] }
 0x17d   : > { %6914 = vmatmul.mubr.msk.f32.gmra.mrb[44].mxu1 %vm12619_vm11, %v8385_v35  ;;  %vm12625_vm11 = vmmov %vm12621_vm13 }
 0x17e   : > { %7301 = vmatmul.mubr.msk.f32.gmra.mrb[46].mxu0 %vm12621_vm13, %v8385_v35  ;;  %6916 = vmatprep.mubr.msk.f32.mxu1 %vm12622_vm12, %v8385_v35  ;;  %vm12627_vm13 = vcmp.eq.s32.totalorder %v12626_v36, %v8750_v5  ;;  %vm12628_vm12 = vmmov %vm12624_vm10 }
 0x17f   : > { %7303 = vmatprep.mubr.msk.f32.mxu0 %vm12624_vm10, %v8385_v35  ;;  %vm12630_vm10 = vcmp.eq.s32.totalorder %v12629_v7, %v8750_v5 }
 0x180   : > { %4770 = vperm.xlu1 %7999, %v8299_v30   ;;  %4812 = vperm.xlu0 %8000, %v8300_v51   ;;  %v8303_v30 = vld [vmem:[%s8495_s9 + $0x128] sm:$0xff] }
 0x181   : > { %6917 = vmatmul.mubr.msk.f32.gmra.mrb[46].mxu1 %vm12625_vm11, %v8385_v35  ;;  %vm12631_vm11 = vmmov %vm12627_vm13  ;;  %v8304_v51 = vld [vmem:[%s8495_s9 + $0x188] sm:$0xff] }
 0x182   : > { %7304 = vmatmul.mubr.msk.f32.gmra.mrb[48].mxu0 %vm12627_vm13, %v8385_v35  ;;  %6919 = vmatprep.mubr.msk.f32.mxu1 %vm12628_vm12, %v8385_v35  ;;  %vm12633_vm13 = vcmp.eq.s32.totalorder %v12632_v10, %v8750_v5  ;;  %vm12634_vm12 = vmmov %vm12630_vm10 }
 0x183   : > { %7306 = vmatprep.mubr.msk.f32.mxu0 %vm12630_vm10, %v8385_v35  ;;  %vm12636_vm10 = vcmp.eq.s32.totalorder %v12635_v15, %v8750_v5 }
 0x184   : > { %4779 = vperm.xlu1 %7999, %v8301_v11   ;;  %4815 = vperm.xlu0 %8000, %v8302_v17   ;;  %v12638_v11 = vld [vmem:[#allocation85_spill] sm:$0xff]  ;;  %v12641_v17 = vld [vmem:[#allocation90_spill] sm:$0xff] }
 0x185   : > { %6920 = vmatmul.mubr.msk.f32.gmra.mrb[48].mxu1 %vm12631_vm11, %v8385_v35  ;;  %vm12637_vm11 = vmmov %vm12633_vm13 }
 0x186   : > { %7307 = vmatmul.mubr.msk.f32.gmra.mrb[50].mxu0 %vm12633_vm13, %v8385_v35  ;;  %6922 = vmatprep.mubr.msk.f32.mxu1 %vm12634_vm12, %v8385_v35  ;;  %vm12639_vm13 = vcmp.eq.s32.totalorder %v12638_v11, %v8750_v5  ;;  %vm12640_vm12 = vmmov %vm12636_vm10 }
 0x187   : > { %7309 = vmatprep.mubr.msk.f32.mxu0 %vm12636_vm10, %v8385_v35  ;;  %vm12642_vm10 = vcmp.eq.s32.totalorder %v12641_v17, %v8750_v5 }
 0x188   : > { %4782 = vperm.xlu1 %7999, %v8303_v30   ;;  %4818 = vperm.xlu0 %8000, %v8304_v51   ;;  %v8305_v30 = vld [vmem:[%s8495_s9 + $0x138] sm:$0xff]  ;;  %v8306_v51 = vld [vmem:[%s8495_s9 + $0x190] sm:$0xff] }
 0x189   : > { %6923 = vmatmul.mubr.msk.f32.gmra.mrb[50].mxu1 %vm12637_vm11, %v8385_v35  ;;  %vm12643_vm11 = vmmov %vm12639_vm13 }
 0x18a   : > { %7310 = vmatmul.mubr.msk.f32.gmra.mrb[52].mxu0 %vm12639_vm13, %v8385_v35  ;;  %6925 = vmatprep.mubr.msk.f32.mxu1 %vm12640_vm12, %v8385_v35  ;;  %vm12645_vm13 = vcmp.eq.s32.totalorder %v12644_v55, %v8750_v5  ;;  %vm12646_vm12 = vmmov %vm12642_vm10 }
 0x18b   : > { %7312 = vmatprep.mubr.msk.f32.mxu0 %vm12642_vm10, %v8385_v35  ;;  %vm12648_vm10 = vcmp.eq.s32.totalorder %v12647_v58, %v8750_v5  ;;  %v12659_v58 = vld [vmem:[#allocation102_spill] sm:$0xff] }
 0x18c   : > { %4788 = vperm.xlu1 %7999, %v8305_v30   ;;  %4821 = vperm.xlu0 %8000, %v8306_v51   ;;  %v8307_v30 = vld [vmem:[%s8495_s9 + $0x140] sm:$0xff]  ;;  %v8308_v51 = vld [vmem:[%s8495_s9 + $0x198] sm:$0xff] }
 0x18d   : > { %6926 = vmatmul.mubr.msk.f32.gmra.mrb[52].mxu1 %vm12643_vm11, %v8385_v35  ;;  %vm12649_vm11 = vmmov %vm12645_vm13 }
 0x18e   : > { %7313 = vmatmul.mubr.msk.f32.gmra.mrb[54].mxu0 %vm12645_vm13, %v8385_v35  ;;  %6928 = vmatprep.mubr.msk.f32.mxu1 %vm12646_vm12, %v8385_v35  ;;  %vm12651_vm13 = vcmp.eq.s32.totalorder %v12650_v31, %v8750_v5  ;;  %vm12652_vm12 = vmmov %vm12648_vm10  ;;  %v12662_v31 = vld [vmem:[#allocation101_spill] sm:$0xff] }
 0x18f   : > { %7315 = vmatprep.mubr.msk.f32.mxu0 %vm12648_vm10, %v8385_v35 }
 0x190   : > { %4791 = vperm.xlu1 %7999, %v8307_v30   ;;  %4824 = vperm.xlu0 %8000, %v8308_v51   ;;  %v12653_v30 = vld [vmem:[#allocation98_spill] sm:$0xff] }
 0x191   : > { %6929 = vmatmul.mubr.msk.f32.gmra.mrb[54].mxu1 %vm12649_vm11, %v8385_v35  ;;  %vm12654_vm10 = vcmp.eq.s32.totalorder %v12653_v30, %v8750_v5  ;;  %v8309_v51 = vld [vmem:[%s8495_s9 + $0x1a0] sm:$0xff]  ;;  %vm12655_vm11 = vmmov %vm12651_vm13 }
 0x192   : > { %7316 = vmatmul.mubr.msk.f32.gmra.mrb[56].mxu0 %vm12651_vm13, %v8385_v35  ;;  %6931 = vmatprep.mubr.msk.f32.mxu1 %vm12652_vm12, %v8385_v35  ;;  %vm12657_vm13 = vcmp.eq.s32.totalorder %v12656_v56, %v8750_v5  ;;  %vm12658_vm12 = vmmov %vm12654_vm10 }
 0x193   : > { %7318 = vmatprep.mubr.msk.f32.mxu0 %vm12654_vm10, %v8385_v35  ;;  %vm12660_vm10 = vcmp.eq.s32.totalorder %v12659_v58, %v8750_v5 }
 0x194   : > { %4827 = vperm.xlu0 %8000, %v8309_v51   ;;  %v8310_v51 = vld [vmem:[%s8495_s9 + $0x1a8] sm:$0xff] }
 0x195   : > { %6932 = vmatmul.mubr.msk.f32.gmra.mrb[56].mxu1 %vm12655_vm11, %v8385_v35  ;;  %vm12661_vm11 = vmmov %vm12657_vm13 }
 0x196   : > { %7319 = vmatmul.mubr.msk.f32.gmra.mrb[58].mxu0 %vm12657_vm13, %v8385_v35  ;;  %6934 = vmatprep.mubr.msk.f32.mxu1 %vm12658_vm12, %v8385_v35  ;;  %vm12663_vm13 = vcmp.eq.s32.totalorder %v12662_v31, %v8750_v5  ;;  %vm12664_vm12 = vmmov %vm12660_vm10 }
 0x197   : > { %7321 = vmatprep.mubr.msk.f32.mxu0 %vm12660_vm10, %v8385_v35  ;;  %vm12665_vm10 = vmmov %vm12663_vm13 }
 0x198   : > { %4830 = vperm.xlu0 %8000, %v8310_v51   ;;  %v8311_v51 = vld [vmem:[%s8495_s9 + $0x1b0] sm:$0xff] }
 0x199   : > { %6935 = vmatmul.mubr.msk.f32.gmra.mrb[58].mxu1 %vm12661_vm11, %v8385_v35  ;;  %vm12696_vm11 = vcmp.eq.s32.totalorder %v9099_v44, %v8750_v5  ;;  %v12703_v44 = vld [vmem:[#allocation31_spill] sm:$0xff] }
 0x19a   : > { %7322 = vmatmul.mubr.msk.f32.gmra.mrb[60].mxu0 %vm12663_vm13, %v8385_v35  ;;  %6937 = vmatprep.mubr.msk.f32.mxu1 %vm12664_vm12, %v8385_v35  ;;  %vm12698_vm13 = vcmp.eq.s32.totalorder %v9097_v57, %v8750_v5  ;;  %vm12700_vm12 = vcmp.eq.s32.totalorder %v9127_v37, %v8750_v5  ;;  %v12705_v57 = vld [vmem:[#allocation30_spill] sm:$0xff]  ;;  %v12707_v37 = vld [vmem:[#allocation33_spill] sm:$0xff] }
 0x19b   : > { %7324 = vmatprep.mubr.msk.f32.mxu0 %vm534_vm15, %v8385_v35 }
 0x19c   : > { %4833 = vperm.xlu0 %8000, %v8311_v51   ;;  %v8312_v51 = vld [vmem:[%s8495_s9 + $0x1b8] sm:$0xff] }
 0x19d   : > { %6938 = vmatmul.mubr.msk.f32.gmra.mrb[60].mxu1 %vm12665_vm10, %v8385_v35  ;;  %vm12702_vm10 = vcmp.eq.s32.totalorder %v9125_v32, %v8750_v5  ;;  %v12709_v32 = vld [vmem:[#allocation32_spill] sm:$0xff] }
 0x19e   : > { %7325 = vmatmul.mubr.msk.f32.gmra.mrb[62].mxu0 %vm535_vm14, %v8385_v35  ;;  %6940 = vmatprep.mubr.msk.f32.mxu1 %vm534_vm15, %v8385_v35 }
 0x19f   : > { %7359 = vmatprep.mubr.msk.f32.mxu0 %vm472_vm1, %v8385_v35  ;;  %vm12678_vm1 = vcmp.eq.s32.totalorder %v8927_v24, %v8750_v5  ;;  %v8319_v24 = vld [vmem:[%s8495_s9 + $0x1f0] sm:$0xff] }
 0x1a0   : > { %4836 = vperm.xlu0 %8000, %v8312_v51   ;;  %v12668_v51 = vld [vmem:[#allocation7_spill] sm:$0xff] }
 0x1a1   : > { %6941 = vmatmul.mubr.msk.f32.gmra.mrb[62].mxu1 %vm535_vm14, %v8385_v35 }
 0x1a2   : > { %7360 = vmatmul.mubr.msk.f32.vlgmr.msra.gmra.mrb[0].mxu0 %vm473_vm3, %v8385_v35  ;;  %6975 = vmatprep.mubr.f32.mxu1 %v12667_v50  ;;  %v8314_v50 = vld [vmem:[%s8495_s9 + $0x1c8] sm:$0xff]  ;;  %vm12682_vm3 = vcmp.eq.s32.totalorder %v12533_v38, %v8750_v5  ;;  %v8320_v38 = vld [vmem:[%s8495_s9 + $0x1f8] sm:$0xff] }
 0x1a3   : > { %7362 = vmatprep.mubr.msk.f32.mxu0 %vm474_vm0, %v8385_v35  ;;  %vm12676_vm0 = vcmp.eq.s32.totalorder %v8929_v25, %v8750_v5  ;;  %v12681_v25 = vld [vmem:[#allocation15_spill] sm:$0xff] }
 0x1a4   : > { %4839 = vperm.xlu0 %8000, %v8313_v43   ;;  %v8315_v43 = vld [vmem:[%s8495_s9 + $0x1d0] sm:$0xff] }
 0x1a5   : > { %6976 = vmatmul.mubr.f32.vlgmr.msra.gmra.mrb[0].mxu1 %v12668_v51  ;;  %v8316_v51 = vld [vmem:[%s8495_s9 + $0x1d8] sm:$0xff] }
 0x1a6   : > { %7363 = vmatmul.mubr.msk.f32.gmra.mrb[2].mxu0 %vm475_vm2, %v8385_v35  ;;  %6978 = vmatprep.mubr.f32.mxu1 %v12669_v4  ;;  %v8317_v4 = vld [vmem:[%s8495_s9 + $0x1e0] sm:$0xff]  ;;  %vm12680_vm2 = vcmp.eq.s32.totalorder %v8970_v47, %v8750_v5 }
 0x1a7   : > { %7365 = vmatprep.mubr.msk.f32.mxu0 %vm476_vm5, %v8385_v35  ;;  %v12685_v47 = vld [vmem:[#allocation18_spill] sm:$0xff]  ;;  %vm12686_vm5 = vcmp.eq.s32.totalorder %v12537_v13, %v8750_v5  ;;  %v12693_v13 = vld [vmem:[#allocation24_spill] sm:$0xff] }
 0x1a8   : > { %4842 = vperm.xlu0 %8000, %v8314_v50   ;;  %v8318_v50 = vld [vmem:[%s8495_s9 + $0x1e8] sm:$0xff] }
 0x1a9   : > { %6979 = vmatmul.mubr.f32.gmra.mrb[2].mxu1 %v12670_v9  ;;  %v12683_v9 = vld [vmem:[#allocation19_spill] sm:$0xff] }
 0x1aa   : > { %7366 = vmatmul.mubr.msk.f32.gmra.mrb[4].mxu0 %vm477_vm4, %v8385_v35  ;;  %6981 = vmatprep.mubr.f32.mxu1 %v12671_v3  ;;  %vm12684_vm4 = vcmp.eq.s32.totalorder %v12534_v40, %v8750_v5  ;;  %v12687_v3 = vld [vmem:[#allocation23_spill] sm:$0xff]  ;;  %v12689_v40 = vld [vmem:[#allocation22_spill] sm:$0xff] }
 0x1ab   : > { %7368 = vmatprep.mubr.msk.f32.mxu0 %vm478_vm7, %v8385_v35  ;;  %vm12690_vm7 = vcmp.eq.s32.totalorder %v9038_v42, %v8750_v5  ;;  %v12697_v42 = vld [vmem:[#allocation26_spill] sm:$0xff] }
 0x1ac   : > { %4845 = vperm.xlu0 %8000, %v8315_v43   ;;  %v12691_v43 = vld [vmem:[#allocation25_spill] sm:$0xff] }
 0x1ad   : > { %6982 = vmatmul.mubr.f32.gmra.mrb[4].mxu1 %v12672_v34  ;;  %v12757_v34 = vld [vmem:[#allocation79_spill] sm:$0xff] }
 0x1ae   : > { %7369 = vmatmul.mubr.msk.f32.gmra.mrb[6].mxu0 %vm479_vm6, %v8385_v35  ;;  %6984 = vmatprep.mubr.f32.mxu1 %v12673_v29  ;;  %vm12688_vm6 = vcmp.eq.s32.totalorder %v9040_v60, %v8750_v5  ;;  %v12695_v60 = vld [vmem:[#allocation27_spill] sm:$0xff]  ;;  %v12763_v29 = vld [vmem:[#allocation88_spill] sm:$0xff] }
 0x1af   : > { %7371 = vmatprep.mubr.msk.f32.mxu0 %vm480_vm9, %v8385_v35  ;;  %vm12694_vm9 = vcmp.eq.s32.totalorder %v9066_v28, %v8750_v5  ;;  %v12701_v28 = vld [vmem:[#allocation28_spill] sm:$0xff] }
 0x1b0   : > { %4848 = vperm.xlu0 %8000, %v8316_v51  }
 0x1b1   : > { %6985 = vmatmul.mubr.f32.gmra.mrb[6].mxu1 %v12674_v61  ;;  %v12770_v61 = vld [vmem:[#allocation91_spill] sm:$0xff] }
 0x1b2   : > { %7372 = vmatmul.mubr.msk.f32.gmra.mrb[8].mxu0 %vm481_vm8, %v8385_v35  ;;  %6987 = vmatprep.mubr.f32.mxu1 %v12675_v48  ;;  %vm12692_vm8 = vcmp.eq.s32.totalorder %v9068_v1, %v8750_v5  ;;  %v12699_v1 = vld [vmem:[#allocation29_spill] sm:$0xff]  ;;  %v12773_v48 = vld [vmem:[#allocation96_spill] sm:$0xff] }
 0x1b3   : > { %7374 = vmatprep.mubr.msk.f32.mxu0 %vm12676_vm0, %v8385_v35  ;;  %vm12704_vm0 = vcmp.eq.s32.totalorder %v9153_v59, %v8750_v5  ;;  %v12711_v59 = vld [vmem:[#allocation36_spill] sm:$0xff] }
 0x1b4   : > { %4851 = vperm.xlu0 %8000, %v8317_v4   ;;  %v12776_v4 = vld [vmem:[#allocation97_spill] sm:$0xff] }
 0x1b5   : > { %6988 = vmatmul.mubr.f32.gmra.mrb[8].mxu1 %v12677_v52 }
 0x1b6   : > { %7375 = vmatmul.mubr.msk.f32.gmra.mrb[10].mxu0 %vm12678_vm1, %v8385_v35  ;;  %6990 = vmatprep.mubr.f32.mxu1 %v12679_v2  ;;  %vm12706_vm1 = vcmp.eq.s32.totalorder %v9151_v62, %v8750_v5  ;;  %v12713_v62 = vld [vmem:[#allocation35_spill] sm:$0xff]  ;;  %v12778_v2 = vld [vmem:[#allocation100_spill] sm:$0xff] }
 0x1b7   : > { %7377 = vmatprep.mubr.msk.f32.mxu0 %vm12680_vm2, %v8385_v35  ;;  %vm12708_vm2 = vcmp.eq.s32.totalorder %v9177_v27, %v8750_v5  ;;  %v12715_v27 = vld [vmem:[#allocation40_spill] sm:$0xff] }
 0x1b8   : > { %4854 = vperm.xlu0 %8000, %v8318_v50   ;;  %v12780_v50 = vld [vmem:[#allocation99_spill] sm:$0xff] }
 0x1b9   : > { %6991 = vmatmul.mubr.f32.gmra.mrb[10].mxu1 %v12681_v25 }
 0x1ba   : > { %7378 = vmatmul.mubr.msk.f32.gmra.mrb[12].mxu0 %vm12682_vm3, %v8385_v35  ;;  %6993 = vmatprep.mubr.f32.mxu1 %v12683_v9  ;;  %vm12710_vm3 = vcmp.eq.s32.totalorder %v12560_v21, %v8750_v5  ;;  %v12717_v21 = vld [vmem:[#allocation39_spill] sm:$0xff] }
 0x1bb   : > { %7380 = vmatprep.mubr.msk.f32.mxu0 %vm12684_vm4, %v8385_v35  ;;  %vm12712_vm4 = vcmp.eq.s32.totalorder %v12563_v46, %v8750_v5  ;;  %v12719_v46 = vld [vmem:[#allocation44_spill] sm:$0xff] }
 0x1bc   : > { %4857 = vperm.xlu0 %8000, %v8319_v24   ;;  %v12784_v24 = vld [vmem:[#allocation103_spill] sm:$0xff] }
 0x1bd   : > { %6994 = vmatmul.mubr.f32.gmra.mrb[12].mxu1 %v12685_v47 }
 0x1be   : > { %7381 = vmatmul.mubr.msk.f32.gmra.mrb[14].mxu0 %vm12686_vm5, %v8385_v35  ;;  %6996 = vmatprep.mubr.f32.mxu1 %v12687_v3  ;;  %vm12714_vm5 = vcmp.eq.s32.totalorder %v12566_v54, %v8750_v5  ;;  %v12721_v54 = vld [vmem:[#allocation43_spill] sm:$0xff] }
 0x1bf   : > { %7383 = vmatprep.mubr.msk.f32.mxu0 %vm12688_vm6, %v8385_v35  ;;  %vm12716_vm6 = vcmp.eq.s32.totalorder %v12569_v0, %v8750_v5  ;;  %v12723_v0 = vld [vmem:[#allocation48_spill] sm:$0xff] }
 0x1c0   : > { %4860 = vperm.xlu0 %8000, %v8320_v38  }
 0x1c1   : > { %6997 = vmatmul.mubr.f32.gmra.mrb[14].mxu1 %v12689_v40 }
 0x1c2   : > { %7384 = vmatmul.mubr.msk.f32.gmra.mrb[16].mxu0 %vm12690_vm7, %v8385_v35  ;;  %6999 = vmatprep.mubr.f32.mxu1 %v12691_v43  ;;  %vm12718_vm7 = vcmp.eq.s32.totalorder %v12572_v20, %v8750_v5  ;;  %v12725_v20 = vld [vmem:[#allocation47_spill] sm:$0xff]  ;;  %v4672_v43 = vpop.permute.xlu1 %4671 }
 0x1c3   : > { %7386 = vmatprep.mubr.msk.f32.mxu0 %vm12692_vm8, %v8385_v35  ;;  %vm12720_vm8 = vcmp.eq.s32.totalorder %v12575_v22, %v8750_v5  ;;  %v12727_v22 = vld [vmem:[#allocation52_spill] sm:$0xff] }
 0x1c5   : > { %7000 = vmatmul.mubr.f32.gmra.mrb[16].mxu1 %v12693_v13 }
 0x1c6   : > { %7387 = vmatmul.mubr.msk.f32.gmra.mrb[18].mxu0 %vm12694_vm9, %v8385_v35  ;;  %7002 = vmatprep.mubr.f32.mxu1 %v12695_v60  ;;  %vm12722_vm9 = vcmp.eq.s32.totalorder %v12578_v14, %v8750_v5  ;;  %v12729_v14 = vld [vmem:[#allocation51_spill] sm:$0xff]  ;;  %v4678_v60 = vpop.permute.xlu1 %4677 }
 0x1c7   : > { %7389 = vmatprep.mubr.msk.f32.mxu0 %vm12696_vm11, %v8385_v35  ;;  %vm12724_vm11 = vcmp.eq.s32.totalorder %v12581_v19, %v8750_v5  ;;  %v12731_v19 = vld [vmem:[#allocation56_spill] sm:$0xff] }
 0x1c9   : > { %7003 = vmatmul.mubr.f32.gmra.mrb[18].mxu1 %v12697_v42 }
 0x1ca   : > { %7390 = vmatmul.mubr.msk.f32.gmra.mrb[20].mxu0 %vm12698_vm13, %v8385_v35  ;;  %7005 = vmatprep.mubr.f32.mxu1 %v12699_v1  ;;  %vm12726_vm13 = vcmp.eq.s32.totalorder %v12584_v18, %v8750_v5  ;;  %v12733_v18 = vld [vmem:[#allocation55_spill] sm:$0xff]  ;;  %v10584_v56 = vpop.permute.xlu1 %4680 }
 0x1cb   : > { %7392 = vmatprep.mubr.msk.f32.mxu0 %vm12700_vm12, %v8385_v35  ;;  %vm12728_vm12 = vcmp.eq.s32.totalorder %v12587_v39, %v8750_v5  ;;  %v12735_v39 = vld [vmem:[#allocation60_spill] sm:$0xff] }
 0x1cd   : > { %7006 = vmatmul.mubr.f32.gmra.mrb[20].mxu1 %v12701_v28 }
 0x1ce   : > { %7393 = vmatmul.mubr.msk.f32.gmra.mrb[22].mxu0 %vm12702_vm10, %v8385_v35  ;;  %7008 = vmatprep.mubr.f32.mxu1 %v12703_v44  ;;  %vm12730_vm10 = vcmp.eq.s32.totalorder %v12590_v16, %v8750_v5  ;;  %v12737_v16 = vld [vmem:[#allocation59_spill] sm:$0xff]  ;;  %v10588_v1 = vpop.permute.xlu1 %4683 }
 0x1cf   : > { %7395 = vmatprep.mubr.msk.f32.mxu0 %vm12704_vm0, %v8385_v35  ;;  %vm12732_vm0 = vcmp.eq.s32.totalorder %v12593_v6, %v8750_v5  ;;  %v12739_v6 = vld [vmem:[#allocation64_spill] sm:$0xff] }
 0x1d1   : > { %7009 = vmatmul.mubr.f32.gmra.mrb[22].mxu1 %v12705_v57 }
 0x1d2   : > { %7396 = vmatmul.mubr.msk.f32.gmra.mrb[24].mxu0 %vm12706_vm1, %v8385_v35  ;;  %7011 = vmatprep.mubr.f32.mxu1 %v12707_v37  ;;  %vm12734_vm1 = vcmp.eq.s32.totalorder %v12596_v12, %v8750_v5  ;;  %v12741_v12 = vld [vmem:[#allocation63_spill] sm:$0xff]  ;;  %v10592_v44 = vpop.permute.xlu1 %4686 }
 0x1d3   : > { %7398 = vmatprep.mubr.msk.f32.mxu0 %vm12708_vm2, %v8385_v35  ;;  %vm12736_vm2 = vcmp.eq.s32.totalorder %v12599_v41, %v8750_v5  ;;  %v12743_v41 = vld [vmem:[#allocation68_spill] sm:$0xff] }
 0x1d5   : > { %7012 = vmatmul.mubr.f32.gmra.mrb[24].mxu1 %v12709_v32 }
 0x1d6   : > { %7399 = vmatmul.mubr.msk.f32.gmra.mrb[26].mxu0 %vm12710_vm3, %v8385_v35  ;;  %7014 = vmatprep.mubr.f32.mxu1 %v12711_v59  ;;  %vm12738_vm3 = vcmp.eq.s32.totalorder %v12602_v63, %v8750_v5  ;;  %v12745_v63 = vld [vmem:[#allocation67_spill] sm:$0xff]  ;;  %v10596_v37 = vpop.permute.xlu1 %4689 }
 0x1d7   : > { %7401 = vmatprep.mubr.msk.f32.mxu0 %vm12712_vm4, %v8385_v35  ;;  %vm12740_vm4 = vcmp.eq.s32.totalorder %v12605_v49, %v8750_v5  ;;  %v12747_v49 = vld [vmem:[#allocation72_spill] sm:$0xff] }
 0x1d9   : > { %7015 = vmatmul.mubr.f32.gmra.mrb[26].mxu1 %v12713_v62 }
 0x1da   : > { %7402 = vmatmul.mubr.msk.f32.gmra.mrb[28].mxu0 %vm12714_vm5, %v8385_v35  ;;  %7017 = vmatprep.mubr.f32.mxu1 %v12715_v27  ;;  %vm12742_vm5 = vcmp.eq.s32.totalorder %v12608_v53, %v8750_v5  ;;  %v12749_v53 = vld [vmem:[#allocation71_spill] sm:$0xff]  ;;  %v10600_v59 = vpop.permute.xlu1 %4692 }
 0x1db   : > { %7404 = vmatprep.mubr.msk.f32.mxu0 %vm12716_vm6, %v8385_v35  ;;  %vm12744_vm6 = vcmp.eq.s32.totalorder %v12611_v45, %v8750_v5  ;;  %v12751_v45 = vld [vmem:[#allocation76_spill] sm:$0xff] }
 0x1dd   : > { %7018 = vmatmul.mubr.f32.gmra.mrb[28].mxu1 %v12717_v21 }
 0x1de   : > { %7405 = vmatmul.mubr.msk.f32.gmra.mrb[30].mxu0 %vm12718_vm7, %v8385_v35  ;;  %7020 = vmatprep.mubr.f32.mxu1 %v12719_v46  ;;  %vm12746_vm7 = vcmp.eq.s32.totalorder %v12614_v26, %v8750_v5  ;;  %v12753_v26 = vld [vmem:[#allocation75_spill] sm:$0xff]  ;;  %v10604_v27 = vpop.permute.xlu1 %4695 }
 0x1df   : > { %7407 = vmatprep.mubr.msk.f32.mxu0 %vm12720_vm8, %v8385_v35  ;;  %vm12748_vm8 = vcmp.eq.s32.totalorder %v12617_v33, %v8750_v5  ;;  %v12755_v33 = vld [vmem:[#allocation80_spill] sm:$0xff] }
 0x1e1   : > { %7021 = vmatmul.mubr.f32.gmra.mrb[30].mxu1 %v12721_v54 }
 0x1e2   : > { %7408 = vmatmul.mubr.msk.f32.gmra.mrb[32].mxu0 %vm12722_vm9, %v8385_v35  ;;  %7023 = vmatprep.mubr.f32.mxu1 %v12723_v0  ;;  %vm12750_vm9 = vcmp.eq.s32.totalorder %v12620_v8, %v8750_v5  ;;  %v10495_v8 = vpop.permute.xlu0 %4674  ;;  %v10608_v46 = vpop.permute.xlu1 %4698 }
 0x1e3   : > { %7410 = vmatprep.mubr.msk.f32.mxu0 %vm12724_vm11, %v8385_v35  ;;  %vm12752_vm11 = vcmp.eq.s32.totalorder %v12623_v23, %v8750_v5  ;;  %v12759_v23 = vld [vmem:[#allocation84_spill] sm:$0xff] }
 0x1e5   : > { %7024 = vmatmul.mubr.f32.gmra.mrb[32].mxu1 %v12725_v20 }
 0x1e6   : > { %7411 = vmatmul.mubr.msk.f32.gmra.mrb[34].mxu0 %vm12726_vm13, %v8385_v35  ;;  %7026 = vmatprep.mubr.f32.mxu1 %v12727_v22  ;;  %vm12754_vm13 = vcmp.eq.s32.totalorder %v12626_v36, %v8750_v5  ;;  %v12761_v36 = vld [vmem:[#allocation83_spill] sm:$0xff]  ;;  %v10612_v0 = vpop.permute.xlu1 %4704 }
 0x1e7   : > { %7413 = vmatprep.mubr.msk.f32.mxu0 %vm12728_vm12, %v8385_v35  ;;  %vm12756_vm12 = vcmp.eq.s32.totalorder %v12629_v7, %v8750_v5  ;;  %v10512_v7 = vpop.permute.xlu0 %4701 }
 0x1e9   : > { %7027 = vmatmul.mubr.f32.gmra.mrb[34].mxu1 %v12729_v14 }
 0x1ea   : > { %7414 = vmatmul.mubr.msk.f32.gmra.mrb[36].mxu0 %vm12730_vm10, %v8385_v35  ;;  %7029 = vmatprep.mubr.f32.mxu1 %v12731_v19  ;;  %vm12758_vm10 = vcmp.eq.s32.totalorder %v12632_v10, %v8750_v5  ;;  %v12765_v10 = vld [vmem:[#allocation87_spill] sm:$0xff]  ;;  %v10616_v22 = vpop.permute.xlu1 %4710 }
 0x1eb   : > { %7416 = vmatprep.mubr.msk.f32.mxu0 %vm12732_vm0, %v8385_v35  ;;  %vm12760_vm0 = vcmp.eq.s32.totalorder %v12635_v15, %v8750_v5  ;;  %v12767_v15 = vld [vmem:[#allocation92_spill] sm:$0xff]  ;;  %v10529_v51 = vpop.permute.xlu0 %4707 }
 0x1ed   : > { %7030 = vmatmul.mubr.f32.gmra.mrb[36].mxu1 %v12733_v18 }
 0x1ee   : > { %7417 = vmatmul.mubr.msk.f32.gmra.mrb[38].mxu0 %vm12734_vm1, %v8385_v35  ;;  %7032 = vmatprep.mubr.f32.mxu1 %v12735_v39  ;;  %vm12762_vm1 = vcmp.eq.s32.totalorder %v12638_v11, %v8750_v5  ;;  %v12768_v11 = vld [vmem:[#allocation94_spill] sm:$0xff]  ;;  %v10620_v39 = vpop.permute.xlu1 %4716 }
 0x1ef   : > { %7419 = vmatprep.mubr.msk.f32.mxu0 %vm12736_vm2, %v8385_v35  ;;  %vm12764_vm2 = vcmp.eq.s32.totalorder %v12641_v17, %v8750_v5  ;;  %v12771_v17 = vld [vmem:[#allocation93_spill] sm:$0xff]  ;;  %v10546_v52 = vpop.permute.xlu0 %4713 }
 0x1f1   : > { %7033 = vmatmul.mubr.f32.gmra.mrb[38].mxu1 %v12737_v16 }
 0x1f2   : > { %7420 = vmatmul.mubr.msk.f32.gmra.mrb[40].mxu0 %vm12738_vm3, %v8385_v35  ;;  %7035 = vmatprep.mubr.f32.mxu1 %v12739_v6  ;;  %vm12766_vm3 = vcmp.eq.s32.totalorder %v12644_v55, %v8750_v5  ;;  %v12775_v55 = vld [vmem:[#allocation95_spill] sm:$0xff] }
 0x1f3   : > { %7422 = vmatprep.mubr.msk.f32.mxu0 %vm12740_vm4, %v8385_v35  ;;  %vm12769_vm4 = vcmp.eq.s32.totalorder %v12768_v11, %v8750_v5  ;;  %v10563_v9 = vpop.permute.xlu0 %4719 }
 0x1f5   : > { %7036 = vmatmul.mubr.f32.gmra.mrb[40].mxu1 %v12741_v12 }
 0x1f6   : > { %7423 = vmatmul.mubr.msk.f32.gmra.mrb[42].mxu0 %vm12742_vm5, %v8385_v35  ;;  %7038 = vmatprep.mubr.f32.mxu1 %v12743_v41  ;;  %vm12772_vm5 = vcmp.eq.s32.totalorder %v12771_v17, %v8750_v5 }
 0x1f7   : > { %7425 = vmatprep.mubr.msk.f32.mxu0 %vm12744_vm6, %v8385_v35  ;;  %vm12774_vm6 = vcmp.eq.s32.totalorder %v12653_v30, %v8750_v5  ;;  %v12782_v30 = vld [vmem:[#allocation104_spill] sm:$0xff]  ;;  %v10572_v47 = vpop.permute.xlu0 %4725 }
 0x1f9   : > { %7039 = vmatmul.mubr.f32.gmra.mrb[42].mxu1 %v12745_v63 }
 0x1fa   : > { %7426 = vmatmul.mubr.msk.f32.gmra.mrb[44].mxu0 %vm12746_vm7, %v8385_v35  ;;  %7041 = vmatprep.mubr.f32.mxu1 %v12747_v49  ;;  %vm12777_vm7 = vcmp.eq.s32.totalorder %v12776_v4, %v8750_v5 }
 0x1fb   : > { %7428 = vmatprep.mubr.msk.f32.mxu0 %vm12748_vm8, %v8385_v35  ;;  %vm12779_vm8 = vcmp.eq.s32.totalorder %v12659_v58, %v8750_v5  ;;  %v12785_v58 = vld [vmem:[#allocation108_spill] sm:$0xff]  ;;  %v10574_v3 = vpop.permute.xlu0 %4731 }
 0x1fd   : > { %7042 = vmatmul.mubr.f32.gmra.mrb[44].mxu1 %v12749_v53 }
 0x1fe   : > { %7429 = vmatmul.mubr.msk.f32.gmra.mrb[46].mxu0 %vm12750_vm9, %v8385_v35  ;;  %7044 = vmatprep.mubr.f32.mxu1 %v12751_v45  ;;  %vm12781_vm9 = vcmp.eq.s32.totalorder %v12662_v31, %v8750_v5  ;;  %v12786_v31 = vld [vmem:[#allocation107_spill] sm:$0xff] }
 0x1ff   : > { %7431 = vmatprep.mubr.msk.f32.mxu0 %vm12752_vm11, %v8385_v35  ;;  %v10576_v38 = vpop.permute.xlu0 %4737  ;;  %vm4864_vm11 = vcmp.eq.s32.totalorder %v4678_v60, %v8750_v5 }
 0x201   : > { %7045 = vmatmul.mubr.f32.gmra.mrb[46].mxu1 %v12753_v26 }
 0x202   : > { %7432 = vmatmul.mubr.msk.f32.gmra.mrb[48].mxu0 %vm12754_vm13, %v8385_v35  ;;  %7047 = vmatprep.mubr.f32.mxu1 %v12755_v33  ;;  %vm4867_vm13 = vcmp.eq.s32.totalorder %v10592_v44, %v8750_v5 }
 0x203   : > { %7434 = vmatprep.mubr.msk.f32.mxu0 %vm12756_vm12, %v8385_v35  ;;  %v10578_v40 = vpop.permute.xlu0 %4743  ;;  %vm4865_vm12 = vcmp.eq.s32.totalorder %v10584_v56, %v8750_v5 }
 0x205   : > { %7048 = vmatmul.mubr.f32.gmra.mrb[48].mxu1 %v12757_v34 }
 0x206   : > { %7435 = vmatmul.mubr.msk.f32.gmra.mrb[50].mxu0 %vm12758_vm10, %v8385_v35  ;;  %7050 = vmatprep.mubr.f32.mxu1 %v12759_v23  ;;  %vm4866_vm10 = vcmp.eq.s32.totalorder %v10588_v1, %v8750_v5 }
 0x207   : > { %7437 = vmatprep.mubr.msk.f32.mxu0 %vm12760_vm0, %v8385_v35  ;;  %v10580_v13 = vpop.permute.xlu0 %4749  ;;  %vm4869_vm0 = vcmp.eq.s32.totalorder %v10600_v59, %v8750_v5 }
 0x209   : > { %7051 = vmatmul.mubr.f32.gmra.mrb[50].mxu1 %v12761_v36 }
 0x20a   : > { %7438 = vmatmul.mubr.msk.f32.gmra.mrb[52].mxu0 %vm12762_vm1, %v8385_v35  ;;  %7053 = vmatprep.mubr.f32.mxu1 %v12763_v29  ;;  %vm4868_vm1 = vcmp.eq.s32.totalorder %v10596_v37, %v8750_v5 }
 0x20b   : > { %7440 = vmatprep.mubr.msk.f32.mxu0 %vm12764_vm2, %v8385_v35  ;;  %v10582_v42 = vpop.permute.xlu0 %4755  ;;  %vm4871_vm2 = vcmp.eq.s32.totalorder %v10608_v46, %v8750_v5 }
 0x20d   : > { %7054 = vmatmul.mubr.f32.gmra.mrb[52].mxu1 %v12765_v10  ;;  %v10642_v10 = vpop.permute.xlu1 %4722 }
 0x20e   : > { %7441 = vmatmul.mubr.msk.f32.gmra.mrb[54].mxu0 %vm12766_vm3, %v8385_v35  ;;  %7056 = vmatprep.mubr.f32.mxu1 %v12767_v15  ;;  %vm4870_vm3 = vcmp.eq.s32.totalorder %v10604_v27, %v8750_v5 }
 0x20f   : > { %7443 = vmatprep.mubr.msk.f32.mxu0 %vm12769_vm4, %v8385_v35  ;;  %vm4873_vm4 = vcmp.eq.s32.totalorder %v10612_v0, %v8750_v5 }
 0x211   : > { %7057 = vmatmul.mubr.f32.gmra.mrb[54].mxu1 %v12770_v61 }
 0x212   : > { %7444 = vmatmul.mubr.msk.f32.gmra.mrb[56].mxu0 %vm12772_vm5, %v8385_v35  ;;  %7059 = vmatprep.mubr.f32.mxu1 %v12773_v48  ;;  %vm4872_vm5 = vcmp.eq.s32.totalorder %v10512_v7, %v8750_v5 }
 0x213   : > { %7446 = vmatprep.mubr.msk.f32.mxu0 %vm12774_vm6, %v8385_v35  ;;  %vm4875_vm6 = vcmp.eq.s32.totalorder %v10616_v22, %v8750_v5 }
 0x215   : > { %7060 = vmatmul.mubr.f32.gmra.mrb[56].mxu1 %v12775_v55 }
 0x216   : > { %7447 = vmatmul.mubr.msk.f32.gmra.mrb[58].mxu0 %vm12777_vm7, %v8385_v35  ;;  %7062 = vmatprep.mubr.f32.mxu1 %v12778_v2  ;;  %vm4874_vm7 = vcmp.eq.s32.totalorder %v10529_v51, %v8750_v5 }
 0x217   : > { %7449 = vmatprep.mubr.msk.f32.mxu0 %vm12779_vm8, %v8385_v35  ;;  %vm4877_vm8 = vcmp.eq.s32.totalorder %v10620_v39, %v8750_v5 }
 0x219   : > { %7063 = vmatmul.mubr.f32.gmra.mrb[58].mxu1 %v12780_v50 }
 0x21a   : > { %7450 = vmatmul.mubr.msk.f32.gmra.mrb[60].mxu0 %vm12781_vm9, %v8385_v35  ;;  %7065 = vmatprep.mubr.f32.mxu1 %v12782_v30  ;;  %vm4876_vm9 = vcmp.eq.s32.totalorder %v10546_v52, %v8750_v5 }
 0x21b   : > { %7452 = vmatprep.mubr.msk.f32.mxu0 %vm534_vm15, %v8385_v35  ;;  %vm4862_vm15 = vcmp.eq.s32.totalorder %v4672_v43, %v8750_v5  ;;  %v10659_v43 = vpop.permute.xlu1 %4728 }
 0x21d   : > { %7066 = vmatmul.mubr.f32.gmra.mrb[60].mxu1 %v12784_v24 }
 0x21e   : > { %7453 = vmatmul.mubr.msk.f32.gmra.mrb[62].mxu0 %vm535_vm14, %v8385_v35  ;;  %7068 = vmatprep.mubr.f32.mxu1 %v12785_v58  ;;  %v10586_v35 = vpop.permute.xlu0 %4761  ;;  %vm4863_vm14 = vcmp.eq.s32.totalorder %v10495_v8, %v8750_v5 }
 0x221   : > { %7069 = vmatmul.mubr.f32.gmra.mrb[62].mxu1 %v12786_v31 }
 0x222   : > { %v10590_v28 = vpop.permute.xlu0 %4767 }
 0x226   : > { %v10594_v57 = vpop.permute.xlu0 %4773 }
 0x227   : > { %12787 = vst [vmem:[#allocation10_spill] sm:$0xff] %v10594_v57 }
 0x22a   : > { %v10598_v32 = vpop.permute.xlu0 %4776 }
 0x22b   : > { %12788 = vst [vmem:[#allocation17_spill] sm:$0xff] %v10598_v32 }
 0x22e   : > { %v10602_v62 = vpop.permute.xlu0 %4785 }
 0x22f   : > { %12789 = vst [vmem:[#allocation21_spill] sm:$0xff] %v10602_v62 }
 0x232   : > { %v10606_v21 = vpop.permute.xlu0 %4794 }
 0x233   : > { %12790 = vst [vmem:[#allocation2_spill] sm:$0xff] %v10606_v21 }
 0x236   : > { %v10610_v54 = vpop.permute.xlu0 %4797 }
 0x23a   : > { %v10614_v20 = vpop.permute.xlu0 %4800 }
 0x23b   : > { %12791 = vst [vmem:[#allocation20_spill] sm:$0xff] %v10614_v20 }
 0x23e   : > { %v10618_v19 = vpop.permute.xlu0 %4803 }
 0x242   : > { %v10631_v53 = vpop.permute.xlu0 %4806 }
 0x243   : > { %12792 = vst [vmem:[#allocation3_spill] sm:$0xff] %v10631_v53 }
 0x246   : > { %v10651_v2 = vpop.permute.xlu0 %4809 }
 0x275   : > { %v7361_v14 = vpop.f32.mrb[0].mxu0 }
 0x276   : > { %v3648_v18 = vpop.f32.mrb[1].mxu0 }
 0x278   : > { %v6977_v16 = vpop.f32.mrb[0].mxu1 }
 0x279   : > { %v7364_v6 = vpop.f32.mrb[2].mxu0  ;;  %v10629_v12 = vadd.f32 %v7361_v14, %v6977_v16  ;;  %v2030_v41 = vpop.f32.mrb[1].mxu1 }
 0x27a   : > { %v3660_v63 = vpop.f32.mrb[3].mxu0  ;;  %v7648_v49 = vadd.f32 %v3648_v18, %v2030_v41 }
 0x27b   : > { %5708 = vst [vmem:[%s10627_s7 + $0x8] sm:$0xff] %v10629_v12  ;;  %4032 = vmax.xlane.f32.xlu1 %v10629_v12  ;;  %v4927_v8 = vsel %vm4863_vm14, %v10629_v12, 0.0 }
 0x27c   : > { %5707 = vst [vmem:[%s10627_s7] sm:$0xff] %v7648_v49  ;;  %4030 = vmax.xlane.f32.xlu0 %v7648_v49  ;;  %v6980_v26 = vpop.f32.mrb[2].mxu1  ;;  %v4926_v29 = vsel %vm4862_vm15, %v7648_v49, 0.0  ;;  %v10673_v49 = vpop.permute.xlu0 %4812  ;;  %vm4879_vm15 = vcmp.eq.s32.totalorder %v10642_v10, %v8750_v5 }
 0x27d   : > { %v7367_v45 = vpop.f32.mrb[4].mxu0  ;;  %v10640_v33 = vadd.f32 %v7364_v6, %v6980_v26  ;;  %v2044_v34 = vpop.f32.mrb[3].mxu1  ;;  %12794 = vst [vmem:[#allocation38_spill] sm:$0xff] %v10673_v49 }
 0x27e   : > { %v3672_v23 = vpop.f32.mrb[5].mxu0  ;;  %v7650_v36 = vadd.f32 %v3660_v63, %v2044_v34 }
 0x27f   : > { %5710 = vst [vmem:[%s10627_s7 + $0x18] sm:$0xff] %v10640_v33  ;;  %4990 = vadd.xlane.f32.xlu1 %v4926_v29  ;;  %v4929_v44 = vsel %vm4865_vm12, %v10640_v33, 0.0  ;;  %vm4880_vm12 = vcmp.eq.s32.totalorder %v10572_v47, %v8750_v5 }
 0x280   : > { %5709 = vst [vmem:[%s10627_s7 + $0x10] sm:$0xff] %v7650_v36  ;;  %v6983_v15 = vpop.f32.mrb[4].mxu1  ;;  %4992 = vadd.xlane.f32.xlu0 %v4927_v8  ;;  %v4928_v4 = vsel %vm4864_vm11, %v7650_v36, 0.0  ;;  %v10686_v8 = vpop.permute.xlu1 %4734  ;;  %vm4878_vm11 = vcmp.eq.s32.totalorder %v10563_v9, %v8750_v5 }
 0x281   : > { %v7370_v11 = vpop.f32.mrb[6].mxu0  ;;  %v10649_v61 = vadd.f32 %v7367_v45, %v6983_v15  ;;  %v2058_v17 = vpop.f32.mrb[5].mxu1 }
 0x282   : > { %v3684_v48 = vpop.f32.mrb[7].mxu0  ;;  %v7652_v55 = vadd.f32 %v3672_v23, %v2058_v17 }
 0x283   : > { %5712 = vst [vmem:[%s10627_s7 + $0x28] sm:$0xff] %v10649_v61  ;;  %4994 = vadd.xlane.f32.xlu1 %v4928_v4  ;;  %v4931_v63 = vsel %vm4867_vm13, %v10649_v61, 0.0  ;;  %vm4881_vm13 = vcmp.eq.s32.totalorder %v10659_v43, %v8750_v5 }
 0x284   : > { %5711 = vst [vmem:[%s10627_s7 + $0x20] sm:$0xff] %v7652_v55  ;;  %v6986_v50 = vpop.f32.mrb[6].mxu1  ;;  %4036 = vmax.xlane.f32.xlu0 %v10640_v33  ;;  %v4930_v29 = vsel %vm4866_vm10, %v7652_v55, 0.0 }
 0x285   : > { %v7373_v30 = vpop.f32.mrb[8].mxu0  ;;  %v10657_v25 = vadd.f32 %v7370_v11, %v6986_v50  ;;  %v2072_v24 = vpop.f32.mrb[7].mxu1 }
 0x286   : > { %v3696_v58 = vpop.f32.mrb[9].mxu0  ;;  %v7654_v31 = vadd.f32 %v3684_v48, %v2072_v24  ;;  %v10697_v50 = vpop.permute.xlu0 %4815 }
 0x287   : > { %5714 = vst [vmem:[%s10627_s7 + $0x38] sm:$0xff] %v10657_v25  ;;  %4038 = vmax.xlane.f32.xlu1 %v7652_v55 }
 0x288   : > { %5713 = vst [vmem:[%s10627_s7 + $0x30] sm:$0xff] %v7654_v31  ;;  %v6989_v60 = vpop.f32.mrb[8].mxu1  ;;  %4034 = vmax.xlane.f32.xlu0 %v7650_v36 }
 0x289   : > { %v7376_v14 = vpop.f32.mrb[10].mxu0  ;;  %v10666_v18 = vadd.f32 %v7373_v30, %v6989_v60  ;;  %v2086_v16 = vpop.f32.mrb[9].mxu1 }
 0x28a   : > { %v3708_v6 = vpop.f32.mrb[11].mxu0  ;;  %v10670_v41 = vadd.f32 %v3696_v58, %v2086_v16  ;;  %v4933_v16 = vsel %vm4869_vm0, %v10657_v25, 0.0  ;;  %vm4883_vm0 = vcmp.eq.s32.totalorder %v10686_v8, %v8750_v5 }
 0x28b   : > { %12793 = vst [vmem:[#allocation34_spill] sm:$0xff] %v10666_v18  ;;  %5716 = vst [vmem:[%s10627_s7 + $0x48] sm:$0xff] %v10666_v18  ;;  %5000 = vadd.xlane.f32.xlu1 %v4931_v63  ;;  %v4932_v63 = vsel %vm4868_vm1, %v7654_v31, 0.0  ;;  %vm4882_vm1 = vcmp.eq.s32.totalorder %v10574_v3, %v8750_v5 }
 0x28c   : > { %5715 = vst [vmem:[%s10627_s7 + $0x40] sm:$0xff] %v10670_v41  ;;  %v6992_v45 = vpop.f32.mrb[10].mxu1  ;;  %4996 = vadd.xlane.f32.xlu0 %v4929_v44 }
 0x28d   : > { %v7379_v26 = vpop.f32.mrb[12].mxu0  ;;  %v10682_v56 = vadd.f32 %v7376_v14, %v6992_v45  ;;  %v2100_v34 = vpop.f32.mrb[11].mxu1 }
 0x28e   : > { %v3720_v23 = vpop.f32.mrb[13].mxu0  ;;  %v10684_v36 = vadd.f32 %v3708_v6, %v2100_v34  ;;  %v10713_v6 = vpop.permute.xlu1 %4740 }
 0x28f   : > { %12795 = vst [vmem:[#allocation37_spill] sm:$0xff] %v10682_v56  ;;  %5718 = vst [vmem:[%s10627_s7 + $0x58] sm:$0xff] %v10682_v56  ;;  %4998 = vadd.xlane.f32.xlu1 %v4930_v29 }
 0x290   : > { %5717 = vst [vmem:[%s10627_s7 + $0x50] sm:$0xff] %v10684_v36  ;;  %v6995_v15 = vpop.f32.mrb[12].mxu1  ;;  %4040 = vmax.xlane.f32.xlu0 %v10649_v61  ;;  %v4936_v7 = vsel %vm4872_vm5, %v10684_v36, 0.0  ;;  %vm4884_vm5 = vcmp.eq.s32.totalorder %v10576_v38, %v8750_v5 }
 0x291   : > { %v7382_v11 = vpop.f32.mrb[14].mxu0  ;;  %v10693_v1 = vadd.f32 %v7379_v26, %v6995_v15  ;;  %v2114_v17 = vpop.f32.mrb[13].mxu1 }
 0x292   : > { %v3732_v48 = vpop.f32.mrb[15].mxu0  ;;  %v10695_v4 = vadd.f32 %v3720_v23, %v2114_v17  ;;  %v10723_v23 = vpop.permute.xlu0 %4818 }
 0x293   : > { %12796 = vst [vmem:[#allocation42_spill] sm:$0xff] %v10693_v1  ;;  %5720 = vst [vmem:[%s10627_s7 + $0x68] sm:$0xff] %v10693_v1  ;;  %4042 = vmax.xlane.f32.xlu1 %v7654_v31  ;;  %v4939_v20 = vsel %vm4875_vm6, %v10693_v1, 0.0  ;;  %vm4908_vm6 = vcmp.eq.s32.totalorder %v10651_v2, %v8750_v5 }
 0x294   : > { %5719 = vst [vmem:[%s10627_s7 + $0x60] sm:$0xff] %v10695_v4  ;;  %v6998_v55 = vpop.f32.mrb[14].mxu1  ;;  %4044 = vmax.xlane.f32.xlu0 %v10657_v25  ;;  %12798 = vst [vmem:[#allocation46_spill] sm:$0xff] %v10723_v23  ;;  %v4938_v51 = vsel %vm4874_vm7, %v10695_v4, 0.0 }
 0x295   : > { %v7385_v30 = vpop.f32.mrb[16].mxu0  ;;  %v10706_v24 = vadd.f32 %v7382_v11, %v6998_v55  ;;  %v2128_v58 = vpop.f32.mrb[15].mxu1  ;;  %v4935_v55 = vsel %vm4871_vm2, %v10666_v18, 0.0  ;;  %vm4904_vm2 = vcmp.eq.s32.totalorder %v10610_v54, %v8750_v5 }
 0x296   : > { %v3744_v60 = vpop.f32.mrb[17].mxu0  ;;  %v10710_v14 = vadd.f32 %v3732_v48, %v2128_v58 }
 0x297   : > { %12797 = vst [vmem:[#allocation41_spill] sm:$0xff] %v10706_v24  ;;  %5722 = vst [vmem:[%s10627_s7 + $0x78] sm:$0xff] %v10706_v24  ;;  %5004 = vadd.xlane.f32.xlu1 %v4933_v16 }
 0x298   : > { %5721 = vst [vmem:[%s10627_s7 + $0x70] sm:$0xff] %v10710_v14  ;;  %v7001_v59 = vpop.f32.mrb[16].mxu1  ;;  %5002 = vadd.xlane.f32.xlu0 %v4932_v63  ;;  %v4940_v52 = vsel %vm4876_vm9, %v10710_v14, 0.0  ;;  %vm4910_vm9 = vcmp.eq.s32.totalorder %v10697_v50, %v8750_v5 }
 0x299   : > { %v7388_v44 = vpop.f32.mrb[18].mxu0  ;;  %v10719_v45 = vadd.f32 %v7385_v30, %v7001_v59  ;;  %v2142_v37 = vpop.f32.mrb[17].mxu1 }
 0x29a   : > { %v3756_v26 = vpop.f32.mrb[19].mxu0  ;;  %v10721_v34 = vadd.f32 %v3744_v60, %v2142_v37  ;;  %v10738_v30 = vpop.permute.xlu1 %4746 }
 0x29b   : > { %5724 = vst [vmem:[%s10627_s7 + $0x88] sm:$0xff] %v10719_v45  ;;  %4046 = vmax.xlane.f32.xlu1 %v10670_v41  ;;  %v10752_v37 = vpop.permute.xlu0 %4821  ;;  %vm4887_vm7 = vcmp.eq.s32.totalorder %v10738_v30, %v8750_v5 }
 0x29c   : > { %5723 = vst [vmem:[%s10627_s7 + $0x80] sm:$0xff] %v10721_v34  ;;  %v7004_v31 = vpop.f32.mrb[18].mxu1  ;;  %4048 = vmax.xlane.f32.xlu0 %v10666_v18  ;;  %v4942_v9 = vsel %vm4878_vm11, %v10721_v34, 0.0  ;;  %vm4888_vm11 = vcmp.eq.s32.totalorder %v10580_v13, %v8750_v5 }
 0x29d   : > { %v7391_v29 = vpop.f32.mrb[20].mxu0  ;;  %v10733_v15 = vadd.f32 %v7388_v44, %v7004_v31  ;;  %v2156_v11 = vpop.f32.mrb[19].mxu1  ;;  %v4934_v44 = vsel %vm4870_vm3, %v10670_v41, 0.0  ;;  %vm4885_vm3 = vcmp.eq.s32.totalorder %v10713_v6, %v8750_v5 }
 0x29e   : > { %v3768_v17 = vpop.f32.mrb[21].mxu0  ;;  %v10735_v48 = vadd.f32 %v3756_v26, %v2156_v11 }
 0x29f   : > { %12799 = vst [vmem:[#allocation45_spill] sm:$0xff] %v10733_v15  ;;  %5726 = vst [vmem:[%s10627_s7 + $0x98] sm:$0xff] %v10733_v15  ;;  %5008 = vadd.xlane.f32.xlu1 %v4935_v55  ;;  %v10763_v55 = vpop.permute.xlu1 %4752 }
 0x2a0   : > { %5725 = vst [vmem:[%s10627_s7 + $0x90] sm:$0xff] %v10735_v48  ;;  %v7007_v58 = vpop.f32.mrb[20].mxu1  ;;  %4052 = vmax.xlane.f32.xlu0 %v10682_v56  ;;  %v4944_v47 = vsel %vm4880_vm12, %v10735_v48, 0.0 }
 0x2a1   : > { %v7394_v60 = vpop.f32.mrb[22].mxu0  ;;  %v10747_v46 = vadd.f32 %v7391_v29, %v7007_v58  ;;  %v2170_v16 = vpop.f32.mrb[21].mxu1 }
 0x2a2   : > { %v3780_v63 = vpop.f32.mrb[23].mxu0  ;;  %v10749_v59 = vadd.f32 %v3768_v17, %v2170_v16 }
 0x2a3   : > { %5728 = vst [vmem:[%s10627_s7 + $0xa8] sm:$0xff] %v10747_v46  ;;  %5006 = vadd.xlane.f32.xlu1 %v4934_v44 }
 0x2a4   : > { %5727 = vst [vmem:[%s10627_s7 + $0xa0] sm:$0xff] %v10749_v59  ;;  %v7010_v26 = vpop.f32.mrb[22].mxu1  ;;  %4056 = vmax.xlane.f32.xlu0 %v10693_v1  ;;  %v4946_v3 = vsel %vm4882_vm1, %v10749_v59, 0.0  ;;  %vm4892_vm1 = vcmp.eq.s32.totalorder %v10586_v35, %v8750_v5 }
 0x2a5   : > { %v7397_v31 = vpop.f32.mrb[24].mxu0  ;;  %v10759_v27 = vadd.f32 %v7394_v60, %v7010_v26  ;;  %v2184_v29 = vpop.f32.mrb[23].mxu1  ;;  %v4937_v26 = vsel %vm4873_vm4, %v10682_v56, 0.0  ;;  %vm4906_vm4 = vcmp.eq.s32.totalorder %v10618_v19, %v8750_v5 }
 0x2a6   : > { %v3792_v11 = vpop.f32.mrb[25].mxu0  ;;  %v10761_v17 = vadd.f32 %v3780_v63, %v2184_v29  ;;  %v10780_v29 = vpop.permute.xlu0 %4824 }
 0x2a7   : > { %5730 = vst [vmem:[%s10627_s7 + $0xb8] sm:$0xff] %v10759_v27  ;;  %4050 = vmax.xlane.f32.xlu1 %v10684_v36  ;;  %12800 = vst [vmem:[#allocation50_spill] sm:$0xff] %v10780_v29  ;;  %v10792_v29 = vpop.permute.xlu1 %4758 }
 0x2a8   : > { %5729 = vst [vmem:[%s10627_s7 + $0xb0] sm:$0xff] %v10761_v17  ;;  %v7013_v41 = vpop.f32.mrb[24].mxu1  ;;  %4060 = vmax.xlane.f32.xlu0 %v10706_v24  ;;  %vm4891_vm12 = vcmp.eq.s32.totalorder %v10792_v29, %v8750_v5 }
 0x2a9   : > { %v7400_v58 = vpop.f32.mrb[26].mxu0  ;;  %v10773_v60 = vadd.f32 %v7397_v31, %v7013_v41  ;;  %v2198_v16 = vpop.f32.mrb[25].mxu1 }
 0x2aa   : > { %v3804_v63 = vpop.f32.mrb[27].mxu0  ;;  %v10775_v44 = vadd.f32 %v3792_v11, %v2198_v16 }
 0x2ab   : > { %5732 = vst [vmem:[%s10627_s7 + $0xc8] sm:$0xff] %v10773_v60  ;;  %5012 = vadd.xlane.f32.xlu1 %v4937_v26  ;;  %v10820_v21 = vpop.permute.xlu1 %4764 }
 0x2ac   : > { %5731 = vst [vmem:[%s10627_s7 + $0xc0] sm:$0xff] %v10775_v44  ;;  %v7016_v0 = vpop.f32.mrb[26].mxu1  ;;  %4064 = vmax.xlane.f32.xlu0 %v10719_v45  ;;  %vm4893_vm14 = vcmp.eq.s32.totalorder %v10820_v21, %v8750_v5 }
 0x2ad   : > { %v7403_v31 = vpop.f32.mrb[28].mxu0  ;;  %v10787_v11 = vadd.f32 %v7400_v58, %v7016_v0  ;;  %v2212_v41 = vpop.f32.mrb[27].mxu1 }
 0x2ae   : > { %v3816_v16 = vpop.f32.mrb[29].mxu0  ;;  %v10789_v23 = vadd.f32 %v3804_v63, %v2212_v41  ;;  %v10803_v41 = vpop.permute.xlu0 %4827 }
 0x2af   : > { %5734 = vst [vmem:[%s10627_s7 + $0xd8] sm:$0xff] %v10787_v11  ;;  %5010 = vadd.xlane.f32.xlu1 %v4936_v7 }
 0x2b0   : > { %5733 = vst [vmem:[%s10627_s7 + $0xd0] sm:$0xff] %v10789_v23  ;;  %v7019_v26 = vpop.f32.mrb[28].mxu1  ;;  %4068 = vmax.xlane.f32.xlu0 %v10733_v15 }
 0x2b1   : > { %v7406_v49 = vpop.f32.mrb[30].mxu0  ;;  %v10799_v58 = vadd.f32 %v7403_v31, %v7019_v26  ;;  %v2226_v0 = vpop.f32.mrb[29].mxu1 }
 0x2b2   : > { %v3828_v53 = vpop.f32.mrb[31].mxu0  ;;  %v10801_v63 = vadd.f32 %v3816_v16, %v2226_v0  ;;  %v10832_v57 = vpop.permute.xlu0 %4830 }
 0x2b3   : > { %5736 = vst [vmem:[%s10627_s7 + $0xe8] sm:$0xff] %v10799_v58  ;;  %4054 = vmax.xlane.f32.xlu1 %v10695_v4  ;;  %12802 = vst [vmem:[#allocation54_spill] sm:$0xff] %v10832_v57  ;;  %v4941_v57 = vsel %vm4877_vm8, %v10706_v24, 0.0  ;;  %vm4886_vm8 = vcmp.eq.s32.totalorder %v10578_v40, %v8750_v5 }
 0x2b4   : > { %5735 = vst [vmem:[%s10627_s7 + $0xe0] sm:$0xff] %v10801_v63  ;;  %v7022_v36 = vpop.f32.mrb[30].mxu1  ;;  %4072 = vmax.xlane.f32.xlu0 %v10747_v46  ;;  %v4950_v2 = vsel %vm4886_vm8, %v10775_v44, 0.0 }
 0x2b5   : > { %v7409_v7 = vpop.f32.mrb[32].mxu0  ;;  %v10813_v31 = vadd.f32 %v7406_v49, %v7022_v36  ;;  %v2240_v16 = vpop.f32.mrb[31].mxu1 }
 0x2b6   : > { %v3840_v26 = vpop.f32.mrb[33].mxu0  ;;  %v10815_v0 = vadd.f32 %v3828_v53, %v2240_v16 }
 0x2b7   : > { %12801 = vst [vmem:[#allocation49_spill] sm:$0xff] %v10813_v31  ;;  %5738 = vst [vmem:[%s10627_s7 + $0xf8] sm:$0xff] %v10813_v31  ;;  %5016 = vadd.xlane.f32.xlu1 %v4939_v20 }
 0x2b8   : > { %5737 = vst [vmem:[%s10627_s7 + $0xf0] sm:$0xff] %v10815_v0  ;;  %v7025_v22 = vpop.f32.mrb[32].mxu1  ;;  %4076 = vmax.xlane.f32.xlu0 %v10759_v27 }
 0x2b9   : > { %v7412_v49 = vpop.f32.mrb[34].mxu0  ;;  %v10827_v53 = vadd.f32 %v7409_v7, %v7025_v22  ;;  %v2254_v36 = vpop.f32.mrb[33].mxu1 }
 0x2ba   : > { %v3852_v16 = vpop.f32.mrb[35].mxu0  ;;  %v10829_v62 = vadd.f32 %v3840_v26, %v2254_v36  ;;  %v10843_v36 = vpop.permute.xlu1 %4770 }
 0x2bb   : > { %5740 = vst [vmem:[%s10627_s7 + $0x108] sm:$0xff] %v10827_v53  ;;  %5014 = vadd.xlane.f32.xlu1 %v4938_v51 }
 0x2bc   : > { %5739 = vst [vmem:[%s10627_s7 + $0x100] sm:$0xff] %v10829_v62  ;;  %v7028_v20 = vpop.f32.mrb[34].mxu1  ;;  %4080 = vmax.xlane.f32.xlu0 %v10773_v60 }
 0x2bd   : > { %v7415_v1 = vpop.f32.mrb[36].mxu0  ;;  %v10839_v7 = vadd.f32 %v7412_v49, %v7028_v20  ;;  %v2268_v22 = vpop.f32.mrb[35].mxu1 }
 0x2be   : > { %v3864_v32 = vpop.f32.mrb[37].mxu0  ;;  %v10841_v26 = vadd.f32 %v3852_v16, %v2268_v22  ;;  %v10872_v56 = vpop.permute.xlu1 %4779 }
 0x2bf   : > { %5742 = vst [vmem:[%s10627_s7 + $0x118] sm:$0xff] %v10839_v7  ;;  %4058 = vmax.xlane.f32.xlu1 %v10710_v14  ;;  %12808 = vst [vmem:[#allocation66_spill] sm:$0xff] %v10872_v56 }
 0x2c0   : > { %12803 = vst [vmem:[#allocation53_spill] sm:$0xff] %v10841_v26  ;;  %5741 = vst [vmem:[%s10627_s7 + $0x110] sm:$0xff] %v10841_v26  ;;  %v7031_v4 = vpop.f32.mrb[36].mxu1  ;;  %4084 = vmax.xlane.f32.xlu0 %v10787_v11  ;;  %v10860_v26 = vpop.permute.xlu0 %4833 }
 0x2c1   : > { %v7418_v51 = vpop.f32.mrb[38].mxu0  ;;  %v10853_v49 = vadd.f32 %v7415_v1, %v7031_v4  ;;  %v2282_v16 = vpop.f32.mrb[37].mxu1 }
 0x2c2   : > { %v3876_v20 = vpop.f32.mrb[39].mxu0  ;;  %v10855_v22 = vadd.f32 %v3864_v32, %v2282_v16 }
 0x2c3   : > { %12804 = vst [vmem:[#allocation58_spill] sm:$0xff] %v10853_v49  ;;  %5744 = vst [vmem:[%s10627_s7 + $0x128] sm:$0xff] %v10853_v49  ;;  %5020 = vadd.xlane.f32.xlu1 %v4941_v57 }
 0x2c4   : > { %12805 = vst [vmem:[#allocation57_spill] sm:$0xff] %v10855_v22  ;;  %5743 = vst [vmem:[%s10627_s7 + $0x120] sm:$0xff] %v10855_v22  ;;  %v7034_v39 = vpop.f32.mrb[38].mxu1  ;;  %4088 = vmax.xlane.f32.xlu0 %v10799_v58 }
 0x2c5   : > { %v7421_v1 = vpop.f32.mrb[40].mxu0  ;;  %v10867_v32 = vadd.f32 %v7418_v51, %v7034_v39  ;;  %v2296_v4 = vpop.f32.mrb[39].mxu1 }
 0x2c6   : > { %v3888_v16 = vpop.f32.mrb[41].mxu0  ;;  %v10869_v24 = vadd.f32 %v3876_v20, %v2296_v4  ;;  %v10885_v20 = vpop.permute.xlu0 %4836  ;;  %v4957_v4 = vsel %vm4893_vm14, %v10813_v31, 0.0  ;;  %vm4889_vm14 = vcmp.eq.s32.totalorder %v10763_v55, %v8750_v5  ;;  %v4952_v55 = vsel %vm4888_vm11, %v10789_v23, 0.0 }
 0x2c7   : > { %12806 = vst [vmem:[#allocation62_spill] sm:$0xff] %v10867_v32  ;;  %5746 = vst [vmem:[%s10627_s7 + $0x138] sm:$0xff] %v10867_v32  ;;  %5018 = vadd.xlane.f32.xlu1 %v4940_v52  ;;  %v4953_v50 = vsel %vm4889_vm14, %v10787_v11, 0.0 }
 0x2c8   : > { %12807 = vst [vmem:[#allocation61_spill] sm:$0xff] %v10869_v24  ;;  %5745 = vst [vmem:[%s10627_s7 + $0x130] sm:$0xff] %v10869_v24  ;;  %v7037_v57 = vpop.f32.mrb[40].mxu1  ;;  %4092 = vmax.xlane.f32.xlu0 %v10813_v31  ;;  %v10902_v31 = vpop.permute.xlu1 %4782 }
 0x2c9   : > { %v7424_v22 = vpop.f32.mrb[42].mxu0  ;;  %v10879_v51 = vadd.f32 %v7421_v1, %v7037_v57  ;;  %v2310_v39 = vpop.f32.mrb[41].mxu1  ;;  %12810 = vst [vmem:[#allocation70_spill] sm:$0xff] %v10885_v20  ;;  %v4943_v20 = vsel %vm4879_vm15, %v10719_v45, 0.0  ;;  %12812 = vst [vmem:[#allocation74_spill] sm:$0xff] %v10902_v31  ;;  %vm4912_vm15 = vcmp.eq.s32.totalorder %v10752_v37, %v8750_v5 }
 0x2ca   : > { %v3900_v18 = vpop.f32.mrb[43].mxu0  ;;  %v10883_v14 = vadd.f32 %v3888_v16, %v2310_v39  ;;  %v10914_v24 = vpop.permute.xlu0 %4839 }
 0x2cb   : > { %12809 = vst [vmem:[#allocation65_spill] sm:$0xff] %v10879_v51  ;;  %5748 = vst [vmem:[%s10627_s7 + $0x148] sm:$0xff] %v10879_v51  ;;  %4062 = vmax.xlane.f32.xlu1 %v10721_v34 }
 0x2cc   : > { %5747 = vst [vmem:[%s10627_s7 + $0x140] sm:$0xff] %v10883_v14  ;;  %v7040_v1 = vpop.f32.mrb[42].mxu1  ;;  %5052 = vadd.xlane.f32.xlu0 %v4957_v4  ;;  %12813 = vst [vmem:[#allocation73_spill] sm:$0xff] %v10914_v24  ;;  %v4945_v24 = vsel %vm4881_vm13, %v10733_v15, 0.0  ;;  %vm4914_vm13 = vcmp.eq.s32.totalorder %v10803_v41, %v8750_v5 }
 0x2cd   : > { %v7427_v52 = vpop.f32.mrb[44].mxu0  ;;  %v10895_v21 = vadd.f32 %v7424_v22, %v7040_v1  ;;  %v2324_v16 = vpop.f32.mrb[43].mxu1 }
 0x2ce   : > { %v3912_v57 = vpop.f32.mrb[45].mxu0  ;;  %v10897_v39 = vadd.f32 %v3900_v18, %v2324_v16 }
 0x2cf   : > { %12811 = vst [vmem:[#allocation69_spill] sm:$0xff] %v10895_v21  ;;  %5750 = vst [vmem:[%s10627_s7 + $0x158] sm:$0xff] %v10895_v21  ;;  %5024 = vadd.xlane.f32.xlu1 %v4943_v20 }
 0x2d0   : > { %5749 = vst [vmem:[%s10627_s7 + $0x150] sm:$0xff] %v10897_v39  ;;  %v7043_v10 = vpop.f32.mrb[44].mxu1  ;;  %4096 = vmax.xlane.f32.xlu0 %v10827_v53 }
 0x2d1   : > { %v7430_v22 = vpop.f32.mrb[46].mxu0  ;;  %v10909_v18 = vadd.f32 %v7427_v52, %v7043_v10  ;;  %v2338_v4 = vpop.f32.mrb[45].mxu1 }
 0x2d2   : > { %v3924_v1 = vpop.f32.mrb[47].mxu0  ;;  %v10911_v16 = vadd.f32 %v3912_v57, %v2338_v4  ;;  %v10925_v4 = vpop.permute.xlu1 %4788 }
 0x2d3   : > { %5752 = vst [vmem:[%s10627_s7 + $0x168] sm:$0xff] %v10909_v18  ;;  %5022 = vadd.xlane.f32.xlu1 %v4942_v9  ;;  %12814 = vst [vmem:[#allocation78_spill] sm:$0xff] %v10925_v4  ;;  %v10942_v4 = vpop.permute.xlu0 %4842 }
 0x2d4   : > { %5751 = vst [vmem:[%s10627_s7 + $0x160] sm:$0xff] %v10911_v16  ;;  %v7046_v20 = vpop.f32.mrb[46].mxu1  ;;  %4100 = vmax.xlane.f32.xlu0 %v10839_v7  ;;  %12815 = vst [vmem:[#allocation77_spill] sm:$0xff] %v10942_v4  ;;  %v4970_v6 = vsel %vm4906_vm4, %v10911_v16, 0.0 }
 0x2d5   : > { %v7433_v56 = vpop.f32.mrb[48].mxu0  ;;  %v10921_v52 = vadd.f32 %v7430_v22, %v7046_v20  ;;  %v2352_v10 = vpop.f32.mrb[47].mxu1 }
 0x2d6   : > { %v3936_v31 = vpop.f32.mrb[49].mxu0  ;;  %v10923_v57 = vadd.f32 %v3924_v1, %v2352_v10  ;;  %v4792_v15 = vpop.permute.xlu1 %4791 }
 0x2d7   : > { %5754 = vst [vmem:[%s10627_s7 + $0x178] sm:$0xff] %v10921_v52  ;;  %4066 = vmax.xlane.f32.xlu1 %v10735_v48  ;;  %vm4902_vm10 = vcmp.eq.s32.totalorder %v4792_v15, %v8750_v5  ;;  %v10964_v48 = vpop.permute.xlu0 %4845 }
 0x2d8   : > { %5753 = vst [vmem:[%s10627_s7 + $0x170] sm:$0xff] %v10923_v57  ;;  %v7049_v34 = vpop.f32.mrb[48].mxu1  ;;  %4104 = vmax.xlane.f32.xlu0 %v10853_v49  ;;  %12816 = vst [vmem:[#allocation82_spill] sm:$0xff] %v10964_v48  ;;  %v4947_v48 = vsel %vm4883_vm0, %v10747_v46, 0.0  ;;  %vm4916_vm0 = vcmp.eq.s32.totalorder %v10860_v26, %v8750_v5 }
 0x2d9   : > { %v7436_v9 = vpop.f32.mrb[50].mxu0  ;;  %v10935_v22 = vadd.f32 %v7433_v56, %v7049_v34  ;;  %v2366_v1 = vpop.f32.mrb[49].mxu1 }
 0x2da   : > { %v3948_v20 = vpop.f32.mrb[51].mxu0  ;;  %v10937_v10 = vadd.f32 %v3936_v31, %v2366_v1 }
 0x2db   : > { %5756 = vst [vmem:[%s10627_s7 + $0x188] sm:$0xff] %v10935_v22  ;;  %5028 = vadd.xlane.f32.xlu1 %v4945_v24 }
 0x2dc   : > { %5755 = vst [vmem:[%s10627_s7 + $0x180] sm:$0xff] %v10937_v10  ;;  %v7052_v43 = vpop.f32.mrb[50].mxu1  ;;  %4108 = vmax.xlane.f32.xlu0 %v10867_v32 }
 0x2dd   : > { %v7439_v56 = vpop.f32.mrb[52].mxu0  ;;  %v10949_v31 = vadd.f32 %v7436_v9, %v7052_v43  ;;  %v2380_v34 = vpop.f32.mrb[51].mxu1 }
 0x2de   : > { %v3960_v1 = vpop.f32.mrb[53].mxu0  ;;  %v10951_v49 = vadd.f32 %v3948_v20, %v2380_v34  ;;  %v4966_v34 = vsel %vm4902_vm10, %v10883_v14, 0.0  ;;  %vm4890_vm10 = vcmp.eq.s32.totalorder %v10582_v42, %v8750_v5 }
 0x2df   : > { %5758 = vst [vmem:[%s10627_s7 + $0x198] sm:$0xff] %v10949_v31  ;;  %5026 = vadd.xlane.f32.xlu1 %v4944_v47 }
 0x2e0   : > { %5757 = vst [vmem:[%s10627_s7 + $0x190] sm:$0xff] %v10951_v49  ;;  %v7055_v24 = vpop.f32.mrb[52].mxu1  ;;  %4112 = vmax.xlane.f32.xlu0 %v10879_v51 }
 0x2e1   : > { %v7442_v4 = vpop.f32.mrb[54].mxu0  ;;  %v10959_v9 = vadd.f32 %v7439_v56, %v7055_v24  ;;  %v2394_v43 = vpop.f32.mrb[53].mxu1 }
 0x2e2   : > { %v3972_v32 = vpop.f32.mrb[55].mxu0  ;;  %v10962_v20 = vadd.f32 %v3960_v1, %v2394_v43 }
 0x2e3   : > { %5760 = vst [vmem:[%s10627_s7 + $0x1a8] sm:$0xff] %v10959_v9  ;;  %4070 = vmax.xlane.f32.xlu1 %v10749_v59 }
 0x2e4   : > { %5759 = vst [vmem:[%s10627_s7 + $0x1a0] sm:$0xff] %v10962_v20  ;;  %v7058_v56 = vpop.f32.mrb[54].mxu1  ;;  %5070 = vadd.xlane.f32.xlu0 %v4966_v34 }
 0x2e5   : > { %v7445_v47 = vpop.f32.mrb[56].mxu0  ;;  %v10974_v15 = vadd.f32 %v7442_v4, %v7058_v56  ;;  %v2408_v1 = vpop.f32.mrb[55].mxu1 }
 0x2e6   : > { %v3984_v24 = vpop.f32.mrb[57].mxu0  ;;  %v10976_v43 = vadd.f32 %v3972_v32, %v2408_v1 }
 0x2e7   : > { %5762 = vst [vmem:[%s10627_s7 + $0x1b8] sm:$0xff] %v10974_v15  ;;  %5032 = vadd.xlane.f32.xlu1 %v4947_v48  ;;  %v10993_v48 = vpop.permute.xlu0 %4848 }
 0x2e8   : > { %5761 = vst [vmem:[%s10627_s7 + $0x1b0] sm:$0xff] %v10976_v43  ;;  %v7061_v34 = vpop.f32.mrb[56].mxu1  ;;  %4116 = vmax.xlane.f32.xlu0 %v10895_v21  ;;  %12817 = vst [vmem:[#allocation81_spill] sm:$0xff] %v10993_v48  ;;  %v4968_v21 = vsel %vm4904_vm2, %v10897_v39, 0.0  ;;  %v4980_v29 = vsel %vm4916_vm0, %v10976_v43, 0.0  ;;  %vm4895_vm2 = vcmp.eq.s32.totalorder %v10843_v36, %v8750_v5  ;;  %v12824_v36 = vld [vmem:[#allocation34_spill] sm:$0xff] }
 0x2e9   : > { %v7448_v8 = vpop.f32.mrb[58].mxu0  ;;  %v10986_v4 = vadd.f32 %v7445_v47, %v7061_v34  ;;  %v2422_v32 = vpop.f32.mrb[57].mxu1 }
 0x2ea   : > { %v3996_v56 = vpop.f32.mrb[59].mxu0  ;;  %v10990_v1 = vadd.f32 %v3984_v24, %v2422_v32 }
 0x2eb   : > { %5764 = vst [vmem:[%s10627_s7 + $0x1c8] sm:$0xff] %v10986_v4  ;;  %5030 = vadd.xlane.f32.xlu1 %v4946_v3  ;;  %v11021_v48 = vpop.permute.xlu0 %4851 }
 0x2ec   : > { %5763 = vst [vmem:[%s10627_s7 + $0x1c0] sm:$0xff] %v10990_v1  ;;  %v7064_v47 = vpop.f32.mrb[58].mxu1  ;;  %5074 = vadd.xlane.f32.xlu0 %v4968_v21 }
 0x2ed   : > { %v7451_v34 = vpop.f32.mrb[60].mxu0  ;;  %v11000_v51 = vadd.f32 %v7448_v8, %v7064_v47  ;;  %v2436_v54 = vpop.f32.mrb[59].mxu1 }
 0x2ee   : > { %v4008_v24 = vpop.f32.mrb[61].mxu0  ;;  %v11002_v32 = vadd.f32 %v3996_v56, %v2436_v54  ;;  %v4949_v54 = vsel %vm4885_vm3, %v10759_v27, 0.0  ;;  %vm4894_vm3 = vcmp.eq.s32.totalorder %v10590_v28, %v8750_v5 }
 0x2ef   : > { %5766 = vst [vmem:[%s10627_s7 + $0x1d8] sm:$0xff] %v11000_v51  ;;  %4074 = vmax.xlane.f32.xlu1 %v10761_v17  ;;  %v11038_v38 = vpop.permute.xlu0 %4854 }
 0x2f0   : > { %5765 = vst [vmem:[%s10627_s7 + $0x1d0] sm:$0xff] %v11002_v32  ;;  %v7067_v59 = vpop.f32.mrb[60].mxu1  ;;  %4120 = vmax.xlane.f32.xlu0 %v10909_v18 }
 0x2f1   : > { %v7454_v3 = vpop.f32.mrb[62].mxu0  ;;  %v11012_v21 = vadd.f32 %v7451_v34, %v7067_v59  ;;  %v2450_v8 = vpop.f32.mrb[61].mxu1 }
 0x2f2   : > { %v4020_v56 = vpop.f32.mrb[63].mxu0  ;;  %v11016_v47 = vadd.f32 %v4008_v24, %v2450_v8  ;;  %v4948_v8 = vsel %vm4884_vm5, %v10761_v17, 0.0  ;;  %v4951_v17 = vsel %vm4887_vm7, %v10773_v60, 0.0 }
 0x2f3   : > { %5768 = vst [vmem:[%s10627_s7 + $0x1e8] sm:$0xff] %v11012_v21  ;;  %5036 = vadd.xlane.f32.xlu1 %v4949_v54  ;;  %v4974_v54 = vsel %vm4910_vm9, %v10937_v10, 0.0 }
 0x2f4   : > { %5767 = vst [vmem:[%s10627_s7 + $0x1e0] sm:$0xff] %v11016_v47  ;;  %v7070_v34 = vpop.f32.mrb[62].mxu1  ;;  %5078 = vadd.xlane.f32.xlu0 %v4970_v6 }
 0x2f5   : > { %v11028_v19 = vadd.f32 %v7454_v3, %v7070_v34  ;;  %v2464_v24 = vpop.f32.mrb[63].mxu1  ;;  %v4972_v3 = vsel %vm4908_vm6, %v10923_v57, 0.0 }
 0x2f6   : > { %v11030_v59 = vadd.f32 %v4020_v56, %v2464_v24  ;;  %v11047_v56 = vpop.permute.xlu0 %4857 }
 0x2f7   : > { %5770 = vst [vmem:[%s10627_s7 + $0x1f8] sm:$0xff] %v11028_v19  ;;  %5034 = vadd.xlane.f32.xlu1 %v4948_v8 }
 0x2f8   : > { %5769 = vst [vmem:[%s10627_s7 + $0x1f0] sm:$0xff] %v11030_v59  ;;  %4124 = vmax.xlane.f32.xlu0 %v10921_v52 }
 0x2fa   : > { %v11056_v30 = vpop.permute.xlu0 %4860 }
 0x2fb   : > { %4078 = vmax.xlane.f32.xlu1 %v10775_v44  ;;  %v4976_v44 = vsel %vm4912_vm15, %v10951_v49, 0.0 }
 0x2fc   : > { %5082 = vadd.xlane.f32.xlu0 %v4972_v3  ;;  %v4978_v3 = vsel %vm4914_vm13, %v10962_v20, 0.0 }
 0x2ff   : > { %5040 = vadd.xlane.f32.xlu1 %v4951_v17 }
 0x300   : > { %4128 = vmax.xlane.f32.xlu0 %v10935_v22 }
 0x303   : > { %5038 = vadd.xlane.f32.xlu1 %v4950_v2 }
 0x304   : > { %5086 = vadd.xlane.f32.xlu0 %v4974_v54  ;;  %v4954_v54 = vsel %vm4890_vm10, %v10801_v63, 0.0 }
 0x307   : > { %4082 = vmax.xlane.f32.xlu1 %v10789_v23  ;;  %v4955_v23 = vsel %vm4891_vm12, %v10799_v58, 0.0 }
 0x308   : > { %v11059_v6 = vpop.xlane.xlu1 %4032  ;;  %4132 = vmax.xlane.f32.xlu0 %v10949_v31 }
 0x309   : > { %v11064_v40 = vpop.xlane.xlu0 %4030 }
 0x30b   : > { %5044 = vadd.xlane.f32.xlu1 %v4953_v50 }
 0x30c   : > { %v11070_v34 = vpop.xlane.xlu1 %4990  ;;  %5090 = vadd.xlane.f32.xlu0 %v4976_v44  ;;  %v4159_v44 = vsub.f32 %v10629_v12, %v11059_v6 }
 0x30d   : > { %12818 = vst [vmem:[#allocation86_spill] sm:$0xff] %v11070_v34  ;;  %v11074_v24 = vpop.xlane.xlu0 %4992 }
 0x30f   : > { %5042 = vadd.xlane.f32.xlu1 %v4952_v55 }
 0x310   : > { %v11077_v8 = vpop.xlane.xlu1 %4994  ;;  %4136 = vmax.xlane.f32.xlu0 %v10959_v9 }
 0x311   : > { %12819 = vst [vmem:[#allocation85_spill] sm:$0xff] %v11077_v8  ;;  %v11080_v37 = vpop.xlane.xlu0 %4036 }
 0x312   : > { %v4161_v26 = vsub.f32 %v10640_v33, %v11080_v37 }
 0x313   : > { %4086 = vmax.xlane.f32.xlu1 %v10801_v63  ;;  %v4224_v63 = vmul.f32 1.442695, %v4159_v44 }
 0x314   : > { %v11086_v17 = vpop.xlane.xlu1 %4038  ;;  %5094 = vadd.xlane.f32.xlu0 %v4978_v3 }
 0x315   : > { %v11090_v13 = vpop.xlane.xlu0 %4034  ;;  %8001 = vpow2.f32 %v4224_v63 }
 0x317   : > { %5048 = vadd.xlane.f32.xlu1 %v4955_v23  ;;  %v4956_v23 = vsel %vm4892_vm1, %v10815_v0, 0.0 }
 0x318   : > { %v11093_v2 = vpop.xlane.xlu1 %5000  ;;  %4140 = vmax.xlane.f32.xlu0 %v10974_v15 }
 0x319   : > { %v11098_v41 = vpop.xlane.xlu0 %4996 }
 0x31b   : > { %5046 = vadd.xlane.f32.xlu1 %v4954_v54  ;;  %v4228_v54 = vmul.f32 1.442695, %v4161_v26 }
 0x31c   : > { %v11104_v50 = vpop.xlane.xlu1 %4998  ;;  %5098 = vadd.xlane.f32.xlu0 %v4980_v29 }
 0x31d   : > { %12820 = vst [vmem:[#allocation90_spill] sm:$0xff] %v11104_v50  ;;  %v11108_v55 = vpop.xlane.xlu0 %4040  ;;  %8003 = vpow2.f32 %v4228_v54 }
 0x31e   : > { %v4163_v29 = vsub.f32 %v10649_v61, %v11108_v55  ;;  %v4959_v61 = vsel %vm4895_vm2, %v10827_v53, 0.0 }
 0x31f   : > { %4090 = vmax.xlane.f32.xlu1 %v10815_v0 }
 0x320   : > { %v11111_v42 = vpop.xlane.xlu1 %4042  ;;  %4144 = vmax.xlane.f32.xlu0 %v10986_v4  ;;  %v4232_v33 = vmul.f32 1.442695, %v4163_v29  ;;  %v8002_v29 = vpop.eup %8001 }
 0x321   : > { %v11118_v3 = vpop.xlane.xlu0 %4044 }
 0x322   : > { %v4165_v0 = vsub.f32 %v10657_v25, %v11118_v3  ;;  %8005 = vpow2.f32 %v4232_v33  ;;  %v4958_v25 = vsel %vm4894_vm3, %v10829_v62, 0.0  ;;  %vm4922_vm3 = vcmp.eq.s32.totalorder %v11021_v48, %v8750_v5  ;;  %v8339_v48 = vld [vmem:[%s10627_s7 + $0x120] sm:$0xff] }
 0x323   : > { %5050 = vadd.xlane.f32.xlu1 %v4956_v23 }
 0x324   : > { %v11121_v12 = vpop.xlane.xlu1 %5004  ;;  %4148 = vmax.xlane.f32.xlu0 %v11000_v51  ;;  %v4236_v26 = vmul.f32 1.442695, %v4165_v0  ;;  %v12829_v0 = vld [vmem:[#allocation53_spill] sm:$0xff] }
 0x325   : > { %v11126_v50 = vpop.xlane.xlu0 %5002 }
 0x326   : > { %12821 = vst [vmem:[#allocation89_spill] sm:$0xff] %v11126_v50  ;;  %8007 = vpow2.f32 %v4236_v26 }
 0x327   : > { %4094 = vmax.xlane.f32.xlu1 %v10829_v62  ;;  %v8004_v33 = vpop.eup %8003  ;;  %v12830_v62 = vld [vmem:[#allocation17_spill] sm:$0xff] }
 0x328   : > { %v11129_v35 = vpop.xlane.xlu1 %4046  ;;  %4152 = vmax.xlane.f32.xlu0 %v11012_v21  ;;  %vm4897_vm4 = vcmp.eq.s32.totalorder %v12830_v62, %v8750_v5 }
 0x329   : > { %v11136_v44 = vpop.xlane.xlu0 %4048 }
 0x32a   : > { %12822 = vst [vmem:[#allocation98_spill] sm:$0xff] %v11136_v44  ;;  %v4167_v23 = vsub.f32 %v12824_v36, %v11136_v44  ;;  %v12834_v44 = vld [vmem:[#allocation10_spill] sm:$0xff] }
 0x32b   : > { %5056 = vadd.xlane.f32.xlu1 %v4959_v61  ;;  %vm4896_vm5 = vcmp.eq.s32.totalorder %v12834_v44, %v8750_v5 }
 0x32c   : > { %v11139_v63 = vpop.xlane.xlu1 %5008  ;;  %4156 = vmax.xlane.f32.xlu0 %v11028_v19  ;;  %v4240_v61 = vmul.f32 1.442695, %v4167_v23 }
 0x32d   : > { %12823 = vst [vmem:[#allocation102_spill] sm:$0xff] %v11139_v63  ;;  %v11146_v54 = vpop.xlane.xlu0 %4052  ;;  %v12827_v63 = vld [vmem:[#allocation37_spill] sm:$0xff] }
 0x32e   : > { %12825 = vst [vmem:[#allocation101_spill] sm:$0xff] %v11146_v54  ;;  %v4169_v8 = vsub.f32 %v12827_v63, %v11146_v54  ;;  %8009 = vpow2.f32 %v4240_v61  ;;  %v4961_v63 = vsel %vm4897_vm4, %v10839_v7, 0.0  ;;  %v12835_v61 = vld [vmem:[#allocation41_spill] sm:$0xff]  ;;  %vm4924_vm4 = vcmp.eq.s32.totalorder %v11047_v56, %v8750_v5 }
 0x32f   : > { %5054 = vadd.xlane.f32.xlu1 %v4958_v25 }
 0x330   : > { %v11149_v50 = vpop.xlane.xlu1 %5006  ;;  %4352 = vadd.xlane.f32.xlu0 %v8002_v29  ;;  %v4244_v25 = vmul.f32 1.442695, %v4169_v8  ;;  %v12831_v29 = vld [vmem:[#allocation42_spill] sm:$0xff] }
 0x331   : > { %12826 = vst [vmem:[#allocation105_spill] sm:$0xff] %v11149_v50  ;;  %v11153_v28 = vpop.xlane.xlu0 %4056  ;;  %v8006_v50 = vpop.eup %8005 }
 0x332   : > { %12828 = vst [vmem:[#allocation5_spill] sm:$0xff] %v11153_v28  ;;  %v4171_v26 = vsub.f32 %v12831_v29, %v11153_v28  ;;  %8011 = vpow2.f32 %v4244_v25  ;;  %v4960_v29 = vsel %vm4896_vm5, %v12829_v0, 0.0  ;;  %v8008_v28 = vpop.eup %8007 }
 0x333   : > { %4098 = vmax.xlane.f32.xlu1 %v12829_v0  ;;  %v12840_v0 = vld [vmem:[#allocation74_spill] sm:$0xff] }
 0x334   : > { %v11156_v36 = vpop.xlane.xlu1 %4050  ;;  %4356 = vadd.xlane.f32.xlu0 %v8004_v33  ;;  %v4248_v33 = vmul.f32 1.442695, %v4171_v26  ;;  %v12839_v26 = vld [vmem:[#allocation57_spill] sm:$0xff]  ;;  %vm4899_vm6 = vcmp.eq.s32.totalorder %v12840_v0, %v8750_v5 }
 0x335   : > { %v11162_v23 = vpop.xlane.xlu0 %4060 }
 0x336   : > { %12832 = vst [vmem:[#allocation7_spill] sm:$0xff] %v11162_v23  ;;  %v4173_v8 = vsub.f32 %v12835_v61, %v11162_v23  ;;  %8013 = vpow2.f32 %v4248_v33 }
 0x337   : > { %5060 = vadd.xlane.f32.xlu1 %v4961_v63 }
 0x338   : > { %v11165_v54 = vpop.xlane.xlu1 %5012  ;;  %4360 = vadd.xlane.f32.xlu0 %v8006_v50  ;;  %v4252_v63 = vmul.f32 1.442695, %v4173_v8  ;;  %v8010_v25 = vpop.eup %8009 }
 0x339   : > { %12833 = vst [vmem:[#allocation4_spill] sm:$0xff] %v11165_v54  ;;  %v11171_v62 = vpop.xlane.xlu0 %4064  ;;  %v12844_v54 = vld [vmem:[#allocation66_spill] sm:$0xff] }
 0x33a   : > { %12836 = vst [vmem:[#allocation6_spill] sm:$0xff] %v11171_v62  ;;  %v4175_v50 = vsub.f32 %v10719_v45, %v11171_v62  ;;  %8015 = vpow2.f32 %v4252_v63  ;;  %vm4898_vm7 = vcmp.eq.s32.totalorder %v12844_v54, %v8750_v5 }
 0x33b   : > { %5058 = vadd.xlane.f32.xlu1 %v4960_v29  ;;  %v4962_v0 = vsel %vm4898_vm7, %v12839_v26, 0.0 }
 0x33c   : > { %v11174_v34 = vpop.xlane.xlu1 %5010  ;;  %4364 = vadd.xlane.f32.xlu0 %v8008_v28  ;;  %v4256_v29 = vmul.f32 1.442695, %v4175_v50  ;;  %v12841_v28 = vld [vmem:[#allocation45_spill] sm:$0xff]  ;;  %v8012_v62 = vpop.eup %8011 }
 0x33d   : > { %12837 = vst [vmem:[#allocation9_spill] sm:$0xff] %v11174_v34  ;;  %v11178_v44 = vpop.xlane.xlu0 %4068  ;;  %v12843_v34 = vld [vmem:[#allocation58_spill] sm:$0xff] }
 0x33e   : > { %12838 = vst [vmem:[#allocation8_spill] sm:$0xff] %v11178_v44  ;;  %v4177_v33 = vsub.f32 %v12841_v28, %v11178_v44  ;;  %v4963_v45 = vsel %vm4899_vm6, %v12843_v34, 0.0  ;;  %8017 = vpow2.f32 %v4256_v29 }
 0x33f   : > { %4102 = vmax.xlane.f32.xlu1 %v12839_v26  ;;  %v12849_v26 = vld [vmem:[#allocation78_spill] sm:$0xff] }
 0x340   : > { %v11181_v61 = vpop.xlane.xlu1 %4054  ;;  %4368 = vadd.xlane.f32.xlu0 %v8010_v25  ;;  %v4260_v25 = vmul.f32 1.442695, %v4177_v33  ;;  %v8014_v28 = vpop.eup %8013  ;;  %v12848_v33 = vld [vmem:[#allocation61_spill] sm:$0xff]  ;;  %vm4901_vm8 = vcmp.eq.s32.totalorder %v12849_v26, %v8750_v5 }
 0x341   : > { %v11187_v8 = vpop.xlane.xlu0 %4072 }
 0x342   : > { %12842 = vst [vmem:[#allocation12_spill] sm:$0xff] %v11187_v8  ;;  %v4179_v63 = vsub.f32 %v10747_v46, %v11187_v8  ;;  %8019 = vpow2.f32 %v4260_v25 }
 0x343   : > { %5064 = vadd.xlane.f32.xlu1 %v4963_v45 }
 0x344   : > { %v11190_v23 = vpop.xlane.xlu1 %5016  ;;  %4372 = vadd.xlane.f32.xlu0 %v8012_v62  ;;  %v4264_v45 = vmul.f32 1.442695, %v4179_v63  ;;  %v8016_v29 = vpop.eup %8015 }
 0x345   : > { %v11196_v50 = vpop.xlane.xlu0 %4076 }
 0x346   : > { %12845 = vst [vmem:[#allocation11_spill] sm:$0xff] %v11196_v50  ;;  %v4181_v62 = vsub.f32 %v10759_v27, %v11196_v50  ;;  %8021 = vpow2.f32 %v4264_v45 }
 0x347   : > { %5062 = vadd.xlane.f32.xlu1 %v4962_v0 }
 0x348   : > { %v11199_v44 = vpop.xlane.xlu1 %5014  ;;  %4376 = vadd.xlane.f32.xlu0 %v8014_v28  ;;  %v4268_v0 = vmul.f32 1.442695, %v4181_v62  ;;  %v12851_v28 = vld [vmem:[#allocation62_spill] sm:$0xff]  ;;  %v8018_v50 = vpop.eup %8017 }
 0x349   : > { %12846 = vst [vmem:[#allocation14_spill] sm:$0xff] %v11199_v44  ;;  %v11203_v54 = vpop.xlane.xlu0 %4080  ;;  %v4965_v27 = vsel %vm4901_vm8, %v12851_v28, 0.0  ;;  %v12852_v44 = vld [vmem:[#allocation21_spill] sm:$0xff]  ;;  %vm4923_vm8 = vcmp.eq.s32.totalorder %v11038_v38, %v8750_v5  ;;  %v8352_v38 = vld [vmem:[%s10627_s7 + $0x1e8] sm:$0xff] }
 0x34a   : > { %12847 = vst [vmem:[#allocation13_spill] sm:$0xff] %v11203_v54  ;;  %v4183_v25 = vsub.f32 %v10773_v60, %v11203_v54  ;;  %vm4900_vm9 = vcmp.eq.s32.totalorder %v12852_v44, %v8750_v5  ;;  %8023 = vpow2.f32 %v4268_v0 }
 0x34b   : > { %4106 = vmax.xlane.f32.xlu1 %v12848_v33  ;;  %v4964_v60 = vsel %vm4900_vm9, %v12848_v33, 0.0  ;;  %v12855_v33 = vld [vmem:[#allocation2_spill] sm:$0xff]  ;;  %vm4925_vm9 = vcmp.eq.s32.totalorder %v11056_v30, %v8750_v5 }
 0x34c   : > { %v11206_v46 = vpop.xlane.xlu1 %4058  ;;  %4380 = vadd.xlane.f32.xlu0 %v8016_v29  ;;  %v4272_v29 = vmul.f32 1.442695, %v4183_v25  ;;  %v8020_v26 = vpop.eup %8019  ;;  %vm4903_vm14 = vcmp.eq.s32.totalorder %v12855_v33, %v8750_v5 }
 0x34d   : > { %v11212_v63 = vpop.xlane.xlu0 %4084 }
 0x34e   : > { %12850 = vst [vmem:[#allocation16_spill] sm:$0xff] %v11212_v63  ;;  %v4185_v45 = vsub.f32 %v10787_v11, %v11212_v63  ;;  %8025 = vpow2.f32 %v4272_v29 }
 0x34f   : > { %5068 = vadd.xlane.f32.xlu1 %v4965_v27 }
 0x350   : > { %v11215_v8 = vpop.xlane.xlu1 %5020  ;;  %4384 = vadd.xlane.f32.xlu0 %v8018_v50  ;;  %v4276_v27 = vmul.f32 1.442695, %v4185_v45  ;;  %v8022_v0 = vpop.eup %8021 }
 0x351   : > { %v11221_v62 = vpop.xlane.xlu0 %4088 }
 0x352   : > { %12853 = vst [vmem:[#allocation15_spill] sm:$0xff] %v11221_v62  ;;  %v4187_v50 = vsub.f32 %v10799_v58, %v11221_v62  ;;  %8027 = vpow2.f32 %v4276_v27 }
 0x353   : > { %5066 = vadd.xlane.f32.xlu1 %v4964_v60  ;;  %v12856_v60 = vld [vmem:[#allocation49_spill] sm:$0xff] }
 0x354   : > { %v11224_v54 = vpop.xlane.xlu1 %5018  ;;  %4388 = vadd.xlane.f32.xlu0 %v8020_v26  ;;  %v4280_v25 = vmul.f32 1.442695, %v4187_v50  ;;  %v12858_v26 = vld [vmem:[#allocation65_spill] sm:$0xff]  ;;  %v8024_v62 = vpop.eup %8023 }
 0x355   : > { %v11228_v44 = vpop.xlane.xlu0 %4092  ;;  %v4967_v58 = vsel %vm4903_vm14, %v12858_v26, 0.0 }
 0x356   : > { %12854 = vst [vmem:[#allocation19_spill] sm:$0xff] %v11228_v44  ;;  %v4189_v29 = vsub.f32 %v12856_v60, %v11228_v44  ;;  %8029 = vpow2.f32 %v4280_v25  ;;  %v12860_v60 = vld [vmem:[#allocation20_spill] sm:$0xff]  ;;  %v12862_v25 = vld [vmem:[#allocation69_spill] sm:$0xff] }
 0x357   : > { %4110 = vmax.xlane.f32.xlu1 %v10883_v14  ;;  %vm4905_vm15 = vcmp.eq.s32.totalorder %v12860_v60, %v8750_v5 }
 0x358   : > { %v11231_v11 = vpop.xlane.xlu1 %4062  ;;  %4392 = vadd.xlane.f32.xlu0 %v8022_v0  ;;  %v4284_v14 = vmul.f32 1.442695, %v4189_v29  ;;  %v8026_v50 = vpop.eup %8025  ;;  %v4969_v29 = vsel %vm4905_vm15, %v12862_v25, 0.0 }
 0x359   : > { %v11237_v45 = vpop.xlane.xlu0 %5052 }
 0x35a   : > { %12857 = vst [vmem:[#allocation18_spill] sm:$0xff] %v11237_v45  ;;  %8031 = vpow2.f32 %v4284_v14 }
 0x35b   : > { %5072 = vadd.xlane.f32.xlu1 %v4967_v58 }
 0x35c   : > { %v11240_v63 = vpop.xlane.xlu1 %5024  ;;  %4396 = vadd.xlane.f32.xlu0 %v8024_v62  ;;  %v8028_v44 = vpop.eup %8027 }
 0x35d   : > { %v11242_v0 = vpop.xlane.xlu0 %4096 }
 0x35e   : > { %12859 = vst [vmem:[#allocation23_spill] sm:$0xff] %v11242_v0  ;;  %v4191_v27 = vsub.f32 %v10827_v53, %v11242_v0 }
 0x35f   : > { %4114 = vmax.xlane.f32.xlu1 %v10897_v39 }
 0x360   : > { %v11247_v33 = vpop.xlane.xlu1 %5022  ;;  %4400 = vadd.xlane.f32.xlu0 %v8026_v50  ;;  %v4288_v58 = vmul.f32 1.442695, %v4191_v27  ;;  %v8030_v27 = vpop.eup %8029 }
 0x361   : > { %v11251_v45 = vpop.xlane.xlu0 %4100 }
 0x362   : > { %12861 = vst [vmem:[#allocation22_spill] sm:$0xff] %v11251_v45  ;;  %v4193_v62 = vsub.f32 %v10839_v7, %v11251_v45  ;;  %8033 = vpow2.f32 %v4288_v58  ;;  %v12865_v7 = vld [vmem:[#allocation3_spill] sm:$0xff] }
 0x363   : > { %5076 = vadd.xlane.f32.xlu1 %v4969_v29  ;;  %vm4907_vm11 = vcmp.eq.s32.totalorder %v12865_v7, %v8750_v5 }
 0x364   : > { %v11256_v53 = vpop.xlane.xlu1 %4066  ;;  %4404 = vadd.xlane.f32.xlu0 %v8028_v44  ;;  %v4292_v39 = vmul.f32 1.442695, %v4193_v62  ;;  %v4971_v58 = vsel %vm4907_vm11, %v10909_v18, 0.0  ;;  %v8032_v62 = vpop.eup %8031 }
 0x365   : > { %12863 = vst [vmem:[#allocation25_spill] sm:$0xff] %v11256_v53  ;;  %v11258_v50 = vpop.xlane.xlu0 %4104 }
 0x366   : > { %12864 = vst [vmem:[#allocation24_spill] sm:$0xff] %v11258_v50  ;;  %v4195_v14 = vsub.f32 %v12843_v34, %v11258_v50  ;;  %8035 = vpow2.f32 %v4292_v39 }
 0x367   : > { %4118 = vmax.xlane.f32.xlu1 %v10911_v16 }
 0x368   : > { %v11263_v60 = vpop.xlane.xlu1 %5028  ;;  %4408 = vadd.xlane.f32.xlu0 %v8030_v27  ;;  %v4296_v29 = vmul.f32 1.442695, %v4195_v14 }
 0x369   : > { %v11267_v45 = vpop.xlane.xlu0 %4108 }
 0x36a   : > { %12866 = vst [vmem:[#allocation27_spill] sm:$0xff] %v11267_v45  ;;  %v4197_v44 = vsub.f32 %v12851_v28, %v11267_v45  ;;  %8037 = vpow2.f32 %v4296_v29  ;;  %v12870_v28 = vld [vmem:[#allocation38_spill] sm:$0xff] }
 0x36b   : > { %5080 = vadd.xlane.f32.xlu1 %v4971_v58  ;;  %vm4909_vm13 = vcmp.eq.s32.totalorder %v12870_v28, %v8750_v5  ;;  %v12875_v28 = vld [vmem:[#allocation46_spill] sm:$0xff] }
 0x36c   : > { %v11272_v34 = vpop.xlane.xlu1 %5026  ;;  %4412 = vadd.xlane.f32.xlu0 %v8032_v62  ;;  %v4300_v16 = vmul.f32 1.442695, %v4197_v44  ;;  %v8034_v14 = vpop.eup %8033  ;;  %v4973_v29 = vsel %vm4909_vm13, %v10921_v52, 0.0  ;;  %vm4911_vm12 = vcmp.eq.s32.totalorder %v12875_v28, %v8750_v5 }
 0x36d   : > { %12867 = vst [vmem:[#allocation26_spill] sm:$0xff] %v11272_v34  ;;  %v11274_v27 = vpop.xlane.xlu0 %4112 }
 0x36e   : > { %12868 = vst [vmem:[#allocation29_spill] sm:$0xff] %v11274_v27  ;;  %v4199_v39 = vsub.f32 %v12858_v26, %v11274_v27  ;;  %8039 = vpow2.f32 %v4300_v16 }
 0x36f   : > { %4122 = vmax.xlane.f32.xlu1 %v10923_v57 }
 0x370   : > { %v11279_v7 = vpop.xlane.xlu1 %4070  ;;  %4416 = vadd.xlane.f32.xlu0 %v8034_v14  ;;  %v4304_v58 = vmul.f32 1.442695, %v4199_v39  ;;  %v8036_v44 = vpop.eup %8035 }
 0x371   : > { %12869 = vst [vmem:[#allocation28_spill] sm:$0xff] %v11279_v7  ;;  %v11283_v45 = vpop.xlane.xlu0 %5070 }
 0x372   : > { %12871 = vst [vmem:[#allocation31_spill] sm:$0xff] %v11283_v45  ;;  %8041 = vpow2.f32 %v4304_v58  ;;  %v4975_v58 = vsel %vm4911_vm12, %v10935_v22, 0.0 }
 0x373   : > { %5084 = vadd.xlane.f32.xlu1 %v4973_v29 }
 0x374   : > { %v11286_v62 = vpop.xlane.xlu1 %5032  ;;  %4420 = vadd.xlane.f32.xlu0 %v8036_v44  ;;  %v8038_v14 = vpop.eup %8037 }
 0x375   : > { %12872 = vst [vmem:[#allocation30_spill] sm:$0xff] %v11286_v62  ;;  %v11288_v26 = vpop.xlane.xlu0 %4116 }
 0x376   : > { %12873 = vst [vmem:[#allocation33_spill] sm:$0xff] %v11288_v26  ;;  %v4201_v57 = vsub.f32 %v12862_v25, %v11288_v26 }
 0x377   : > { %4126 = vmax.xlane.f32.xlu1 %v10937_v10 }
 0x378   : > { %v4308_v16 = vmul.f32 1.442695, %v4201_v57  ;;  %v11293_v39 = vpop.xlane.xlu1 %5030  ;;  %4424 = vadd.xlane.f32.xlu0 %v8038_v14  ;;  %v8040_v44 = vpop.eup %8039 }
 0x379   : > { %12874 = vst [vmem:[#allocation32_spill] sm:$0xff] %v11293_v39  ;;  %v11297_v29 = vpop.xlane.xlu0 %5074 }
 0x37a   : > { %12876 = vst [vmem:[#allocation36_spill] sm:$0xff] %v11297_v29  ;;  %8043 = vpow2.f32 %v4308_v16  ;;  %v12880_v16 = vld [vmem:[#allocation50_spill] sm:$0xff] }
 0x37b   : > { %5088 = vadd.xlane.f32.xlu1 %v4975_v58  ;;  %vm4913_vm10 = vcmp.eq.s32.totalorder %v12880_v16, %v8750_v5 }
 0x37c   : > { %v11300_v27 = vpop.xlane.xlu1 %4074  ;;  %4428 = vadd.xlane.f32.xlu0 %v8040_v44  ;;  %v8042_v57 = vpop.eup %8041  ;;  %v4977_v58 = vsel %vm4913_vm10, %v10949_v31, 0.0 }
 0x37d   : > { %12877 = vst [vmem:[#allocation35_spill] sm:$0xff] %v11300_v27  ;;  %v11302_v25 = vpop.xlane.xlu0 %4120 }
 0x37e   : > { %12878 = vst [vmem:[#allocation40_spill] sm:$0xff] %v11302_v25  ;;  %v4203_v10 = vsub.f32 %v10909_v18, %v11302_v25  ;;  %v8322_v25 = vld [vmem:[%s10627_s7 + $0x10] sm:$0xff] }
 0x37f   : > { %4130 = vmax.xlane.f32.xlu1 %v10951_v49  ;;  %v4160_v45 = vsub.f32 %v8322_v25, %v11090_v13 }
 0x380   : > { %v4312_v14 = vmul.f32 1.442695, %v4203_v10  ;;  %v11307_v28 = vpop.xlane.xlu1 %5036  ;;  %4432 = vadd.xlane.f32.xlu0 %v8042_v57 }
 0x381   : > { %12879 = vst [vmem:[#allocation39_spill] sm:$0xff] %v11307_v28  ;;  %v11311_v26 = vpop.xlane.xlu0 %5078 }
 0x382   : > { %12881 = vst [vmem:[#allocation44_spill] sm:$0xff] %v11311_v26  ;;  %8045 = vpow2.f32 %v4312_v14  ;;  %v12885_v14 = vld [vmem:[#allocation54_spill] sm:$0xff] }
 0x383   : > { %5092 = vadd.xlane.f32.xlu1 %v4977_v58  ;;  %vm4915_vm0 = vcmp.eq.s32.totalorder %v12885_v14, %v8750_v5 }
 0x384   : > { %v8044_v44 = vpop.eup %8043  ;;  %v11314_v29 = vpop.xlane.xlu1 %5034  ;;  %v4979_v58 = vsel %vm4915_vm0, %v10959_v9, 0.0 }
 0x385   : > { %12882 = vst [vmem:[#allocation43_spill] sm:$0xff] %v11314_v29  ;;  %4436 = vadd.xlane.f32.xlu0 %v8044_v44  ;;  %v11316_v18 = vpop.xlane.xlu0 %4124 }
 0x386   : > { %12883 = vst [vmem:[#allocation48_spill] sm:$0xff] %v11316_v18  ;;  %v4205_v49 = vsub.f32 %v10921_v52, %v11316_v18 }
 0x387   : > { %4134 = vmax.xlane.f32.xlu1 %v10962_v20 }
 0x388   : > { %v4316_v10 = vmul.f32 1.442695, %v4205_v49  ;;  %v11321_v57 = vpop.xlane.xlu1 %4078  ;;  %v8321_v49 = vld [vmem:[%s10627_s7] sm:$0xff] }
 0x389   : > { %12884 = vst [vmem:[#allocation47_spill] sm:$0xff] %v11321_v57  ;;  %v11325_v16 = vpop.xlane.xlu0 %5082  ;;  %v4158_v14 = vsub.f32 %v8321_v49, %v11064_v40  ;;  %v8323_v49 = vld [vmem:[%s10627_s7 + $0x20] sm:$0xff] }
 0x38a   : > { %12886 = vst [vmem:[#allocation52_spill] sm:$0xff] %v11325_v16  ;;  %8047 = vpow2.f32 %v4316_v10 }
 0x38b   : > { %5096 = vadd.xlane.f32.xlu1 %v4979_v58  ;;  %v4222_v18 = vmul.f32 1.442695, %v4158_v14 }
 0x38c   : > { %v8046_v44 = vpop.eup %8045  ;;  %v11328_v26 = vpop.xlane.xlu1 %5040 }
 0x38d   : > { %12887 = vst [vmem:[#allocation51_spill] sm:$0xff] %v11328_v26  ;;  %4440 = vadd.xlane.f32.xlu0 %v8046_v44  ;;  %v11330_v52 = vpop.xlane.xlu0 %4128 }
 0x38e   : > { %12888 = vst [vmem:[#allocation56_spill] sm:$0xff] %v11330_v52  ;;  %v4207_v20 = vsub.f32 %v10935_v22, %v11330_v52 }
 0x38f   : > { %4138 = vmax.xlane.f32.xlu1 %v10976_v43 }
 0x390   : > { %v4320_v10 = vmul.f32 1.442695, %v4207_v20  ;;  %v11337_v16 = vpop.xlane.xlu1 %5038 }
 0x391   : > { %12889 = vst [vmem:[#allocation55_spill] sm:$0xff] %v11337_v16  ;;  %v11339_v58 = vpop.xlane.xlu0 %5086 }
 0x392   : > { %12890 = vst [vmem:[#allocation60_spill] sm:$0xff] %v11339_v58  ;;  %8049 = vpow2.f32 %v4320_v10  ;;  %v4162_v10 = vsub.f32 %v8323_v49, %v11086_v17  ;;  %v4226_v58 = vmul.f32 1.442695, %v4160_v45 }
 0x393   : > { %4142 = vmax.xlane.f32.xlu1 %v10990_v1  ;;  %8051 = vpow2.f32 %v4222_v18 }
 0x394   : > { %v8048_v44 = vpop.eup %8047  ;;  %v11344_v22 = vpop.xlane.xlu1 %4082  ;;  %v4230_v50 = vmul.f32 1.442695, %v4162_v10 }
 0x395   : > { %12891 = vst [vmem:[#allocation59_spill] sm:$0xff] %v11344_v22  ;;  %4444 = vadd.xlane.f32.xlu0 %v8048_v44  ;;  %v11346_v43 = vpop.xlane.xlu0 %4132 }
 0x396   : > { %12892 = vst [vmem:[#allocation64_spill] sm:$0xff] %v11346_v43  ;;  %v4209_v20 = vsub.f32 %v10949_v31, %v11346_v43  ;;  %v8324_v31 = vld [vmem:[%s10627_s7 + $0x30] sm:$0xff] }
 0x397   : > { %4146 = vmax.xlane.f32.xlu1 %v11002_v32  ;;  %v4164_v43 = vsub.f32 %v8324_v31, %v11111_v42 }
 0x398   : > { %v4324_v14 = vmul.f32 1.442695, %v4209_v20  ;;  %v11353_v52 = vpop.xlane.xlu1 %5044 }
 0x399   : > { %12893 = vst [vmem:[#allocation63_spill] sm:$0xff] %v11353_v52  ;;  %v11355_v25 = vpop.xlane.xlu0 %5090  ;;  %v4234_v20 = vmul.f32 1.442695, %v4164_v43  ;;  %v8328_v52 = vld [vmem:[%s10627_s7 + $0x70] sm:$0xff] }
 0x39a   : > { %12894 = vst [vmem:[#allocation68_spill] sm:$0xff] %v11355_v25  ;;  %8053 = vpow2.f32 %v4324_v14  ;;  %v8325_v14 = vld [vmem:[%s10627_s7 + $0x40] sm:$0xff] }
 0x39b   : > { %4150 = vmax.xlane.f32.xlu1 %v11016_v47  ;;  %8055 = vpow2.f32 %v4226_v58  ;;  %v4166_v10 = vsub.f32 %v8325_v14, %v11129_v35 }
 0x39c   : > { %v8050_v44 = vpop.eup %8049  ;;  %v11360_v18 = vpop.xlane.xlu1 %5042  ;;  %8057 = vpow2.f32 %v4230_v50 }
 0x39d   : > { %12895 = vst [vmem:[#allocation67_spill] sm:$0xff] %v11360_v18  ;;  %4448 = vadd.xlane.f32.xlu0 %v8050_v44  ;;  %v11362_v49 = vpop.xlane.xlu0 %4136  ;;  %v8052_v0 = vpop.eup %8051  ;;  %v4238_v18 = vmul.f32 1.442695, %v4166_v10 }
 0x39e   : > { %12896 = vst [vmem:[#allocation72_spill] sm:$0xff] %v11362_v49  ;;  %v4211_v45 = vsub.f32 %v10959_v9, %v11362_v49  ;;  %v8326_v9 = vld [vmem:[%s10627_s7 + $0x50] sm:$0xff] }
 0x39f   : > { %4154 = vmax.xlane.f32.xlu1 %v11030_v59  ;;  %v4168_v49 = vsub.f32 %v8326_v9, %v11156_v36 }
 0x3a0   : > { %v4328_v58 = vmul.f32 1.442695, %v4211_v45  ;;  %v11369_v25 = vpop.xlane.xlu1 %4086 }
 0x3a1   : > { %12897 = vst [vmem:[#allocation71_spill] sm:$0xff] %v11369_v25  ;;  %v11371_v31 = vpop.xlane.xlu0 %5094 }
 0x3a2   : > { %12898 = vst [vmem:[#allocation76_spill] sm:$0xff] %v11371_v31  ;;  %8059 = vpow2.f32 %v4328_v58  ;;  %v4242_v58 = vmul.f32 1.442695, %v4168_v49 }
 0x3a3   : > { %4350 = vadd.xlane.f32.xlu1 %v8052_v0  ;;  %8061 = vpow2.f32 %v4234_v20  ;;  %v8327_v0 = vld [vmem:[%s10627_s7 + $0x60] sm:$0xff] }
 0x3a4   : > { %v8054_v44 = vpop.eup %8053  ;;  %v11375_v50 = vpop.xlane.xlu1 %5048  ;;  %8063 = vpow2.f32 %v4238_v18  ;;  %v4170_v20 = vsub.f32 %v8327_v0, %v11181_v61 }
 0x3a5   : > { %12899 = vst [vmem:[#allocation75_spill] sm:$0xff] %v11375_v50  ;;  %4452 = vadd.xlane.f32.xlu0 %v8054_v44  ;;  %v11377_v43 = vpop.xlane.xlu0 %4140  ;;  %v8056_v45 = vpop.eup %8055 }
 0x3a6   : > { %12900 = vst [vmem:[#allocation80_spill] sm:$0xff] %v11377_v43  ;;  %v4213_v14 = vsub.f32 %v10974_v15, %v11377_v43  ;;  %v8058_v50 = vpop.eup %8057  ;;  %v4246_v16 = vmul.f32 1.442695, %v4170_v20  ;;  %v4172_v15 = vsub.f32 %v8328_v52, %v11206_v46 }
 0x3a7   : > { %4354 = vadd.xlane.f32.xlu1 %v8056_v45 }
 0x3a8   : > { %v4332_v10 = vmul.f32 1.442695, %v4213_v14  ;;  %v11383_v31 = vpop.xlane.xlu1 %5046  ;;  %v4250_v0 = vmul.f32 1.442695, %v4172_v15 }
 0x3a9   : > { %12901 = vst [vmem:[#allocation79_spill] sm:$0xff] %v11383_v31  ;;  %v11385_v9 = vpop.xlane.xlu0 %5098 }
 0x3aa   : > { %12902 = vst [vmem:[#allocation84_spill] sm:$0xff] %v11385_v9  ;;  %8065 = vpow2.f32 %v4332_v10 }
 0x3ab   : > { %4358 = vadd.xlane.f32.xlu1 %v8058_v50  ;;  %8067 = vpow2.f32 %v4242_v58  ;;  %v8329_v50 = vld [vmem:[%s10627_s7 + $0x80] sm:$0xff] }
 0x3ac   : > { %v8060_v44 = vpop.eup %8059  ;;  %v11389_v18 = vpop.xlane.xlu1 %4090  ;;  %8069 = vpow2.f32 %v4246_v16  ;;  %v4174_v58 = vsub.f32 %v8329_v50, %v11231_v11  ;;  %v8330_v16 = vld [vmem:[%s10627_s7 + $0x90] sm:$0xff] }
 0x3ad   : > { %12903 = vst [vmem:[#allocation83_spill] sm:$0xff] %v11389_v18  ;;  %4456 = vadd.xlane.f32.xlu0 %v8060_v44  ;;  %v11391_v49 = vpop.xlane.xlu0 %4144  ;;  %v8062_v45 = vpop.eup %8061  ;;  %v4176_v15 = vsub.f32 %v8330_v16, %v11256_v53 }
 0x3ae   : > { %12904 = vst [vmem:[#allocation88_spill] sm:$0xff] %v11391_v49  ;;  %v4215_v14 = vsub.f32 %v10986_v4, %v11391_v49  ;;  %v8064_v43 = vpop.eup %8063 }
 0x3af   : > { %4362 = vadd.xlane.f32.xlu1 %v8062_v45  ;;  %v4254_v45 = vmul.f32 1.442695, %v4174_v58 }
 0x3b0   : > { %v4336_v20 = vmul.f32 1.442695, %v4215_v14  ;;  %v11397_v10 = vpop.xlane.xlu1 %5050 }
 0x3b1   : > { %12905 = vst [vmem:[#allocation87_spill] sm:$0xff] %v11397_v10  ;;  %v11399_v52 = vpop.xlane.xlu0 %4148  ;;  %v11562_v10 = vsel %vm4923_vm8, %v8352_v38, 0.0 }
 0x3b2   : > { %12906 = vst [vmem:[#allocation92_spill] sm:$0xff] %v11399_v52  ;;  %8071 = vpow2.f32 %v4336_v20  ;;  %v4217_v44 = vsub.f32 %v11000_v51, %v11399_v52  ;;  %v4258_v51 = vmul.f32 1.442695, %v4176_v15 }
 0x3b3   : > { %4366 = vadd.xlane.f32.xlu1 %v8064_v43  ;;  %8073 = vpow2.f32 %v4250_v0  ;;  %v8331_v43 = vld [vmem:[%s10627_s7 + $0xa0] sm:$0xff] }
 0x3b4   : > { %v8066_v4 = vpop.eup %8065  ;;  %v4340_v49 = vmul.f32 1.442695, %v4217_v44  ;;  %v11405_v50 = vpop.xlane.xlu1 %4094  ;;  %v4178_v0 = vsub.f32 %v8331_v43, %v11279_v7 }
 0x3b5   : > { %12907 = vst [vmem:[#allocation94_spill] sm:$0xff] %v11405_v50  ;;  %4460 = vadd.xlane.f32.xlu0 %v8066_v4  ;;  %v11407_v14 = vpop.xlane.xlu0 %4152  ;;  %v8068_v9 = vpop.eup %8067 }
 0x3b6   : > { %12908 = vst [vmem:[#allocation91_spill] sm:$0xff] %v11407_v14  ;;  %8075 = vpow2.f32 %v4340_v49  ;;  %v4219_v20 = vsub.f32 %v11012_v21, %v11407_v14  ;;  %v8070_v4 = vpop.eup %8069 }
 0x3b7   : > { %4370 = vadd.xlane.f32.xlu1 %v8068_v9  ;;  %8077 = vpow2.f32 %v4254_v45  ;;  %v4262_v9 = vmul.f32 1.442695, %v4178_v0  ;;  %v8332_v45 = vld [vmem:[%s10627_s7 + $0xb0] sm:$0xff] }
 0x3b8   : > { %v4344_v58 = vmul.f32 1.442695, %v4219_v20  ;;  %v11413_v16 = vpop.xlane.xlu1 %5056  ;;  %v4180_v15 = vsub.f32 %v8332_v45, %v11300_v27 }
 0x3b9   : > { %12909 = vst [vmem:[#allocation93_spill] sm:$0xff] %v11413_v16  ;;  %v11415_v44 = vpop.xlane.xlu0 %4156  ;;  %v8351_v16 = vld [vmem:[%s10627_s7 + $0x1d8] sm:$0xff] }
 0x3ba   : > { %12910 = vst [vmem:[#allocation96_spill] sm:$0xff] %v11415_v44  ;;  %8079 = vpow2.f32 %v4344_v58  ;;  %v4221_v49 = vsub.f32 %v11028_v19, %v11415_v44  ;;  %v4266_v52 = vmul.f32 1.442695, %v4180_v15  ;;  %v8333_v19 = vld [vmem:[%s10627_s7 + $0xc0] sm:$0xff] }
 0x3bb   : > { %4374 = vadd.xlane.f32.xlu1 %v8070_v4  ;;  %8081 = vpow2.f32 %v4258_v51  ;;  %v4182_v4 = vsub.f32 %v8333_v19, %v11321_v57  ;;  %v8335_v19 = vld [vmem:[%s10627_s7 + $0xe0] sm:$0xff] }
 0x3bc   : > { %v8072_v21 = vpop.eup %8071  ;;  %v4348_v14 = vmul.f32 1.442695, %v4221_v49  ;;  %v11421_v43 = vpop.xlane.xlu1 %5054 }
 0x3bd   : > { %12911 = vst [vmem:[#allocation95_spill] sm:$0xff] %v11421_v43  ;;  %4464 = vadd.xlane.f32.xlu0 %v8072_v21  ;;  %v8074_v20 = vpop.eup %8073  ;;  %v4270_v49 = vmul.f32 1.442695, %v4182_v4  ;;  %v8334_v21 = vld [vmem:[%s10627_s7 + $0xd0] sm:$0xff]  ;;  %v12915_v4 = vld [vmem:[#allocation73_spill] sm:$0xff] }
 0x3be   : > { %8083 = vpow2.f32 %v4348_v14  ;;  %v4184_v45 = vsub.f32 %v8334_v21, %v11344_v22  ;;  %vm4918_vm1 = vcmp.eq.s32.totalorder %v12915_v4, %v8750_v5  ;;  %v8337_v4 = vld [vmem:[%s10627_s7 + $0x100] sm:$0xff] }
 0x3bf   : > { %4378 = vadd.xlane.f32.xlu1 %v8074_v20  ;;  %8085 = vpow2.f32 %v4262_v9 }
 0x3c0   : > { %v8076_v58 = vpop.eup %8075  ;;  %v11425_v44 = vpop.xlane.xlu1 %4098  ;;  %8087 = vpow2.f32 %v4266_v52  ;;  %v4274_v20 = vmul.f32 1.442695, %v4184_v45 }
 0x3c1   : > { %12912 = vst [vmem:[#allocation97_spill] sm:$0xff] %v11425_v44  ;;  %4468 = vadd.xlane.f32.xlu0 %v8076_v58  ;;  %v8078_v51 = vpop.eup %8077  ;;  %8089 = vpow2.f32 %v4270_v49  ;;  %v4186_v58 = vsub.f32 %v8335_v19, %v11369_v25  ;;  %v4982_v49 = vsel %vm4918_vm1, %v10990_v1, 0.0 }
 0x3c2   : > { %8091 = vpow2.f32 %v4274_v20  ;;  %v4190_v20 = vsub.f32 %v8337_v4, %v11405_v50  ;;  %v8350_v50 = vld [vmem:[%s10627_s7 + $0x1c8] sm:$0xff] }
 0x3c3   : > { %4382 = vadd.xlane.f32.xlu1 %v8078_v51  ;;  %v4278_v51 = vmul.f32 1.442695, %v4186_v58 }
 0x3c4   : > { %v8080_v0 = vpop.eup %8079  ;;  %v11429_v14 = vpop.xlane.xlu1 %5060  ;;  %v4286_v1 = vmul.f32 1.442695, %v4190_v20  ;;  %v4988_v20 = vsel %vm4924_vm4, %v11030_v59, 0.0 }
 0x3c5   : > { %12913 = vst [vmem:[#allocation100_spill] sm:$0xff] %v11429_v14  ;;  %4472 = vadd.xlane.f32.xlu0 %v8080_v0  ;;  %v8082_v9 = vpop.eup %8081  ;;  %v8336_v0 = vld [vmem:[%s10627_s7 + $0xf0] sm:$0xff]  ;;  %8093 = vpow2.f32 %v4278_v51 }
 0x3c6   : > { %v4188_v21 = vsub.f32 %v8336_v0, %v11389_v18 }
 0x3c7   : > { %4386 = vadd.xlane.f32.xlu1 %v8082_v9 }
 0x3c8   : > { %v8084_v15 = vpop.eup %8083  ;;  %v11433_v43 = vpop.xlane.xlu1 %5058  ;;  %v4282_v19 = vmul.f32 1.442695, %v4188_v21 }
 0x3c9   : > { %12914 = vst [vmem:[#allocation99_spill] sm:$0xff] %v11433_v43  ;;  %4476 = vadd.xlane.f32.xlu0 %v8084_v15  ;;  %v8086_v52 = vpop.eup %8085  ;;  %v12917_v15 = vld [vmem:[#allocation82_spill] sm:$0xff] }
 0x3ca   : > { %v8088_v45 = vpop.eup %8087  ;;  %vm4920_vm2 = vcmp.eq.s32.totalorder %v12917_v15, %v8750_v5  ;;  %8095 = vpow2.f32 %v4282_v19 }
 0x3cb   : > { %4390 = vadd.xlane.f32.xlu1 %v8086_v52  ;;  %v4984_v52 = vsel %vm4920_vm2, %v11002_v32, 0.0  ;;  %v8090_v0 = vpop.eup %8089  ;;  %8097 = vpow2.f32 %v4286_v1 }
 0x3cc   : > { %v11439_v9 = vpop.xlane.xlu1 %4102  ;;  %v8092_v15 = vpop.eup %8091 }
 0x3cd   : > { %12916 = vst [vmem:[#allocation104_spill] sm:$0xff] %v11439_v9  ;;  %5102 = vadd.xlane.f32.xlu0 %v4982_v49  ;;  %v8338_v49 = vld [vmem:[%s10627_s7 + $0x110] sm:$0xff]  ;;  %v4194_v19 = vsub.f32 %v8339_v48, %v11439_v9  ;;  %v8341_v48 = vld [vmem:[%s10627_s7 + $0x140] sm:$0xff] }
 0x3ce   : > { %v4192_v51 = vsub.f32 %v8338_v49, %v11425_v44  ;;  %v8349_v44 = vld [vmem:[%s10627_s7 + $0x1b8] sm:$0xff] }
 0x3cf   : > { %4394 = vadd.xlane.f32.xlu1 %v8088_v45  ;;  %v4986_v45 = vsel %vm4922_vm3, %v11016_v47, 0.0  ;;  %v4294_v47 = vmul.f32 1.442695, %v4194_v19 }
 0x3d0   : > { %v11446_v58 = vpop.xlane.xlu1 %5064  ;;  %v4290_v32 = vmul.f32 1.442695, %v4192_v51 }
 0x3d1   : > { %12918 = vst [vmem:[#allocation106_spill] sm:$0xff] %v11446_v58  ;;  %5106 = vadd.xlane.f32.xlu0 %v4984_v52  ;;  %v8094_v52 = vpop.eup %8093 }
 0x3d2   : > { %8099 = vpow2.f32 %v4290_v32 }
 0x3d3   : > { %4398 = vadd.xlane.f32.xlu1 %v8090_v0  ;;  %v8340_v0 = vld [vmem:[%s10627_s7 + $0x130] sm:$0xff]  ;;  %8101 = vpow2.f32 %v4294_v47 }
 0x3d4   : > { %v11453_v21 = vpop.xlane.xlu1 %5062  ;;  %v8096_v1 = vpop.eup %8095 }
 0x3d5   : > { %12919 = vst [vmem:[#allocation103_spill] sm:$0xff] %v11453_v21  ;;  %5110 = vadd.xlane.f32.xlu0 %v4986_v45  ;;  %v12939_v21 = vld [vmem:[#allocation77_spill] sm:$0xff] }
 0x3d6   : > { %vm4919_vm6 = vcmp.eq.s32.totalorder %v12939_v21, %v8750_v5  ;;  %v8348_v21 = vld [vmem:[%s10627_s7 + $0x1b0] sm:$0xff] }
 0x3d7   : > { %4402 = vadd.xlane.f32.xlu1 %v8092_v15  ;;  %v8098_v15 = vpop.eup %8097 }
 0x3d8   : > { %v11460_v4 = vpop.xlane.xlu1 %4106 }
 0x3d9   : > { %12920 = vst [vmem:[#allocation108_spill] sm:$0xff] %v11460_v4  ;;  %5114 = vadd.xlane.f32.xlu0 %v4988_v20  ;;  %v4196_v49 = vsub.f32 %v8340_v0, %v11460_v4 }
 0x3db   : > { %4406 = vadd.xlane.f32.xlu1 %v8094_v52  ;;  %v4298_v51 = vmul.f32 1.442695, %v4196_v49  ;;  %v8342_v49 = vld [vmem:[%s10627_s7 + $0x150] sm:$0xff] }
 0x3dc   : > { %v11465_v56 = vpop.xlane.xlu1 %5068  ;;  %v8100_v19 = vpop.eup %8099 }
 0x3dd   : > { %12921 = vst [vmem:[#allocation107_spill] sm:$0xff] %v11465_v56  ;;  %8103 = vpow2.f32 %v4298_v51  ;;  %v8102_v47 = vpop.eup %8101 }
 0x3df   : > { %4410 = vadd.xlane.f32.xlu1 %v8096_v1 }
 0x3e0   : > { %v11467_v45 = vpop.xlane.xlu1 %5066 }
 0x3e1   : > { %12922 = vst [vmem:[#allocation34_spill] sm:$0xff] %v11467_v45 }
 0x3e3   : > { %4414 = vadd.xlane.f32.xlu1 %v8098_v15 }
 0x3e4   : > { %v11469_v59 = vpop.xlane.xlu1 %4110 }
 0x3e5   : > { %12923 = vst [vmem:[#allocation37_spill] sm:$0xff] %v11469_v59  ;;  %v4198_v32 = vsub.f32 %v8341_v48, %v11469_v59  ;;  %v11493_v59 = vpop.xlane.xlu0 %4352 }
 0x3e7   : > { %v4302_v20 = vmul.f32 1.442695, %v4198_v32  ;;  %4418 = vadd.xlane.f32.xlu1 %v8100_v19  ;;  %v8104_v51 = vpop.eup %8103  ;;  %v8343_v19 = vld [vmem:[%s10627_s7 + $0x160] sm:$0xff] }
 0x3e8   : > { %v11473_v52 = vpop.xlane.xlu1 %5072 }
 0x3e9   : > { %12924 = vst [vmem:[#allocation53_spill] sm:$0xff] %v11473_v52  ;;  %8105 = vpow2.f32 %v4302_v20 }
 0x3eb   : > { %4422 = vadd.xlane.f32.xlu1 %v8102_v47 }
 0x3ec   : > { %v11475_v0 = vpop.xlane.xlu1 %4114 }
 0x3ed   : > { %12925 = vst [vmem:[#allocation17_spill] sm:$0xff] %v11475_v0  ;;  %v4200_v1 = vsub.f32 %v8342_v49, %v11475_v0 }
 0x3ef   : > { %v4306_v15 = vmul.f32 1.442695, %v4200_v1  ;;  %4426 = vadd.xlane.f32.xlu1 %v8104_v51  ;;  %v8344_v1 = vld [vmem:[%s10627_s7 + $0x170] sm:$0xff] }
 0x3f0   : > { %v11479_v56 = vpop.xlane.xlu1 %5076 }
 0x3f1   : > { %12926 = vst [vmem:[#allocation42_spill] sm:$0xff] %v11479_v56  ;;  %8107 = vpow2.f32 %v4306_v15 }
 0x3f3   : > { %v8106_v48 = vpop.eup %8105 }
 0x3f4   : > { %v11481_v32 = vpop.xlane.xlu1 %4118  ;;  %4430 = vadd.xlane.f32.xlu1 %v8106_v48 }
 0x3f5   : > { %12927 = vst [vmem:[#allocation10_spill] sm:$0xff] %v11481_v32  ;;  %v4202_v20 = vsub.f32 %v8343_v19, %v11481_v32 }
 0x3f7   : > { %v4310_v47 = vmul.f32 1.442695, %v4202_v20  ;;  %v8345_v20 = vld [vmem:[%s10627_s7 + $0x180] sm:$0xff] }
 0x3f8   : > { %v11485_v52 = vpop.xlane.xlu1 %5080 }
 0x3f9   : > { %12928 = vst [vmem:[#allocation41_spill] sm:$0xff] %v11485_v52  ;;  %8109 = vpow2.f32 %v4310_v47 }
 0x3fb   : > { %v8108_v49 = vpop.eup %8107 }
 0x3fc   : > { %v11487_v0 = vpop.xlane.xlu1 %4122  ;;  %4434 = vadd.xlane.f32.xlu1 %v8108_v49  ;;  %v11501_v49 = vpop.xlane.xlu0 %4356 }
 0x3fd   : > { %12929 = vst [vmem:[#allocation57_spill] sm:$0xff] %v11487_v0  ;;  %v4204_v51 = vsub.f32 %v8344_v1, %v11487_v0 }
 0x3ff   : > { %v4314_v15 = vmul.f32 1.442695, %v4204_v51 }
 0x400   : > { %v11491_v56 = vpop.xlane.xlu1 %5084  ;;  %v11507_v0 = vpop.xlane.xlu0 %4360 }
 0x401   : > { %12930 = vst [vmem:[#allocation74_spill] sm:$0xff] %v11491_v56  ;;  %8111 = vpow2.f32 %v4314_v15  ;;  %v8346_v15 = vld [vmem:[%s10627_s7 + $0x190] sm:$0xff] }
 0x403   : > { %v8110_v48 = vpop.eup %8109 }
 0x404   : > { %v11495_v19 = vpop.xlane.xlu1 %4126  ;;  %4438 = vadd.xlane.f32.xlu1 %v8110_v48 }
 0x405   : > { %12931 = vst [vmem:[#allocation45_spill] sm:$0xff] %v11495_v19  ;;  %v4206_v47 = vsub.f32 %v8345_v20, %v11495_v19 }
 0x407   : > { %v4318_v52 = vmul.f32 1.442695, %v4206_v47  ;;  %v12935_v47 = vlaneseq }
 0x408   : > { %v11499_v32 = vpop.xlane.xlu1 %5088 }
 0x409   : > { %12932 = vst [vmem:[#allocation58_spill] sm:$0xff] %v11499_v32  ;;  %8113 = vpow2.f32 %v4318_v52  ;;  %v11512_v19 = vshrl.u32 %v12935_v47, 7  ;;  %v11517_v52 = vpop.xlane.xlu0 %4364 }
 0x40b   : > { %v8112_v1 = vpop.eup %8111  ;;  %v5132_v9 = vadd.s32 88, %v11512_v19  ;;  %v5136_v38 = vadd.s32 120, %v11512_v19  ;;  %v5150_v28 = vadd.s32 232, %v11512_v19 }
 0x40c   : > { %v11503_v51 = vpop.xlane.xlu1 %4130  ;;  %4442 = vadd.xlane.f32.xlu1 %v8112_v1  ;;  %v8347_v1 = vld [vmem:[%s10627_s7 + $0x1a0] sm:$0xff] }
 0x40d   : > { %12933 = vst [vmem:[#allocation66_spill] sm:$0xff] %v11503_v51  ;;  %v4208_v56 = vsub.f32 %v8346_v15, %v11503_v51  ;;  %v5122_v15 = vadd.s32 8, %v11512_v19 }
 0x40f   : > { %v4322_v48 = vmul.f32 1.442695, %v4208_v56  ;;  %v11522_v56 = vstv %s6140_s16 }
 0x410   : > { %v11509_v45 = vpop.xlane.xlu1 %5092  ;;  %v5187_v58 = vadd.s32 %v11522_v56, %v5122_v15  ;;  %v12941_v15 = vld [vmem:[#allocation81_spill] sm:$0xff]  ;;  %v5215_v53 = vadd.s32 %v11522_v56, %v5150_v28 }
 0x411   : > { %12934 = vst [vmem:[#allocation61_spill] sm:$0xff] %v11509_v45  ;;  %8115 = vpow2.f32 %v4322_v48  ;;  %v5124_v48 = vadd.s32 24, %v11512_v19  ;;  %vm4921_vm7 = vcmp.eq.s32.totalorder %v12941_v15, %v8750_v5 }
 0x412   : > { %v11559_v15 = vsel %vm4921_vm7, %v8351_v16, 0.0  ;;  %vm5251_vm14 = vcmp.lt.s32.totalorder %v5187_v58, 1024  ;;  %v5138_v58 = vadd.s32 136, %v11512_v19  ;;  %vm5279_vm8 = vcmp.lt.s32.totalorder %v5215_v53, 1024 }
 0x413   : > { %v8114_v20 = vpop.eup %8113 }
 0x414   : > { %v11514_v32 = vpop.xlane.xlu1 %4134  ;;  %4446 = vadd.xlane.f32.xlu1 %v8114_v20  ;;  %v12938_v20 = vld [vmem:[#allocation70_spill] sm:$0xff]  ;;  %v5203_v30 = vadd.s32 %v11522_v56, %v5138_v58 }
 0x415   : > { %12936 = vst [vmem:[#allocation78_spill] sm:$0xff] %v11514_v32  ;;  %v4210_v4 = vsub.f32 %v8347_v1, %v11514_v32  ;;  %vm4917_vm5 = vcmp.eq.s32.totalorder %v12938_v20, %v8750_v5  ;;  %v5126_v1 = vadd.s32 40, %v11512_v19  ;;  %v11532_v32 = vpop.xlane.xlu0 %4368  ;;  %v5134_v20 = vadd.s32 104, %v11512_v19 }
 0x416   : > { %v11553_v14 = vsel %vm4917_vm5, %v8349_v44, 0.0  ;;  %v5201_v5 = vadd.s32 %v11522_v56, %v5136_v38  ;;  %vm5267_vm2 = vcmp.lt.s32.totalorder %v5203_v30, 1024 }
 0x417   : > { %v4326_v51 = vmul.f32 1.442695, %v4210_v4  ;;  %v5128_v4 = vadd.s32 56, %v11512_v19  ;;  %v5191_v18 = vadd.s32 %v11522_v56, %v5126_v1  ;;  %v8353_v1 = vld [vmem:[%s10627_s7 + $0x1c0] sm:$0xff] }
 0x418   : > { %v11525_v45 = vpop.xlane.xlu1 %5096  ;;  %vm5265_vm1 = vcmp.lt.s32.totalorder %v5201_v5, 1024 }
 0x419   : > { %12937 = vst [vmem:[#allocation62_spill] sm:$0xff] %v11525_v45  ;;  %8117 = vpow2.f32 %v4326_v51  ;;  %v5189_v51 = vadd.s32 %v11522_v56, %v5124_v48  ;;  %v5130_v45 = vadd.s32 72, %v11512_v19  ;;  %v11571_v31 = vpop.xlane.xlu0 %4372  ;;  %vm5255_vm11 = vcmp.lt.s32.totalorder %v5191_v18, 1024 }
 0x41b   : > { %v8116_v47 = vpop.eup %8115  ;;  %vm5253_vm15 = vcmp.lt.s32.totalorder %v5189_v51, 1024  ;;  %v5195_v44 = vadd.s32 %v11522_v56, %v5130_v45  ;;  %v8354_v45 = vld [vmem:[%s10627_s7 + $0x1f8] sm:$0xff]  ;;  %v8355_v51 = vld [vmem:[%s10627_s7 + $0x1d0] sm:$0xff] }
 0x41c   : > { %v11539_v43 = vpop.xlane.xlu1 %4138  ;;  %4450 = vadd.xlane.f32.xlu1 %v8116_v47  ;;  %v11556_v47 = vsel %vm4919_vm6, %v8350_v50, 0.0  ;;  %v5197_v50 = vadd.s32 %v11522_v56, %v5132_v9  ;;  %v5140_v9 = vadd.s32 152, %v11512_v19  ;;  %v11586_v22 = vsel %vm4925_vm9, %v8354_v45, 0.0 }
 0x41d   : > { %12940 = vst [vmem:[#allocation21_spill] sm:$0xff] %v11539_v43  ;;  %v4212_v48 = vsub.f32 %v8348_v21, %v11539_v43  ;;  %v5193_v21 = vadd.s32 %v11522_v56, %v5128_v4  ;;  %vm5259_vm12 = vcmp.lt.s32.totalorder %v5195_v44, 1024  ;;  %v11612_v58 = vpop.xlane.xlu0 %4376  ;;  %vm5570_vm9 = vcmask 7168  }
 0x41e   : > { %vm5261_vm10 = vcmp.lt.s32.totalorder %v5197_v50, 1024  ;;  %v5205_v26 = vadd.s32 %v11522_v56, %v5140_v9 }
 0x41f   : > { %v4330_v43 = vmul.f32 1.442695, %v4212_v48  ;;  %v12943_v48 = vmov 0.0   ;;  %vm5257_vm13 = vcmp.lt.s32.totalorder %v5193_v21, 1024  ;;  %v8356_v21 = vld [vmem:[%s10627_s7 + $0x1e0] sm:$0xff] }
 0x420   : > { %v11569_v16 = vpop.xlane.xlu1 %4142  ;;  %v11578_v25 = vsel %vm5251_vm14, 1.0, %v12943_v48  ;;  %v11610_v38 = vsel %vm5257_vm13, 1.0, %v12943_v48  ;;  %v11622_v18 = vsel %vm5261_vm10, 1.0, %v12943_v48  ;;  %vm5269_vm3 = vcmp.lt.s32.totalorder %v5205_v26, 1024 }
 0x421   : > { %12942 = vst [vmem:[#allocation2_spill] sm:$0xff] %v11569_v16  ;;  %8119 = vpow2.f32 %v4330_v43  ;;  %v4214_v4 = vsub.f32 %v8353_v1, %v11569_v16  ;;  %v11590_v43 = vsel %vm5253_vm15, 1.0, %v12943_v48  ;;  %v11657_v62 = vsel %vm5269_vm3, 1.0, %v12943_v48 }
 0x422   : > { %8121 = vlog2.f32 %v11493_v59  ;;  %v5199_v59 = vadd.s32 %v11522_v56, %v5134_v20  ;;  %v5146_v20 = vadd.s32 200, %v11512_v19  ;;  %12947 = vst [vmem:[#allocation69_spill] sm:$0xff] %v11657_v62  ;;  %v5125_v62 = vadd.s32 32, %v11512_v19 }
 0x423   : > { %v8118_v57 = vpop.eup %8117  ;;  %v4334_v1 = vmul.f32 1.442695, %v4214_v4  ;;  %8123 = vlog2.f32 %v11501_v49  ;;  %v5142_v4 = vadd.s32 168, %v11512_v19  ;;  %v5144_v49 = vadd.s32 184, %v11512_v19 }
 0x424   : > { %v11594_v16 = vpop.xlane.xlu1 %4146  ;;  %4454 = vadd.xlane.f32.xlu1 %v8118_v57  ;;  %v11606_v57 = vsel %vm5255_vm11, 1.0, %v12943_v48  ;;  %vm5263_vm0 = vcmp.lt.s32.totalorder %v5199_v59, 1024  ;;  %v8357_v59 = vld [vmem:[%s10627_s7 + $0x1f0] sm:$0xff] }
 0x425   : > { %12944 = vst [vmem:[#allocation49_spill] sm:$0xff] %v11594_v16  ;;  %8125 = vpow2.f32 %v4334_v1  ;;  %v4216_v45 = vsub.f32 %v8355_v51, %v11594_v16  ;;  %v5148_v1 = vadd.s32 216, %v11512_v19  ;;  %v11618_v51 = vsel %vm5259_vm12, 1.0, %v12943_v48 }
 0x426   : > { %8127 = vlog2.f32 %v11507_v0  ;;  %v5207_v0 = vadd.s32 %v11522_v56, %v5142_v4  ;;  %v5209_v44 = vadd.s32 %v11522_v56, %v5144_v49  ;;  %v5152_v4 = vadd.s32 248, %v11512_v19 }
 0x427   : > { %v4338_v9 = vmul.f32 1.442695, %v4216_v45  ;;  %v5211_v45 = vadd.s32 %v11522_v56, %v5146_v20  ;;  %v5213_v50 = vadd.s32 %v11522_v56, %v5148_v1  ;;  %v5154_v49 = vadd.s32 264, %v11512_v19  ;;  %v11647_v1 = vpop.xlane.xlu0 %4380 }
 0x428   : > { %v11624_v16 = vpop.xlane.xlu1 %4150  ;;  %v5156_v20 = vadd.s32 280, %v11512_v19  ;;  %vm5271_vm4 = vcmp.lt.s32.totalorder %v5207_v0, 1024  ;;  %vm5273_vm5 = vcmp.lt.s32.totalorder %v5209_v44, 1024 }
 0x429   : > { %12945 = vst [vmem:[#allocation65_spill] sm:$0xff] %v11624_v16  ;;  %8129 = vpow2.f32 %v4338_v9  ;;  %v4218_v29 = vsub.f32 %v8356_v21, %v11624_v16  ;;  %v11636_v21 = vsel %vm5263_vm0, 1.0, %v12943_v48  ;;  %vm5275_vm6 = vcmp.lt.s32.totalorder %v5211_v45, 1024 }
 0x42a   : > { %8131 = vlog2.f32 %v11517_v52  ;;  %v11645_v52 = vsel %vm5265_vm1, 1.0, %v12943_v48  ;;  %vm5277_vm7 = vcmp.lt.s32.totalorder %v5213_v50, 1024  ;;  %v11665_v0 = vsel %vm5271_vm4, 1.0, %v12943_v48 }
 0x42b   : > { %v8120_v27 = vpop.eup %8119  ;;  %v4342_v39 = vmul.f32 1.442695, %v4218_v29  ;;  %v11651_v29 = vsel %vm5267_vm2, 1.0, %v12943_v48  ;;  %12948 = vst [vmem:[#allocation3_spill] sm:$0xff] %v11665_v0  ;;  %v5190_v50 = vadd.s32 %v11522_v56, %v5125_v62 }
 0x42c   : > { %v8122_v9 = vpop.eup %8121  ;;  %v11641_v16 = vpop.xlane.xlu1 %4154  ;;  %4458 = vadd.xlane.f32.xlu1 %v8120_v27 }
 0x42d   : > { %12946 = vst [vmem:[#allocation20_spill] sm:$0xff] %v11641_v16  ;;  %8133 = vpow2.f32 %v4342_v39  ;;  %v4220_v7 = vsub.f32 %v8357_v59, %v11641_v16  ;;  %v8124_v34 = vpop.eup %8123  ;;  %v4481_v5 = vmul.f32 0.6931472, %v8122_v9  ;;  %v5217_v39 = vadd.s32 %v11522_v56, %v5152_v4 }
 0x42e   : > { %8135 = vlog2.f32 %v11532_v32  ;;  %v5219_v59 = vadd.s32 %v11522_v56, %v5154_v49  ;;  %v5221_v16 = vadd.s32 %v11522_v56, %v5156_v20  ;;  %v5123_v9 = vadd.s32 16, %v11512_v19 }
 0x42f   : > { %v8126_v27 = vpop.eup %8125  ;;  %v4346_v30 = vmul.f32 1.442695, %v4220_v7  ;;  %v4485_v7 = vmul.f32 0.6931472, %v8124_v34  ;;  %v11671_v32 = vsel %vm5273_vm5, 1.0, %v12943_v48  ;;  %v11675_v4 = vsel %vm5275_vm6, 1.0, %v12943_v48 }
 0x430   : > { %v4351_v26 = vpop.xlane.xlu1 %4350  ;;  %4462 = vadd.xlane.f32.xlu1 %v8126_v27  ;;  %v8128_v28 = vpop.eup %8127  ;;  %12949 = vst [vmem:[#allocation38_spill] sm:$0xff] %v11671_v32  ;;  %12950 = vst [vmem:[#allocation46_spill] sm:$0xff] %v11675_v4  ;;  %v4607_v20 = vadd.f32 %v4481_v5, %v11059_v6  ;;  %v5127_v34 = vadd.s32 48, %v11512_v19  ;;  %vm5281_vm14 = vcmp.lt.s32.totalorder %v5217_v39, 1024  ;;  %vm5283_vm15 = vcmp.lt.s32.totalorder %v5219_v59, 1024 }
 0x431   : > { %8137 = vpow2.f32 %v4346_v30  ;;  %v11678_v27 = vpop.xlane.xlu0 %4384  ;;  %v11682_v30 = vsel %vm5277_vm7, 1.0, %v12943_v48  ;;  %vm5285_vm11 = vcmp.lt.s32.totalorder %v5221_v16, 1024  ;;  %v5186_v6 = vadd.s32 %v11522_v56, %v11512_v19 }
 0x432   : > { %8139 = vlog2.f32 %v4351_v26  ;;  %12951 = vst [vmem:[#allocation50_spill] sm:$0xff] %v11682_v30  ;;  %v5188_v5 = vadd.s32 %v11522_v56, %v5123_v9  ;;  %v4609_v26 = vadd.f32 %v4485_v7, %v11080_v37  ;;  %v4489_v30 = vmul.f32 0.6931472, %v8128_v28 }
 0x433   : > { %v8130_v49 = vpop.eup %8129  ;;  %8141 = vlog2.f32 %v11571_v31  ;;  %v11693_v31 = vsel %vm5279_vm8, 1.0, %v12943_v48  ;;  %v5129_v4 = vadd.s32 64, %v11512_v19  ;;  %v5443_v32 = vsub.f32 %v4607_v20, %v11074_v24 }
 0x434   : > { %4466 = vadd.xlane.f32.xlu1 %v8130_v49  ;;  %v4355_v44 = vpop.xlane.xlu1 %4354  ;;  %v8132_v45 = vpop.eup %8131  ;;  %v11699_v0 = vsel %vm5281_vm14, 1.0, %v12943_v48  ;;  %v5158_v9 = vadd.s32 296, %v11512_v19  ;;  %v5192_v62 = vadd.s32 %v11522_v56, %v5127_v34  ;;  %v11705_v37 = vsel %vm5283_vm15, 1.0, %v12943_v48 }
 0x435   : > { %8143 = vlog2.f32 %v4355_v44  ;;  %v4493_v44 = vmul.f32 0.6931472, %v8132_v45  ;;  %12952 = vst [vmem:[#allocation54_spill] sm:$0xff] %v11705_v37  ;;  %v11709_v53 = vsel %vm5285_vm11, 1.0, %v12943_v48  ;;  %v5131_v24 = vadd.s32 80, %v11512_v19  ;;  %v11712_v39 = vpop.xlane.xlu0 %4388 }
 0x436   : > { %12953 = vst [vmem:[#allocation73_spill] sm:$0xff] %v11709_v53  ;;  %vm5250_vm13 = vcmp.lt.s32.totalorder %v5186_v6, 1024  ;;  %vm5252_vm12 = vcmp.lt.s32.totalorder %v5188_v5, 1024  ;;  %vm5254_vm10 = vcmp.lt.s32.totalorder %v5190_v50, 1024  ;;  %v5445_v20 = vsub.f32 %v4609_v26, %v11098_v41 }
 0x437   : > { %v8134_v49 = vpop.eup %8133  ;;  %v4611_v59 = vadd.f32 %v4489_v30, %v11108_v55  ;;  %v5194_v16 = vadd.s32 %v11522_v56, %v5129_v4  ;;  %v5507_v45 = vmul.f32 %v11578_v25, %v5443_v32  ;;  %vm5256_vm0 = vcmp.lt.s32.totalorder %v5192_v62, 1024  ;;  %v12954_v62 = vld [vmem:[#allocation86_spill] sm:$0xff] }
 0x438   : > { %4470 = vadd.xlane.f32.xlu1 %v8134_v49  ;;  %v4359_v28 = vpop.xlane.xlu1 %4358  ;;  %v8136_v7 = vpop.eup %8135  ;;  %v11720_v49 = vadd.s32 %v11522_v56, %v5158_v9  ;;  %v5133_v53 = vadd.s32 96, %v11512_v19  ;;  %v11725_v41 = vadd.s32 312, %v11512_v19  ;;  %v6141_v55 = vsel %vm5250_vm13, 1.0, %v12943_v48 }
 0x439   : > { %8145 = vlog2.f32 %v4359_v28  ;;  %v4613_v28 = vadd.f32 %v4493_v44, %v11118_v3  ;;  %v5196_v4 = vadd.s32 %v11522_v56, %v5131_v24  ;;  %v6143_v32 = vsel %vm5252_vm12, 1.0, %v12943_v48  ;;  %v11743_v24 = vpop.xlane.xlu0 %4392 }
 0x43a   : > { %8147 = vlog2.f32 %v11612_v58  ;;  %v11734_v30 = vsel %vm5254_vm10, 1.0, %v12943_v48  ;;  %v5509_v26 = vmul.f32 %v11590_v43, %v5445_v20  ;;  %v5447_v9 = vsub.f32 %v4611_v59, %v11093_v2 }
 0x43b   : > { %v8138_v34 = vpop.eup %8137  ;;  %v11740_v6 = vsel %vm5256_vm0, 1.0, %v12943_v48  ;;  %vm5258_vm1 = vcmp.lt.s32.totalorder %v5194_v16, 1024  ;;  %v4497_v5 = vmul.f32 0.6931472, %v8136_v7  ;;  %vm5260_vm2 = vcmp.lt.s32.totalorder %v5196_v4, 1024 }
 0x43c   : > { %v8140_v37 = vpop.eup %8139  ;;  %4474 = vadd.xlane.f32.xlu1 %v8138_v34  ;;  %v4363_v58 = vpop.xlane.xlu1 %4362  ;;  %v5198_v34 = vadd.s32 %v11522_v56, %v5133_v53  ;;  %v11752_v59 = vsel %vm5258_vm1, 1.0, %v12943_v48  ;;  %v5135_v7 = vadd.s32 112, %v11512_v19  ;;  %v5511_v53 = vmul.f32 %v11606_v57, %v5447_v9 }
 0x43d   : > { %v4479_v25 = vmul.f32 0.6931472, %v8140_v37  ;;  %8149 = vlog2.f32 %v4363_v58  ;;  %v8142_v3 = vpop.eup %8141  ;;  %v5572_v37 = vsel %vm5570_vm9, %v5507_v45, 0.0  ;;  %v5449_v58 = vsub.f32 %v4613_v28, %v11121_v12  ;;  %v12955_v45 = vld [vmem:[#allocation98_spill] sm:$0xff] }
 0x43e   : > { %8151 = vlog2.f32 %v11647_v1  ;;  %v4501_v12 = vmul.f32 0.6931472, %v8142_v3  ;;  %v11760_v4 = vsel %vm5260_vm2, 1.0, %v12943_v48  ;;  %vm5262_vm3 = vcmp.lt.s32.totalorder %v5198_v34, 1024 }
 0x43f   : > { %v8144_v44 = vpop.eup %8143  ;;  %v4606_v50 = vadd.f32 %v4479_v25, %v11064_v40  ;;  %v5576_v40 = vsel %vm5570_vm9, %v5509_v26, 0.0  ;;  %v5137_v9 = vadd.s32 128, %v11512_v19  ;;  %vm5287_vm12 = vcmp.lt.s32.totalorder %v11720_v49, 1024 }
 0x440   : > { %v4483_v2 = vmul.f32 0.6931472, %v8144_v44  ;;  %5100 = vadd.xlane.f32.xlu1 %v11553_v14  ;;  %v4367_v43 = vpop.xlane.xlu1 %4366  ;;  %v4615_v14 = vadd.f32 %v4497_v5, %v12955_v45  ;;  %v5513_v44 = vmul.f32 %v11610_v38, %v5449_v58  ;;  %v5580_v5 = vsel %vm5570_vm9, %v5511_v53, 0.0  ;;  %v12957_v38 = vld [vmem:[#allocation101_spill] sm:$0xff] }
 0x441   : > { %v5442_v20 = vsub.f32 %v4606_v50, %v12954_v62  ;;  %8153 = vlog2.f32 %v4367_v43  ;;  %v12956_v50 = vld [vmem:[#allocation85_spill] sm:$0xff]  ;;  %v4617_v58 = vadd.f32 %v4501_v12, %v12957_v38  ;;  %v11777_v45 = vsel %vm5262_vm3, 1.0, %v12943_v48 }
 0x442   : > { %v4608_v1 = vadd.f32 %v4483_v2, %v11090_v13  ;;  %8155 = vlog2.f32 %v11678_v27  ;;  %v11766_v13 = vpop.xlane.xlu0 %4396  ;;  %v5202_v12 = vadd.s32 %v11522_v56, %v5137_v9 }
 0x443   : > { %v8146_v16 = vpop.eup %8145  ;;  %v5506_v28 = vmul.f32 %v6141_v55, %v5442_v20  ;;  %v5200_v55 = vadd.s32 %v11522_v56, %v5135_v7  ;;  %v12958_v20 = vld [vmem:[#allocation102_spill] sm:$0xff]  ;;  %v5584_v7 = vsel %vm5570_vm9, %v5513_v44, 0.0 }
 0x444   : > { %v8148_v25 = vpop.eup %8147  ;;  %v5444_v26 = vsub.f32 %v4608_v1, %v12956_v50  ;;  %v4487_v43 = vmul.f32 0.6931472, %v8146_v16  ;;  %5104 = vadd.xlane.f32.xlu1 %v11556_v47  ;;  %v4371_v57 = vpop.xlane.xlu1 %4370  ;;  %v5451_v47 = vsub.f32 %v4615_v14, %v12958_v20  ;;  %v12959_v50 = vld [vmem:[#allocation90_spill] sm:$0xff]  ;;  %v12960_v14 = vld [vmem:[#allocation4_spill] sm:$0xff]  ;;  %vm5266_vm5 = vcmp.lt.s32.totalorder %v5202_v12, 1024 }
 0x445   : > { %v5571_v3 = vsel %vm5570_vm9, %v5506_v28, 0.0  ;;  %8157 = vlog2.f32 %v4371_v57  ;;  %v4505_v1 = vmul.f32 0.6931472, %v8148_v25  ;;  %vm5264_vm4 = vcmp.lt.s32.totalorder %v5200_v55, 1024 }
 0x446   : > { %v5508_v27 = vmul.f32 %v6143_v32, %v5444_v26  ;;  %v4610_v2 = vadd.f32 %v4487_v43, %v11086_v17  ;;  %v5573_v16 = vadd.f32 %v5572_v37, %v5571_v3  ;;  %v5453_v34 = vsub.f32 %v4617_v58, %v12960_v14  ;;  %v12961_v3 = vld [vmem:[#allocation5_spill] sm:$0xff]  ;;  %v11790_v38 = vpop.xlane.xlu0 %4400 }
 0x447   : > { %v8150_v62 = vpop.eup %8149  ;;  %v5515_v43 = vmul.f32 %v11618_v51, %v5451_v47 }
 0x448   : > { %v5574_v28 = vsel %vm5570_vm9, %v5508_v27, 0.0  ;;  %v5446_v53 = vsub.f32 %v4610_v2, %v12959_v50  ;;  %v4491_v57 = vmul.f32 0.6931472, %v8150_v62  ;;  %5108 = vadd.xlane.f32.xlu1 %v11559_v15  ;;  %v4375_v32 = vpop.xlane.xlu1 %4374  ;;  %v8152_v37 = vpop.eup %8151  ;;  %v4619_v15 = vadd.f32 %v4505_v1, %v12961_v3  ;;  %v12962_v62 = vld [vmem:[#allocation89_spill] sm:$0xff] }
 0x449   : > { %v5575_v17 = vadd.f32 %v5574_v28, %v5573_v16  ;;  %8159 = vlog2.f32 %v4375_v32  ;;  %v5139_v2 = vadd.s32 144, %v11512_v19  ;;  %v4509_v51 = vmul.f32 0.6931472, %v8152_v37 }
 0x44a   : > { %8161 = vlog2.f32 %v11712_v39  ;;  %v5510_v25 = vmul.f32 %v11734_v30, %v5446_v53  ;;  %v4612_v44 = vadd.f32 %v4491_v57, %v11111_v42  ;;  %v11798_v42 = vsel %vm5264_vm4, 1.0, %v12943_v48  ;;  %v4405_v14 = vpop.xlane.xlu0 %4404 }
 0x44b   : > { %v8154_v26 = vpop.eup %8153  ;;  %v5577_v27 = vadd.f32 %v5576_v40, %v5575_v17  ;;  %v5517_v40 = vmul.f32 %v11622_v18, %v5453_v34  ;;  %v5204_v50 = vadd.s32 %v11522_v56, %v5139_v2  ;;  %v5141_v53 = vadd.s32 160, %v11512_v19  ;;  %v12963_v17 = vld [vmem:[#allocation105_spill] sm:$0xff] }
 0x44c   : > { %v5578_v9 = vsel %vm5570_vm9, %v5510_v25, 0.0  ;;  %v5448_v58 = vsub.f32 %v4612_v44, %v12962_v62  ;;  %v4495_v20 = vmul.f32 0.6931472, %v8154_v26  ;;  %5112 = vadd.xlane.f32.xlu1 %v11562_v10  ;;  %v4379_v39 = vpop.xlane.xlu1 %4378  ;;  %v8156_v47 = vpop.eup %8155  ;;  %v5455_v10 = vsub.f32 %v4619_v15, %v11190_v23  ;;  %v12965_v2 = vld [vmem:[#allocation9_spill] sm:$0xff] }
 0x44d   : > { %v5579_v30 = vadd.f32 %v5578_v9, %v5577_v27  ;;  %8163 = vlog2.f32 %v4379_v39  ;;  %v5588_v57 = vsel %vm5570_vm9, %v5515_v43, 0.0  ;;  %v11814_v23 = vsel %vm5266_vm5, 1.0, %v12943_v48 }
 0x44e   : > { %8165 = vlog2.f32 %v11743_v24  ;;  %v5512_v1 = vmul.f32 %v11740_v6, %v5448_v58  ;;  %v4614_v16 = vadd.f32 %v4495_v20, %v11129_v35  ;;  %v12964_v24 = vld [vmem:[#allocation7_spill] sm:$0xff]  ;;  %v4513_v25 = vmul.f32 0.6931472, %v8156_v47 }
 0x44f   : > { %v8158_v28 = vpop.eup %8157  ;;  %v5581_v55 = vadd.f32 %v5580_v5, %v5579_v30  ;;  %v4621_v35 = vadd.f32 %v4509_v51, %v12964_v24  ;;  %v5592_v5 = vsel %vm5570_vm9, %v5517_v40, 0.0  ;;  %vm5268_vm6 = vcmp.lt.s32.totalorder %v5204_v50, 1024  ;;  %v4409_v40 = vpop.xlane.xlu0 %4408 }
 0x450   : > { %v5582_v32 = vsel %vm5570_vm9, %v5512_v1, 0.0  ;;  %v5450_v18 = vsub.f32 %v4614_v16, %v12963_v17  ;;  %v4499_v37 = vmul.f32 0.6931472, %v8158_v28  ;;  %5116 = vadd.xlane.f32.xlu1 %v11586_v22  ;;  %v4383_v6 = vpop.xlane.xlu1 %4382  ;;  %v5519_v22 = vmul.f32 %v11636_v21, %v5455_v10  ;;  %v12966_v21 = vld [vmem:[#allocation6_spill] sm:$0xff] }
 0x451   : > { %v5583_v34 = vadd.f32 %v5582_v32, %v5581_v55  ;;  %8167 = vlog2.f32 %v4383_v6  ;;  %v5206_v15 = vadd.s32 %v11522_v56, %v5141_v53  ;;  %v12967_v10 = vld [vmem:[#allocation14_spill] sm:$0xff] }
 0x452   : > { %v5514_v44 = vmul.f32 %v11752_v59, %v5450_v18  ;;  %v4616_v26 = vadd.f32 %v4499_v37, %v11156_v36  ;;  %8169 = vlog2.f32 %v11766_v13  ;;  %v5457_v59 = vsub.f32 %v4621_v35, %v11215_v8  ;;  %v12968_v37 = vld [vmem:[#allocation8_spill] sm:$0xff] }
 0x453   : > { %v8160_v43 = vpop.eup %8159  ;;  %v5585_v3 = vadd.f32 %v5584_v7, %v5583_v34  ;;  %v5143_v36 = vadd.s32 176, %v11512_v19  ;;  %v4623_v7 = vadd.f32 %v4513_v25, %v12966_v21  ;;  %v11830_v13 = vsel %vm5268_vm6, 1.0, %v12943_v48 }
 0x454   : > { %v8162_v27 = vpop.eup %8161  ;;  %v5586_v12 = vsel %vm5570_vm9, %v5514_v44, 0.0  ;;  %v5452_v9 = vsub.f32 %v4616_v26, %v12965_v2  ;;  %v4503_v62 = vmul.f32 0.6931472, %v8160_v43  ;;  %v4387_v58 = vpop.xlane.xlu1 %4386  ;;  %vm5270_vm7 = vcmp.lt.s32.totalorder %v5206_v15, 1024  ;;  %v12969_v2 = vld [vmem:[#allocation12_spill] sm:$0xff] }
 0x455   : > { %v5587_v20 = vadd.f32 %v5586_v12, %v5585_v3  ;;  %8171 = vlog2.f32 %v4387_v58  ;;  %v4517_v47 = vmul.f32 0.6931472, %v8162_v27  ;;  %v5145_v8 = vadd.s32 192, %v11512_v19 }
 0x456   : > { %v5516_v39 = vmul.f32 %v11760_v4, %v5452_v9  ;;  %v4618_v51 = vadd.f32 %v4503_v62, %v11181_v61  ;;  %8173 = vlog2.f32 %v11790_v38  ;;  %v5521_v61 = vmul.f32 %v11645_v52, %v5457_v59 }
 0x457   : > { %v8164_v30 = vpop.eup %8163  ;;  %v5589_v1 = vadd.f32 %v5588_v57, %v5587_v20  ;;  %v5208_v32 = vadd.s32 %v11522_v56, %v5143_v36  ;;  %v5459_v57 = vsub.f32 %v4623_v7, %v11240_v63  ;;  %v4625_v6 = vadd.f32 %v4517_v47, %v12968_v37  ;;  %v12970_v7 = vld [vmem:[#allocation25_spill] sm:$0xff]  ;;  %v12975_v37 = vld [vmem:[#allocation28_spill] sm:$0xff] }
 0x458   : > { %v8166_v16 = vpop.eup %8165  ;;  %v5590_v28 = vsel %vm5570_vm9, %v5516_v39, 0.0  ;;  %v5454_v55 = vsub.f32 %v4618_v51, %v12967_v10  ;;  %v4507_v4 = vmul.f32 0.6931472, %v8164_v30  ;;  %v4391_v50 = vpop.xlane.xlu1 %4390  ;;  %v5210_v34 = vadd.s32 %v11522_v56, %v5145_v8  ;;  %v12971_v47 = vld [vmem:[#allocation69_spill] sm:$0xff] }
 0x459   : > { %v5591_v53 = vadd.f32 %v5590_v28, %v5589_v1  ;;  %8175 = vlog2.f32 %v4391_v50  ;;  %v4521_v24 = vmul.f32 0.6931472, %v8166_v16  ;;  %v5596_v52 = vsel %vm5570_vm9, %v5519_v22, 0.0 }
 0x45a   : > { %8177 = vlog2.f32 %v4405_v14  ;;  %v5518_v17 = vmul.f32 %v11777_v45, %v5454_v55  ;;  %v4620_v18 = vadd.f32 %v4507_v4, %v11206_v46  ;;  %v5600_v14 = vsel %vm5570_vm9, %v5521_v61, 0.0  ;;  %v4413_v45 = vpop.xlane.xlu0 %4412 }
 0x45b   : > { %v8168_v38 = vpop.eup %8167  ;;  %v5593_v35 = vadd.f32 %v5592_v5, %v5591_v53  ;;  %v11849_v46 = vsel %vm5270_vm7, 1.0, %v12943_v48  ;;  %v5523_v3 = vmul.f32 %v11651_v29, %v5459_v57  ;;  %vm5272_vm8 = vcmp.lt.s32.totalorder %v5208_v32, 1024  ;;  %v12974_v53 = vld [vmem:[#allocation11_spill] sm:$0xff] }
 0x45c   : > { %v5594_v25 = vsel %vm5570_vm9, %v5518_v17, 0.0  ;;  %v5456_v44 = vsub.f32 %v4620_v18, %v11224_v54  ;;  %v4511_v26 = vmul.f32 0.6931472, %v8168_v38  ;;  %v4395_v63 = vpop.xlane.xlu1 %4394  ;;  %v8170_v5 = vpop.eup %8169  ;;  %v5461_v12 = vsub.f32 %v4625_v6, %v11263_v60 }
 0x45d   : > { %v5595_v43 = vadd.f32 %v5594_v25, %v5593_v35  ;;  %8179 = vlog2.f32 %v4395_v63  ;;  %v4627_v9 = vadd.f32 %v4521_v24, %v12969_v2  ;;  %vm5274_vm14 = vcmp.lt.s32.totalorder %v5210_v34, 1024  ;;  %v12979_v2 = vld [vmem:[#allocation13_spill] sm:$0xff] }
 0x45e   : > { %v5520_v22 = vmul.f32 %v11798_v42, %v5456_v44  ;;  %v4622_v27 = vadd.f32 %v4511_v26, %v11231_v11  ;;  %8181 = vlog2.f32 %v4409_v40  ;;  %v4525_v29 = vmul.f32 0.6931472, %v8170_v5  ;;  %v12972_v40 = vld [vmem:[#allocation30_spill] sm:$0xff]  ;;  %v4417_v8 = vpop.xlane.xlu0 %4416 }
 0x45f   : > { %v8172_v54 = vpop.eup %8171  ;;  %v5597_v62 = vadd.f32 %v5596_v52, %v5595_v43  ;;  %v11859_v42 = vsel %vm5272_vm8, 1.0, %v12943_v48  ;;  %v5604_v60 = vsel %vm5570_vm9, %v5523_v3, 0.0  ;;  %v5147_v51 = vadd.s32 208, %v11512_v19  ;;  %v12976_v52 = vld [vmem:[#allocation3_spill] sm:$0xff] }
 0x460   : > { %v5598_v15 = vsel %vm5570_vm9, %v5520_v22, 0.0  ;;  %v5458_v58 = vsub.f32 %v4622_v27, %v11247_v33  ;;  %v4515_v59 = vmul.f32 0.6931472, %v8172_v54  ;;  %v4399_v20 = vpop.xlane.xlu1 %4398  ;;  %v8174_v11 = vpop.eup %8173  ;;  %v5525_v33 = vmul.f32 %v12971_v47, %v5461_v12  ;;  %v12978_v3 = vld [vmem:[#allocation39_spill] sm:$0xff]  ;;  %v12983_v47 = vld [vmem:[#allocation38_spill] sm:$0xff] }
 0x461   : > { %v5599_v36 = vadd.f32 %v5598_v15, %v5597_v62  ;;  %8183 = vlog2.f32 %v4399_v20  ;;  %v5463_v1 = vsub.f32 %v4627_v9, %v12972_v40  ;;  %v11869_v28 = vsel %vm5274_vm14, 1.0, %v12943_v48  ;;  %v12980_v15 = vld [vmem:[#allocation35_spill] sm:$0xff] }
 0x462   : > { %v5522_v21 = vmul.f32 %v11814_v23, %v5458_v58  ;;  %v4624_v39 = vadd.f32 %v4515_v59, %v12970_v7  ;;  %8185 = vlog2.f32 %v4413_v45  ;;  %v12973_v23 = vld [vmem:[#allocation26_spill] sm:$0xff]  ;;  %v4629_v32 = vadd.f32 %v4525_v29, %v12974_v53  ;;  %v4421_v22 = vpop.xlane.xlu0 %4420  ;;  %v12981_v29 = vld [vmem:[#allocation16_spill] sm:$0xff]  ;;  %v12982_v7 = vld [vmem:[#allocation43_spill] sm:$0xff] }
 0x463   : > { %v8176_v30 = vpop.eup %8175  ;;  %v5601_v16 = vadd.f32 %v5600_v14, %v5599_v36  ;;  %v5149_v17 = vadd.s32 224, %v11512_v19  ;;  %v4529_v18 = vmul.f32 0.6931472, %v8174_v11  ;;  %v5212_v24 = vadd.s32 %v11522_v56, %v5147_v51  ;;  %v12977_v14 = vld [vmem:[#allocation32_spill] sm:$0xff] }
 0x464   : > { %v8178_v10 = vpop.eup %8177  ;;  %v5602_v55 = vsel %vm5570_vm9, %v5522_v21, 0.0  ;;  %v5460_v4 = vsub.f32 %v4624_v39, %v12973_v23  ;;  %v4519_v50 = vmul.f32 0.6931472, %v8176_v30  ;;  %v4403_v61 = vpop.xlane.xlu1 %4402  ;;  %v5608_v34 = vsel %vm5570_vm9, %v5525_v33, 0.0 }
 0x465   : > { %v5603_v57 = vadd.f32 %v5602_v55, %v5601_v16  ;;  %8187 = vlog2.f32 %v4403_v61  ;;  %v5527_v25 = vmul.f32 %v12976_v52, %v5463_v1  ;;  %v4533_v44 = vmul.f32 0.6931472, %v8178_v10  ;;  %v12984_v1 = vld [vmem:[#allocation51_spill] sm:$0xff] }
 0x466   : > { %v5524_v38 = vmul.f32 %v11830_v13, %v5460_v4  ;;  %v4626_v6 = vadd.f32 %v4519_v50, %v12975_v37  ;;  %8189 = vlog2.f32 %v4417_v8  ;;  %v5465_v13 = vsub.f32 %v4629_v32, %v12978_v3  ;;  %v12985_v55 = vld [vmem:[#allocation47_spill] sm:$0xff]  ;;  %v4425_v52 = vpop.xlane.xlu0 %4424 }
 0x467   : > { %v8180_v35 = vpop.eup %8179  ;;  %v5605_v26 = vadd.f32 %v5604_v60, %v5603_v57  ;;  %v5214_v54 = vadd.s32 %v11522_v56, %v5149_v17  ;;  %v4631_v9 = vadd.f32 %v4529_v18, %v12979_v2  ;;  %vm5276_vm15 = vcmp.lt.s32.totalorder %v5212_v24, 1024  ;;  %v12986_v50 = vld [vmem:[#allocation63_spill] sm:$0xff] }
 0x468   : > { %v5606_v63 = vsel %vm5570_vm9, %v5524_v38, 0.0  ;;  %v5462_v45 = vsub.f32 %v4626_v6, %v12977_v14  ;;  %v4523_v43 = vmul.f32 0.6931472, %v8180_v35  ;;  %v4407_v5 = vpop.xlane.xlu1 %4406  ;;  %v8182_v12 = vpop.eup %8181  ;;  %v5612_v20 = vsel %vm5570_vm9, %v5527_v25, 0.0  ;;  %v12987_v18 = vld [vmem:[#allocation55_spill] sm:$0xff] }
 0x469   : > { %v5607_v27 = vadd.f32 %v5606_v63, %v5605_v26  ;;  %8191 = vlog2.f32 %v4407_v5  ;;  %v4633_v36 = vadd.f32 %v4533_v44, %v12981_v29  ;;  %v5151_v60 = vadd.s32 240, %v11512_v19  ;;  %v12988_v26 = vld [vmem:[#allocation46_spill] sm:$0xff]  ;;  %v12989_v63 = vld [vmem:[#allocation15_spill] sm:$0xff] }
 0x46a   : > { %v5526_v62 = vmul.f32 %v11849_v46, %v5462_v45  ;;  %v4628_v58 = vadd.f32 %v4523_v43, %v12980_v15  ;;  %8193 = vlog2.f32 %v4421_v22  ;;  %v5529_v46 = vmul.f32 %v12983_v47, %v5465_v13  ;;  %v12990_v43 = vld [vmem:[#allocation59_spill] sm:$0xff]  ;;  %v12991_v13 = vld [vmem:[#allocation50_spill] sm:$0xff] }
 0x46b   : > { %v8184_v59 = vpop.eup %8183  ;;  %v5609_v11 = vadd.f32 %v5608_v34, %v5607_v27  ;;  %vm5278_vm11 = vcmp.lt.s32.totalorder %v5214_v54, 1024  ;;  %v5467_v8 = vsub.f32 %v4631_v9, %v12984_v1  ;;  %v4537_v16 = vmul.f32 0.6931472, %v8182_v12  ;;  %v12992_v2 = vld [vmem:[#allocation67_spill] sm:$0xff] }
 0x46c   : > { %v5610_v21 = vsel %vm5570_vm9, %v5526_v62, 0.0  ;;  %v5464_v39 = vsub.f32 %v4628_v58, %v12982_v7  ;;  %v4527_v51 = vmul.f32 0.6931472, %v8184_v59  ;;  %v4411_v30 = vpop.xlane.xlu1 %4410  ;;  %v8186_v40 = vpop.eup %8185  ;;  %v5469_v61 = vsub.f32 %v4633_v36, %v12986_v50  ;;  %v12993_v58 = vld [vmem:[#allocation19_spill] sm:$0xff] }
 0x46d   : > { %v5611_v33 = vadd.f32 %v5610_v21, %v5609_v11  ;;  %8195 = vlog2.f32 %v4411_v30  ;;  %v6167_v32 = vsel %vm5276_vm15, 1.0, %v12943_v48  ;;  %v5216_v57 = vadd.s32 %v11522_v56, %v5151_v60  ;;  %v12994_v11 = vld [vmem:[#allocation75_spill] sm:$0xff] }
 0x46e   : > { %v5528_v10 = vmul.f32 %v11859_v42, %v5464_v39  ;;  %v4630_v23 = vadd.f32 %v4527_v51, %v12985_v55  ;;  %v6169_v6 = vsel %vm5278_vm11, 1.0, %v12943_v48  ;;  %v5616_v42 = vsel %vm5570_vm9, %v5529_v46, 0.0  ;;  %v12995_v7 = vld [vmem:[#allocation71_spill] sm:$0xff] }
 0x46f   : > { %v8188_v4 = vpop.eup %8187  ;;  %v5613_v53 = vadd.f32 %v5612_v20, %v5611_v33  ;;  %v4541_v34 = vmul.f32 0.6931472, %v8186_v40  ;;  %v5531_v24 = vmul.f32 %v12988_v26, %v5467_v8  ;;  %v4635_v14 = vadd.f32 %v4537_v16, %v12989_v63  ;;  %v12996_v8 = vld [vmem:[#allocation79_spill] sm:$0xff] }
 0x470   : > { %v5614_v17 = vsel %vm5570_vm9, %v5528_v10, 0.0  ;;  %v5466_v38 = vsub.f32 %v4630_v23, %v12987_v18  ;;  %v4531_v37 = vmul.f32 0.6931472, %v8188_v4  ;;  %v4415_v35 = vpop.xlane.xlu1 %4414  ;;  %v8190_v44 = vpop.eup %8189  ;;  %v5533_v22 = vmul.f32 %v12991_v13, %v5469_v61  ;;  %v12997_v23 = vld [vmem:[#allocation18_spill] sm:$0xff]  ;;  %v12998_v50 = vld [vmem:[#allocation23_spill] sm:$0xff] }
 0x471   : > { %v5615_v25 = vadd.f32 %v5614_v17, %v5613_v53  ;;  %8197 = vlog2.f32 %v4415_v35  ;;  %vm5280_vm13 = vcmp.lt.s32.totalorder %v5216_v57, 1024  ;;  %v5153_v54 = vadd.s32 256, %v11512_v19  ;;  %v4429_v53 = vpop.xlane.xlu0 %4428 }
 0x472   : > { %v5530_v45 = vmul.f32 %v11869_v28, %v5466_v38  ;;  %v4632_v5 = vadd.f32 %v4531_v37, %v12990_v43  ;;  %8199 = vlog2.f32 %v4425_v52  ;;  %v4637_v59 = vadd.f32 %v4541_v34, %v12993_v58  ;;  %v12999_v38 = vld [vmem:[#allocation83_spill] sm:$0xff] }
 0x473   : > { %v8192_v3 = vpop.eup %8191  ;;  %v5617_v27 = vadd.f32 %v5616_v42, %v5615_v25  ;;  %v4545_v20 = vmul.f32 0.6931472, %v8190_v44  ;;  %v5620_v36 = vsel %vm5570_vm9, %v5531_v24, 0.0  ;;  %v5471_v60 = vsub.f32 %v4635_v14, %v12994_v11  ;;  %v13000_v44 = vld [vmem:[#allocation87_spill] sm:$0xff]  ;;  %v13001_v14 = vld [vmem:[#allocation93_spill] sm:$0xff] }
 0x474   : > { %v5618_v12 = vsel %vm5570_vm9, %v5530_v45, 0.0  ;;  %v5468_v9 = vsub.f32 %v4632_v5, %v12992_v2  ;;  %v4535_v62 = vmul.f32 0.6931472, %v8192_v3  ;;  %v4419_v15 = vpop.xlane.xlu1 %4418  ;;  %v8194_v29 = vpop.eup %8193  ;;  %v6171_v47 = vsel %vm5280_vm13, 1.0, %v12943_v48  ;;  %v13002_v3 = vld [vmem:[#allocation22_spill] sm:$0xff]  ;;  %v13004_v58 = vld [vmem:[#allocation95_spill] sm:$0xff] }
 0x475   : > { %v5619_v28 = vadd.f32 %v5618_v12, %v5617_v27  ;;  %8201 = vlog2.f32 %v4419_v15  ;;  %v5218_v46 = vadd.s32 %v11522_v56, %v5153_v54  ;;  %v5155_v33 = vadd.s32 272, %v11512_v19  ;;  %v13003_v27 = vld [vmem:[#allocation94_spill] sm:$0xff] }
 0x476   : > { %v5532_v21 = vmul.f32 %v6167_v32, %v5468_v9  ;;  %v4634_v39 = vadd.f32 %v4535_v62, %v12995_v7  ;;  %v5624_v40 = vsel %vm5570_vm9, %v5533_v22, 0.0  ;;  %v5473_v4 = vsub.f32 %v4637_v59, %v12997_v23  ;;  %v4433_v62 = vpop.xlane.xlu0 %4432 }
 0x477   : > { %v8196_v51 = vpop.eup %8195  ;;  %v5621_v30 = vadd.f32 %v5620_v36, %v5619_v28  ;;  %v4639_v61 = vadd.f32 %v4545_v20, %v12998_v50  ;;  %v5535_v57 = vmul.f32 %v11693_v31, %v5471_v60  ;;  %v4549_v17 = vmul.f32 0.6931472, %v8194_v29  ;;  %v13005_v36 = vld [vmem:[#allocation54_spill] sm:$0xff]  ;;  %v13009_v50 = vld [vmem:[#allocation24_spill] sm:$0xff] }
 0x478   : > { %v5622_v1 = vsel %vm5570_vm9, %v5532_v21, 0.0  ;;  %v5470_v16 = vsub.f32 %v4634_v39, %v12996_v8  ;;  %v4539_v10 = vmul.f32 0.6931472, %v8196_v51  ;;  %v4423_v55 = vpop.xlane.xlu1 %4422  ;;  %vm5282_vm10 = vcmp.lt.s32.totalorder %v5218_v46, 1024  ;;  %v13006_v39 = vld [vmem:[#allocation100_spill] sm:$0xff] }
 0x479   : > { %v5623_v32 = vadd.f32 %v5622_v1, %v5621_v30  ;;  %8203 = vlog2.f32 %v4423_v55  ;;  %v5220_v34 = vadd.s32 %v11522_v56, %v5155_v33  ;;  %v5157_v52 = vadd.s32 288, %v11512_v19 }
 0x47a   : > { %v5534_v18 = vmul.f32 %v6169_v6, %v5470_v16  ;;  %v4636_v37 = vadd.f32 %v4539_v10, %v12999_v38  ;;  %8205 = vlog2.f32 %v4429_v53  ;;  %v5537_v63 = vmul.f32 %v11699_v0, %v5473_v4  ;;  %v13008_v10 = vld [vmem:[#allocation99_spill] sm:$0xff]  ;;  %v4437_v38 = vpop.xlane.xlu0 %4436 }
 0x47b   : > { %v8198_v35 = vpop.eup %8197  ;;  %v5625_v42 = vadd.f32 %v5624_v40, %v5623_v32  ;;  %v5475_v6 = vsub.f32 %v4639_v61, %v13001_v14  ;;  %v5628_v5 = vsel %vm5570_vm9, %v5535_v57, 0.0  ;;  %v4641_v13 = vadd.f32 %v4549_v17, %v13002_v3  ;;  %v13010_v17 = vld [vmem:[#allocation73_spill] sm:$0xff]  ;;  %v13013_v14 = vld [vmem:[#allocation106_spill] sm:$0xff] }
 0x47c   : > { %v5626_v25 = vsel %vm5570_vm9, %v5534_v18, 0.0  ;;  %v5472_v26 = vsub.f32 %v4636_v37, %v13000_v44  ;;  %v4543_v24 = vmul.f32 0.6931472, %v8198_v35  ;;  %v4427_v31 = vpop.xlane.xlu1 %4426  ;;  %v8200_v43 = vpop.eup %8199  ;;  %v6173_v9 = vsel %vm5282_vm10, 1.0, %v12943_v48  ;;  %v13011_v35 = vld [vmem:[#allocation104_spill] sm:$0xff] }
 0x47d   : > { %v5627_v45 = vadd.f32 %v5626_v25, %v5625_v42  ;;  %8207 = vlog2.f32 %v4427_v31  ;;  %vm5284_vm0 = vcmp.lt.s32.totalorder %v5220_v34, 1024  ;;  %v5159_v0 = vadd.s32 304, %v11512_v19 }
 0x47e   : > { %v5536_v22 = vmul.f32 %v6171_v47, %v5472_v26  ;;  %v4638_v54 = vadd.f32 %v4543_v24, %v13003_v27  ;;  %v5222_v28 = vadd.s32 %v11522_v56, %v5157_v52  ;;  %v5632_v29 = vsel %vm5570_vm9, %v5537_v63, 0.0  ;;  %v13007_v47 = vld [vmem:[#allocation97_spill] sm:$0xff]  ;;  %v13012_v26 = vld [vmem:[#allocation103_spill] sm:$0xff] }
 0x47f   : > { %v8202_v12 = vpop.eup %8201  ;;  %v5629_v2 = vadd.f32 %v5628_v5, %v5627_v45  ;;  %v5539_v11 = vmul.f32 %v13005_v36, %v5475_v6  ;;  %v4553_v60 = vmul.f32 0.6931472, %v8200_v43  ;;  %v5477_v51 = vsub.f32 %v4641_v13, %v13006_v39  ;;  %v13014_v13 = vld [vmem:[#allocation108_spill] sm:$0xff] }
 0x480   : > { %v5630_v15 = vsel %vm5570_vm9, %v5536_v22, 0.0  ;;  %v5474_v59 = vsub.f32 %v4638_v54, %v13004_v58  ;;  %v4547_v20 = vmul.f32 0.6931472, %v8202_v12  ;;  %v6175_v1 = vsel %vm5284_vm0, 1.0, %v12943_v48 }
 0x481   : > { %v5631_v21 = vadd.f32 %v5630_v15, %v5629_v2  ;;  %v4431_v7 = vpop.xlane.xlu1 %4430  ;;  %v5224_v8 = vadd.s32 %v11522_v56, %v5159_v0  ;;  %vm5286_vm1 = vcmp.lt.s32.totalorder %v5222_v28, 1024  ;;  %v6178_v4 = vsel %vm5287_vm12, 1.0, %v12943_v48  ;;  %v4441_v2 = vpop.xlane.xlu0 %4440 }
 0x482   : > { %v5538_v30 = vmul.f32 %v6173_v9, %v5474_v59  ;;  %v4640_v46 = vadd.f32 %v4547_v20, %v13007_v47  ;;  %8209 = vlog2.f32 %v4431_v7  ;;  %v4643_v61 = vadd.f32 %v4553_v60, %v13009_v50  ;;  %v13016_v20 = vld [vmem:[#allocation27_spill] sm:$0xff] }
 0x483   : > { %v8204_v33 = vpop.eup %8203  ;;  %8211 = vlog2.f32 %v4433_v62  ;;  %v5633_v40 = vadd.f32 %v5632_v29, %v5631_v21  ;;  %v5636_v57 = vsel %vm5570_vm9, %v5539_v11, 0.0  ;;  %v5541_v18 = vmul.f32 %v13010_v17, %v5477_v51  ;;  %v13015_v62 = vld [vmem:[#allocation34_spill] sm:$0xff]  ;;  %v13017_v21 = vld [vmem:[#allocation37_spill] sm:$0xff]  ;;  %v13018_v47 = vld [vmem:[#allocation107_spill] sm:$0xff] }
 0x484   : > { %v5634_v16 = vsel %vm5570_vm9, %v5538_v30, 0.0  ;;  %v5476_v55 = vsub.f32 %v4640_v46, %v13008_v10  ;;  %v4551_v23 = vmul.f32 0.6931472, %v8204_v33  ;;  %v8206_v32 = vpop.eup %8205  ;;  %v5225_v52 = vadd.s32 %v11522_v56, %v11725_v41 }
 0x485   : > { %v5635_v53 = vadd.f32 %v5634_v16, %v5633_v40  ;;  %v6177_v49 = vsel %vm5286_vm1, 1.0, %v12943_v48  ;;  %vm5288_vm2 = vcmp.lt.s32.totalorder %v5224_v8, 1024  ;;  %v5161_v63 = vadd.s32 320, %v11512_v19  ;;  %v4445_v8 = vpop.xlane.xlu0 %4444 }
 0x486   : > { %v5540_v37 = vmul.f32 %v6175_v1, %v5476_v55  ;;  %v4642_v42 = vadd.f32 %v4551_v23, %v13011_v35  ;;  %v5479_v6 = vsub.f32 %v4643_v61, %v13013_v14  ;;  %v4557_v45 = vmul.f32 0.6931472, %v8206_v32  ;;  %v13019_v23 = vld [vmem:[#allocation31_spill] sm:$0xff] }
 0x487   : > { %v8208_v34 = vpop.eup %8207  ;;  %v5637_v25 = vadd.f32 %v5636_v57, %v5635_v53  ;;  %8213 = vlog2.f32 %v4437_v38  ;;  %v5640_v3 = vsel %vm5570_vm9, %v5541_v18, 0.0  ;;  %v5162_v12 = vadd.s32 328, %v11512_v19  ;;  %v13020_v53 = vld [vmem:[#allocation29_spill] sm:$0xff] }
 0x488   : > { %v5638_v44 = vsel %vm5570_vm9, %v5540_v37, 0.0  ;;  %v5478_v24 = vsub.f32 %v4642_v42, %v13012_v26  ;;  %v4555_v31 = vmul.f32 0.6931472, %v8208_v34  ;;  %v6179_v0 = vsel %vm5288_vm2, 1.0, %v12943_v48 }
 0x489   : > { %v5639_v43 = vadd.f32 %v5638_v44, %v5637_v25  ;;  %v4435_v5 = vpop.xlane.xlu1 %4434  ;;  %v5543_v59 = vmul.f32 %v6178_v4, %v5479_v6  ;;  %v4645_v28 = vadd.f32 %v4557_v45, %v13016_v20  ;;  %v5226_v29 = vadd.s32 %v11522_v56, %v5161_v63  ;;  %v4449_v42 = vpop.xlane.xlu0 %4448  ;;  %v13023_v45 = vld [vmem:[#allocation36_spill] sm:$0xff] }
 0x48a   : > { %v5542_v41 = vmul.f32 %v6177_v49, %v5478_v24  ;;  %v4644_v22 = vadd.f32 %v4555_v31, %v13014_v13  ;;  %8215 = vlog2.f32 %v4435_v5  ;;  %vm5289_vm3 = vcmp.lt.s32.totalorder %v5225_v52, 1024  ;;  %v13021_v49 = vld [vmem:[#allocation17_spill] sm:$0xff] }
 0x48b   : > { %v5641_v27 = vadd.f32 %v5640_v3, %v5639_v43  ;;  %8217 = vlog2.f32 %v4441_v2  ;;  %v5163_v39 = vadd.s32 336, %v11512_v19  ;;  %v5644_v30 = vsel %vm5570_vm9, %v5543_v59, 0.0  ;;  %v13022_v24 = vld [vmem:[#allocation53_spill] sm:$0xff]  ;;  %v13025_v59 = vld [vmem:[#allocation42_spill] sm:$0xff] }
 0x48c   : > { %v8210_v54 = vpop.eup %8209  ;;  %v5642_v9 = vsel %vm5570_vm9, %v5542_v41, 0.0  ;;  %v5480_v15 = vsub.f32 %v4644_v22, %v13015_v62  ;;  %v5481_v46 = vsub.f32 %v4645_v28, %v13018_v47  ;;  %v5227_v33 = vadd.s32 %v11522_v56, %v5162_v12  ;;  %v13024_v41 = vld [vmem:[#allocation33_spill] sm:$0xff] }
 0x48d   : > { %v8212_v58 = vpop.eup %8211  ;;  %v4559_v36 = vmul.f32 0.6931472, %v8210_v54  ;;  %v5643_v11 = vadd.f32 %v5642_v9, %v5641_v27  ;;  %vm5290_vm4 = vcmp.lt.s32.totalorder %v5226_v29, 1024  ;;  %v6180_v1 = vsel %vm5289_vm3, 1.0, %v12943_v48  ;;  %v4453_v28 = vpop.xlane.xlu0 %4452 }
 0x48e   : > { %v5544_v60 = vmul.f32 %v6179_v0, %v5480_v15  ;;  %v4561_v51 = vmul.f32 0.6931472, %v8212_v58  ;;  %v5228_v50 = vadd.s32 %v11522_v56, %v5163_v39  ;;  %v5164_v57 = vadd.s32 344, %v11512_v19  ;;  %v13027_v39 = vld [vmem:[#allocation40_spill] sm:$0xff] }
 0x48f   : > { %v4646_v7 = vadd.f32 %v4559_v36, %v13017_v21  ;;  %v5645_v16 = vadd.f32 %v5644_v30, %v5643_v11  ;;  %v6181_v17 = vsel %vm5290_vm4, 1.0, %v12943_v48  ;;  %v5545_v18 = vmul.f32 %v6180_v1, %v5481_v46  ;;  %v13026_v11 = vld [vmem:[#allocation10_spill] sm:$0xff] }
 0x490   : > { %v5646_v55 = vsel %vm5570_vm9, %v5544_v60, 0.0  ;;  %v4647_v32 = vadd.f32 %v4561_v51, %v13020_v53  ;;  %vm5291_vm5 = vcmp.lt.s32.totalorder %v5227_v33, 1024  ;;  %v5165_v37 = vadd.s32 352, %v11512_v19  ;;  %v13028_v33 = vld [vmem:[#allocation44_spill] sm:$0xff]  ;;  %v13029_v53 = vld [vmem:[#allocation41_spill] sm:$0xff] }
 0x491   : > { %v4439_v40 = vpop.xlane.xlu1 %4438  ;;  %v8214_v10 = vpop.eup %8213  ;;  %v5482_v4 = vsub.f32 %v4646_v7, %v13019_v23  ;;  %v5647_v34 = vadd.f32 %v5646_v55, %v5645_v16  ;;  %v5166_v52 = vadd.s32 360, %v11512_v19  ;;  %vm5292_vm6 = vcmp.lt.s32.totalorder %v5228_v50, 1024 }
 0x492   : > { %8219 = vlog2.f32 %v4439_v40  ;;  %v4565_v35 = vmul.f32 0.6931472, %v8214_v10  ;;  %v6182_v26 = vsel %vm5291_vm5, 1.0, %v12943_v48  ;;  %v5483_v31 = vsub.f32 %v4647_v32, %v13022_v24 }
 0x493   : > { %8221 = vlog2.f32 %v4445_v8  ;;  %v5546_v25 = vmul.f32 %v6181_v17, %v5482_v4  ;;  %v5229_v63 = vadd.s32 %v11522_v56, %v5164_v57  ;;  %v5648_v6 = vsel %vm5570_vm9, %v5545_v18, 0.0 }
 0x494   : > { %v8216_v61 = vpop.eup %8215  ;;  %8223 = vlog2.f32 %v4449_v42  ;;  %v5230_v5 = vadd.s32 %v11522_v56, %v5165_v37  ;;  %v4649_v13 = vadd.f32 %v4565_v35, %v13024_v41  ;;  %v5649_v22 = vadd.f32 %v5648_v6, %v5647_v34  ;;  %v4457_v42 = vpop.xlane.xlu0 %4456  ;;  %v13030_v34 = vld [vmem:[#allocation48_spill] sm:$0xff] }
 0x495   : > { %v4563_v38 = vmul.f32 0.6931472, %v8216_v61  ;;  %v8218_v14 = vpop.eup %8217  ;;  %v6183_v27 = vsel %vm5292_vm6, 1.0, %v12943_v48  ;;  %v5231_v54 = vadd.s32 %v11522_v56, %v5166_v52  ;;  %v5650_v12 = vsel %vm5570_vm9, %v5546_v25, 0.0  ;;  %v13032_v6 = vld [vmem:[#allocation52_spill] sm:$0xff] }
 0x496   : > { %v5547_v9 = vmul.f32 %v6182_v26, %v5483_v31  ;;  %vm5293_vm7 = vcmp.lt.s32.totalorder %v5229_v63, 1024  ;;  %v4569_v0 = vmul.f32 0.6931472, %v8218_v14  ;;  %vm5294_vm8 = vcmp.lt.s32.totalorder %v5230_v5, 1024 }
 0x497   : > { %v4648_v44 = vadd.f32 %v4563_v38, %v13021_v49  ;;  %v5167_v58 = vadd.s32 368, %v11512_v19  ;;  %v5485_v20 = vsub.f32 %v4649_v13, %v13025_v59  ;;  %v5651_v29 = vadd.f32 %v5650_v12, %v5649_v22  ;;  %v13033_v22 = vld [vmem:[#allocation74_spill] sm:$0xff] }
 0x498   : > { %v6184_v36 = vsel %vm5293_vm7, 1.0, %v12943_v48  ;;  %vm5295_vm14 = vcmp.lt.s32.totalorder %v5231_v54, 1024  ;;  %v5652_v7 = vsel %vm5570_vm9, %v5547_v9, 0.0  ;;  %v4651_v51 = vadd.f32 %v4569_v0, %v13027_v39  ;;  %v13034_v54 = vld [vmem:[#allocation56_spill] sm:$0xff] }
 0x499   : > { %v5484_v43 = vsub.f32 %v4648_v44, %v13023_v45  ;;  %v4443_v3 = vpop.xlane.xlu1 %4442  ;;  %v5168_v30 = vadd.s32 376, %v11512_v19  ;;  %v6185_v47 = vsel %vm5294_vm8, 1.0, %v12943_v48  ;;  %v5232_v1 = vadd.s32 %v11522_v56, %v5167_v58  ;;  %v13031_v44 = vld [vmem:[#allocation57_spill] sm:$0xff] }
 0x49a   : > { %8225 = vlog2.f32 %v4443_v3  ;;  %v5549_v16 = vmul.f32 %v6184_v36, %v5485_v20  ;;  %v5653_v10 = vadd.f32 %v5652_v7, %v5651_v29  ;;  %v6186_v61 = vsel %vm5295_vm14, 1.0, %v12943_v48  ;;  %v4461_v3 = vpop.xlane.xlu0 %4460  ;;  %v13036_v7 = vld [vmem:[#allocation45_spill] sm:$0xff] }
 0x49b   : > { %v5548_v62 = vmul.f32 %v6183_v27, %v5484_v43  ;;  %8227 = vlog2.f32 %v4453_v28  ;;  %v5487_v32 = vsub.f32 %v4651_v51, %v13029_v53  ;;  %v5170_v57 = vadd.s32 392, %v11512_v19 }
 0x49c   : > { %v8220_v2 = vpop.eup %8219  ;;  %v5233_v18 = vadd.s32 %v11522_v56, %v5168_v30  ;;  %vm5296_vm15 = vcmp.lt.s32.totalorder %v5232_v1, 1024  ;;  %v5169_v37 = vadd.s32 384, %v11512_v19  ;;  %v5656_v35 = vsel %vm5570_vm9, %v5549_v16, 0.0 }
 0x49d   : > { %v4567_v15 = vmul.f32 0.6931472, %v8220_v2  ;;  %v8222_v21 = vpop.eup %8221  ;;  %v5654_v46 = vsel %vm5570_vm9, %v5548_v62, 0.0  ;;  %v5551_v24 = vmul.f32 %v6186_v61, %v5487_v32  ;;  %v5235_v31 = vadd.s32 %v11522_v56, %v5170_v57 }
 0x49e   : > { %v8224_v55 = vpop.eup %8223  ;;  %v4573_v23 = vmul.f32 0.6931472, %v8222_v21  ;;  %v5655_v17 = vadd.f32 %v5654_v46, %v5653_v10  ;;  %v6187_v14 = vsel %vm5296_vm15, 1.0, %v12943_v48  ;;  %vm5297_vm11 = vcmp.lt.s32.totalorder %v5233_v18, 1024  ;;  %v4465_v28 = vpop.xlane.xlu0 %4464 }
 0x49f   : > { %v4650_v60 = vadd.f32 %v4567_v15, %v13026_v11  ;;  %v4577_v25 = vmul.f32 0.6931472, %v8224_v55  ;;  %v5234_v43 = vadd.s32 %v11522_v56, %v5169_v37  ;;  %v5660_v0 = vsel %vm5570_vm9, %v5551_v24, 0.0  ;;  %v13035_v11 = vld [vmem:[#allocation58_spill] sm:$0xff] }
 0x4a0   : > { %v4653_v52 = vadd.f32 %v4573_v23, %v13030_v34  ;;  %v5657_v63 = vadd.f32 %v5656_v35, %v5655_v17  ;;  %v6188_v62 = vsel %vm5297_vm11, 1.0, %v12943_v48  ;;  %vm5299_vm13 = vcmp.lt.s32.totalorder %v5235_v31, 1024  ;;  %v13039_v34 = vld [vmem:[#allocation61_spill] sm:$0xff] }
 0x4a1   : > { %v5486_v40 = vsub.f32 %v4650_v60, %v13028_v33  ;;  %v4447_v8 = vpop.xlane.xlu1 %4446  ;;  %v4655_v12 = vadd.f32 %v4577_v25, %v13034_v54  ;;  %v5172_v15 = vadd.s32 408, %v11512_v19  ;;  %vm5298_vm12 = vcmp.lt.s32.totalorder %v5234_v43, 1024  ;;  %v13037_v33 = vld [vmem:[#allocation60_spill] sm:$0xff] }
 0x4a2   : > { %8229 = vlog2.f32 %v4447_v8  ;;  %v5489_v27 = vsub.f32 %v4653_v52, %v13033_v22  ;;  %v5171_v20 = vadd.s32 400, %v11512_v19  ;;  %v6190_v51 = vsel %vm5299_vm13, 1.0, %v12943_v48  ;;  %v4469_v32 = vpop.xlane.xlu0 %4468 }
 0x4a3   : > { %v5550_v4 = vmul.f32 %v6185_v47, %v5486_v40  ;;  %8231 = vlog2.f32 %v4457_v42  ;;  %v5491_v60 = vsub.f32 %v4655_v12, %v13035_v11  ;;  %v5237_v30 = vadd.s32 %v11522_v56, %v5172_v15 }
 0x4a4   : > { %v8226_v50 = vpop.eup %8225  ;;  %v5553_v36 = vmul.f32 %v6188_v62, %v5489_v27  ;;  %v6189_v46 = vsel %vm5298_vm12, 1.0, %v12943_v48  ;;  %v5236_v1 = vadd.s32 %v11522_v56, %v5171_v20  ;;  %v5174_v16 = vadd.s32 424, %v11512_v19  ;;  %v13044_v20 = vld [vmem:[#allocation78_spill] sm:$0xff] }
 0x4a5   : > { %v4571_v38 = vmul.f32 0.6931472, %v8226_v50  ;;  %v5658_v49 = vsel %vm5570_vm9, %v5550_v4, 0.0  ;;  %v8228_v13 = vpop.eup %8227  ;;  %v5555_v23 = vmul.f32 %v6190_v51, %v5491_v60  ;;  %v13038_v4 = vld [vmem:[#allocation64_spill] sm:$0xff]  ;;  %vm5301_vm10 = vcmp.lt.s32.totalorder %v5237_v30, 1024 }
 0x4a6   : > { %v5659_v41 = vadd.f32 %v5658_v49, %v5657_v63  ;;  %v4581_v21 = vmul.f32 0.6931472, %v8228_v13  ;;  %v5664_v55 = vsel %vm5570_vm9, %v5553_v36, 0.0  ;;  %vm5300_vm0 = vcmp.lt.s32.totalorder %v5236_v1, 1024  ;;  %v13040_v49 = vld [vmem:[#allocation66_spill] sm:$0xff]  ;;  %v13041_v63 = vld [vmem:[#allocation68_spill] sm:$0xff]  ;;  %v4473_v43 = vpop.xlane.xlu0 %4472 }
 0x4a7   : > { %v4652_v26 = vadd.f32 %v4571_v38, %v13031_v44  ;;  %v5173_v38 = vadd.s32 416, %v11512_v19  ;;  %v5239_v37 = vadd.s32 %v11522_v56, %v5174_v16  ;;  %v5668_v42 = vsel %vm5570_vm9, %v5555_v23, 0.0 }
 0x4a8   : > { %v5661_v29 = vadd.f32 %v5660_v0, %v5659_v41  ;;  %v4657_v50 = vadd.f32 %v4581_v21, %v13038_v4  ;;  %v6191_v24 = vsel %vm5300_vm0, 1.0, %v12943_v48  ;;  %v13042_v41 = vld [vmem:[#allocation72_spill] sm:$0xff]  ;;  %v5175_v54 = vadd.s32 432, %v11512_v19 }
 0x4a9   : > { %v5488_v45 = vsub.f32 %v4652_v26, %v13032_v6  ;;  %v4451_v5 = vpop.xlane.xlu1 %4450  ;;  %v6192_v26 = vsel %vm5301_vm10, 1.0, %v12943_v48  ;;  %v5238_v6 = vadd.s32 %v11522_v56, %v5173_v38  ;;  %vm5303_vm1 = vcmp.lt.s32.totalorder %v5239_v37, 1024 }
 0x4aa   : > { %8233 = vlog2.f32 %v4451_v5  ;;  %v5493_v52 = vsub.f32 %v4657_v50, %v13039_v34  ;;  %v6194_v0 = vsel %vm5303_vm1, 1.0, %v12943_v48  ;;  %v4477_v36 = vpop.xlane.xlu0 %4476  ;;  %v5240_v11 = vadd.s32 %v11522_v56, %v5175_v54 }
 0x4ab   : > { %v5552_v2 = vmul.f32 %v6187_v14, %v5488_v45  ;;  %vm5302_vm2 = vcmp.lt.s32.totalorder %v5238_v6, 1024  ;;  %v5176_v60 = vadd.s32 440, %v11512_v19  ;;  %v5179_v30 = vadd.s32 464, %v11512_v19 }
 0x4ac   : > { %v8230_v9 = vpop.eup %8229  ;;  %v5557_v5 = vmul.f32 %v6192_v26, %v5493_v52  ;;  %vm5304_vm3 = vcmp.lt.s32.totalorder %v5240_v11, 1024  ;;  %v5181_v1 = vadd.s32 480, %v11512_v19  ;;  %v5178_v4 = vadd.s32 456, %v11512_v19  ;;  %v13047_v52 = vld [vmem:[#allocation84_spill] sm:$0xff] }
 0x4ad   : > { %v5662_v58 = vsel %vm5570_vm9, %v5552_v2, 0.0  ;;  %v4575_v59 = vmul.f32 0.6931472, %v8230_v9  ;;  %v8232_v10 = vpop.eup %8231  ;;  %v5182_v54 = vadd.s32 488, %v11512_v19  ;;  %v13051_v11 = vld [vmem:[#allocation88_spill] sm:$0xff] }
 0x4ae   : > { %v5663_v47 = vadd.f32 %v5662_v58, %v5661_v29  ;;  %v4585_v25 = vmul.f32 0.6931472, %v8232_v10  ;;  %v5672_v15 = vsel %vm5570_vm9, %v5557_v5, 0.0  ;;  %v13043_v58 = vld [vmem:[#allocation62_spill] sm:$0xff]  ;;  %v5177_v29 = vadd.s32 448, %v11512_v19  ;;  %v5103_v50 = vpop.xlane.xlu0 %5102 }
 0x4af   : > { %v4654_v39 = vadd.f32 %v4575_v59, %v13036_v7  ;;  %v13045_v7 = vld [vmem:[#allocation76_spill] sm:$0xff]  ;;  %v5243_v26 = vadd.s32 %v11522_v56, %v5178_v4  ;;  %v13052_v4 = vld [vmem:[#allocation65_spill] sm:$0xff] }
 0x4b0   : > { %v5665_v57 = vadd.f32 %v5664_v55, %v5663_v47  ;;  %v4659_v13 = vadd.f32 %v4585_v25, %v13042_v41 }
 0x4b1   : > { %v5490_v40 = vsub.f32 %v4654_v39, %v13037_v33  ;;  %v4455_v8 = vpop.xlane.xlu1 %4454  ;;  %v5242_v33 = vadd.s32 %v11522_v56, %v5177_v29  ;;  %vm5307_vm8 = vcmp.lt.s32.totalorder %v5243_v26, 1024  ;;  %v13050_v29 = vld [vmem:[#allocation49_spill] sm:$0xff]  ;;  %v13054_v26 = vld [vmem:[#allocation20_spill] sm:$0xff] }
 0x4b2   : > { %8235 = vlog2.f32 %v4455_v8  ;;  %v5495_v59 = vsub.f32 %v4659_v13, %v13043_v58  ;;  %v5241_v8 = vadd.s32 %v11522_v56, %v5176_v60  ;;  %v5107_v41 = vpop.xlane.xlu0 %5106 }
 0x4b3   : > { %v5554_v61 = vmul.f32 %v6189_v46, %v5490_v40  ;;  %vm5306_vm4 = vcmp.lt.s32.totalorder %v5242_v33, 1024 }
 0x4b4   : > { %v8234_v53 = vpop.eup %8233  ;;  %v5559_v47 = vmul.f32 %v6194_v0, %v5495_v59  ;;  %vm5305_vm5 = vcmp.lt.s32.totalorder %v5241_v8, 1024  ;;  %v5183_v0 = vadd.s32 496, %v11512_v19 }
 0x4b5   : > { %v5666_v17 = vsel %vm5570_vm9, %v5554_v61, 0.0  ;;  %v4579_v18 = vmul.f32 0.6931472, %v8234_v53  ;;  %v5244_v61 = vadd.s32 %v11522_v56, %v5179_v30  ;;  %v6196_v13 = vsel %vm5305_vm5, 1.0, %v12943_v48 }
 0x4b6   : > { %v5667_v35 = vadd.f32 %v5666_v17, %v5665_v57  ;;  %v13046_v57 = vld [vmem:[#allocation21_spill] sm:$0xff]  ;;  %v5247_v30 = vadd.s32 %v11522_v56, %v5182_v54  ;;  %v5111_v8 = vpop.xlane.xlu0 %5110 }
 0x4b7   : > { %v4656_v44 = vadd.f32 %v4579_v18, %v13040_v49  ;;  %v5676_v18 = vsel %vm5570_vm9, %v5559_v47, 0.0  ;;  %vm5308_vm6 = vcmp.lt.s32.totalorder %v5244_v61, 1024 }
 0x4b8   : > { %v5669_v31 = vadd.f32 %v5668_v42, %v5667_v35  ;;  %v6195_v35 = vsel %vm5304_vm3, 1.0, %v12943_v48  ;;  %v5246_v42 = vadd.s32 %v11522_v56, %v5181_v1  ;;  %v5248_v1 = vadd.s32 %v11522_v56, %v5183_v0 }
 0x4b9   : > { %v5492_v14 = vsub.f32 %v4656_v44, %v13041_v63  ;;  %v4459_v45 = vpop.xlane.xlu1 %4458  ;;  %vm5311_vm15 = vcmp.lt.s32.totalorder %v5247_v30, 1024 }
 0x4ba   : > { %8237 = vlog2.f32 %v4459_v45  ;;  %v13048_v45 = vld [vmem:[#allocation2_spill] sm:$0xff]  ;;  %vm5310_vm7 = vcmp.lt.s32.totalorder %v5246_v42, 1024  ;;  %vm5312_vm11 = vcmp.lt.s32.totalorder %v5248_v1, 1024 }
 0x4bb   : > { %8239 = vlog2.f32 %v4461_v3  ;;  %v5556_v22 = vmul.f32 %v6191_v24, %v5492_v14  ;;  %v6197_v24 = vsel %vm5306_vm4, 1.0, %v12943_v48 }
 0x4bc   : > { %v8236_v27 = vpop.eup %8235  ;;  %8241 = vlog2.f32 %v4465_v28  ;;  %v6193_v28 = vsel %vm5302_vm2, 1.0, %v12943_v48 }
 0x4bd   : > { %v5670_v12 = vsel %vm5570_vm9, %v5556_v22, 0.0  ;;  %v4583_v2 = vmul.f32 0.6931472, %v8236_v27  ;;  %v4463_v9 = vpop.xlane.xlu1 %4462  ;;  %v13049_v22 = vld [vmem:[#allocation80_spill] sm:$0xff] }
 0x4be   : > { %v5671_v62 = vadd.f32 %v5670_v12, %v5669_v31  ;;  %8243 = vlog2.f32 %v4463_v9  ;;  %v5180_v31 = vadd.s32 472, %v11512_v19 }
 0x4bf   : > { %v4658_v3 = vadd.f32 %v4583_v2, %v13044_v20  ;;  %8245 = vlog2.f32 %v4469_v32 }
 0x4c0   : > { %v5673_v21 = vadd.f32 %v5672_v15, %v5671_v62  ;;  %v6199_v62 = vsel %vm5308_vm6, 1.0, %v12943_v48  ;;  %v5245_v59 = vadd.s32 %v11522_v56, %v5180_v31 }
 0x4c1   : > { %v5494_v39 = vsub.f32 %v4658_v3, %v13045_v7  ;;  %v4467_v51 = vpop.xlane.xlu1 %4466 }
 0x4c2   : > { %8247 = vlog2.f32 %v4467_v51  ;;  %v6198_v51 = vsel %vm5307_vm8, 1.0, %v12943_v48  ;;  %vm5309_vm14 = vcmp.lt.s32.totalorder %v5245_v59, 1024 }
 0x4c3   : > { %v5558_v46 = vmul.f32 %v6193_v28, %v5494_v39  ;;  %8249 = vlog2.f32 %v4473_v43  ;;  %v6201_v28 = vsel %vm5310_vm7, 1.0, %v12943_v48 }
 0x4c4   : > { %v8238_v40 = vpop.eup %8237 }
 0x4c5   : > { %v8240_v16 = vpop.eup %8239  ;;  %v5674_v10 = vsel %vm5570_vm9, %v5558_v46, 0.0  ;;  %v4587_v55 = vmul.f32 0.6931472, %v8238_v40  ;;  %v4471_v23 = vpop.xlane.xlu1 %4470 }
 0x4c6   : > { %8251 = vlog2.f32 %v4471_v23  ;;  %v5675_v53 = vadd.f32 %v5674_v10, %v5673_v21  ;;  %v8242_v32 = vpop.eup %8241  ;;  %v4589_v37 = vmul.f32 0.6931472, %v8240_v16 }
 0x4c7   : > { %v4660_v17 = vadd.f32 %v4587_v55, %v13046_v57  ;;  %v4593_v14 = vmul.f32 0.6931472, %v8242_v32  ;;  %v5184_v55 = vadd.s32 504, %v11512_v19 }
 0x4c8   : > { %v8244_v38 = vpop.eup %8243  ;;  %v5677_v34 = vadd.f32 %v5676_v18, %v5675_v53  ;;  %v4661_v27 = vadd.f32 %v4589_v37, %v13049_v22  ;;  %v13053_v53 = vld [vmem:[#allocation92_spill] sm:$0xff] }
 0x4c9   : > { %v5496_v25 = vsub.f32 %v4660_v17, %v13047_v52  ;;  %v4591_v49 = vmul.f32 0.6931472, %v8244_v38  ;;  %v4475_v44 = vpop.xlane.xlu1 %4474  ;;  %v8246_v63 = vpop.eup %8245  ;;  %v4663_v60 = vadd.f32 %v4593_v14, %v13051_v11  ;;  %v6200_v52 = vsel %vm5309_vm14, 1.0, %v12943_v48 }
 0x4ca   : > { %8253 = vlog2.f32 %v4475_v44  ;;  %v4597_v3 = vmul.f32 0.6931472, %v8246_v63  ;;  %v5249_v44 = vadd.s32 %v11522_v56, %v5184_v55  ;;  %v13055_v63 = vld [vmem:[#allocation91_spill] sm:$0xff]  ;;  %v6203_v56 = vsel %vm5312_vm11, 1.0, %v12943_v48 }
 0x4cb   : > { %8255 = vlog2.f32 %v4477_v36  ;;  %v5560_v6 = vmul.f32 %v6195_v35, %v5496_v25  ;;  %v4662_v43 = vadd.f32 %v4591_v49, %v13048_v45  ;;  %v5115_v45 = vpop.xlane.xlu0 %5114 }
 0x4cc   : > { %v8248_v5 = vpop.eup %8247  ;;  %v4665_v32 = vadd.f32 %v4597_v3, %v13053_v53  ;;  %vm5313_vm13 = vcmp.lt.s32.totalorder %v5249_v44, 1024 }
 0x4cd   : > { %v5498_v12 = vsub.f32 %v4662_v43, %v5103_v50  ;;  %v4595_v2 = vmul.f32 0.6931472, %v8248_v5  ;;  %v5101_v9 = vpop.xlane.xlu1 %5100  ;;  %v5678_v58 = vsel %vm5570_vm9, %v5560_v6, 0.0  ;;  %v8250_v20 = vpop.eup %8249  ;;  %v6204_v3 = vsel %vm5313_vm13, 1.0, %v12943_v48 }
 0x4ce   : > { %v5497_v15 = vsub.f32 %v4661_v27, %v5101_v9  ;;  %v5679_v33 = vadd.f32 %v5678_v58, %v5677_v34  ;;  %v4601_v23 = vmul.f32 0.6931472, %v8250_v20  ;;  %v6202_v27 = vsel %vm5311_vm15, 1.0, %v12943_v48 }
 0x4cf   : > { %v4664_v36 = vadd.f32 %v4595_v2, %v13050_v29  ;;  %v5562_v7 = vmul.f32 %v6197_v24, %v5498_v12 }
 0x4d0   : > { %v8252_v21 = vpop.eup %8251  ;;  %v5561_v39 = vmul.f32 %v6196_v13, %v5497_v15  ;;  %v4667_v14 = vadd.f32 %v4601_v23, %v13055_v63  ;;  %v13056_v15 = vld [vmem:[#allocation96_spill] sm:$0xff] }
 0x4d1   : > { %v5500_v47 = vsub.f32 %v4664_v36, %v5107_v41  ;;  %v4599_v46 = vmul.f32 0.6931472, %v8252_v21  ;;  %v5105_v40 = vpop.xlane.xlu1 %5104  ;;  %v5682_v38 = vsel %vm5570_vm9, %v5562_v7, 0.0 }
 0x4d2   : > { %v5680_v16 = vsel %vm5570_vm9, %v5561_v39, 0.0  ;;  %v5499_v10 = vsub.f32 %v4663_v60, %v5105_v40 }
 0x4d3   : > { %v4666_v50 = vadd.f32 %v4599_v46, %v13052_v4  ;;  %v5681_v61 = vadd.f32 %v5680_v16, %v5679_v33  ;;  %v5564_v17 = vmul.f32 %v6199_v62, %v5500_v47 }
 0x4d4   : > { %v8254_v57 = vpop.eup %8253  ;;  %v5563_v18 = vmul.f32 %v6198_v51, %v5499_v10 }
 0x4d5   : > { %v8256_v37 = vpop.eup %8255  ;;  %v5502_v35 = vsub.f32 %v4666_v50, %v5111_v8  ;;  %v4603_v42 = vmul.f32 0.6931472, %v8254_v57  ;;  %v5683_v34 = vadd.f32 %v5682_v38, %v5681_v61  ;;  %v5109_v25 = vpop.xlane.xlu1 %5108  ;;  %v5686_v41 = vsel %vm5570_vm9, %v5564_v17, 0.0 }
 0x4d6   : > { %v5684_v19 = vsel %vm5570_vm9, %v5563_v18, 0.0  ;;  %v5501_v49 = vsub.f32 %v4665_v32, %v5109_v25  ;;  %v4605_v6 = vmul.f32 0.6931472, %v8256_v37 }
 0x4d7   : > { %v4668_v24 = vadd.f32 %v4603_v42, %v13054_v26  ;;  %v5685_v31 = vadd.f32 %v5684_v19, %v5683_v34  ;;  %v5566_v43 = vmul.f32 %v6201_v28, %v5502_v35 }
 0x4d8   : > { %v5565_v5 = vmul.f32 %v6200_v52, %v5501_v49  ;;  %v4669_v58 = vadd.f32 %v4605_v6, %v13056_v15 }
 0x4d9   : > { %v5504_v13 = vsub.f32 %v4668_v24, %v5115_v45  ;;  %v5687_v22 = vadd.f32 %v5686_v41, %v5685_v31  ;;  %v5113_v54 = vpop.xlane.xlu1 %5112  ;;  %v5690_v62 = vsel %vm5570_vm9, %v5566_v43, 0.0 }
 0x4da   : > { %v5688_v12 = vsel %vm5570_vm9, %v5565_v5, 0.0  ;;  %v5503_v2 = vsub.f32 %v4667_v14, %v5113_v54 }
 0x4db   : > { %v5689_v9 = vadd.f32 %v5688_v12, %v5687_v22  ;;  %v5568_v59 = vmul.f32 %v6203_v56, %v5504_v13 }
 0x4dc   : > { %v5567_v0 = vmul.f32 %v6202_v27, %v5503_v2 }
 0x4dd   : > { %v5691_v20 = vadd.f32 %v5690_v62, %v5689_v9  ;;  %v5117_v29 = vpop.xlane.xlu1 %5116  ;;  %v5694_v21 = vsel %vm5570_vm9, %v5568_v59, 0.0 }
 0x4de   : > { %v5692_v36 = vsel %vm5570_vm9, %v5567_v0, 0.0  ;;  %v5505_v28 = vsub.f32 %v4669_v58, %v5117_v29 }
 0x4df   : > { %v5693_v11 = vadd.f32 %v5692_v36, %v5691_v20 }
 0x4e0   : > { %v5569_v60 = vmul.f32 %v6204_v3, %v5505_v28 }
 0x4e1   : > { %v5695_v7 = vadd.f32 %v5694_v21, %v5693_v11 }
 0x4e2   : > { %v5696_v39 = vsel %vm5570_vm9, %v5569_v60, 0.0 }
 0x4e3   : > { %v5697_v51 = vadd.f32 %v5696_v39, %v5695_v7 }
 0x4e5   : > { %5698 = vadd.xlane.f32.xlu0 %v5697_v51 }
 0x572   : > { %v5699_v30 = vpop.xlane.xlu0 %5698 }
 0x573   : > { %v5700_v47 = vrot.slane %v5699_v30, 4 }
 0x575   : > { %v5701_v46 = vadd.f32 %v5700_v47, %v5699_v30 }
 0x577   : > { %v5702_v33 = vrot.slane %v5701_v46, 2 }
 0x579   : > { %v5703_v48 = vadd.f32 %v5702_v33, %v5701_v46 }
 0x57b   : > { %v5704_v40 = vrot.slane %v5703_v48, 1 }
 0x57d   : > { %v5705_v1 = vadd.f32 %v5704_v40, %v5703_v48 }
 0x57f   : > { %7967 = vpush %v5705_v1 }
 0x5b0   : > { %s7968_s8 = spop %7967 }
 0x5b1   : > { %v5772_v8 = vstv %s7968_s8 }
 0x5b2   : > { %5774 = vst [vmem:[%s208_s11] sm:$0xff] %v5772_v8 }
 0x5b3 PF: > { %s14_s14 = sadd.s32 1, %s8380_s14   ;;  %s13057_s12 = smov %s8376_s13 }
 0x5b4   : > { %p11_p6 = scmp.ge.s32.totalorder %s14_s14, 4   ;;  %s13058_s13 = smov %s13060_s15 }
 0x5b6   :  { %13 = sbr.rel (!%p11_p6) target bundleno = 2 (0x2), region = 74 }

</bundles_post_ra>
